<compile_context>
chip_gen: v7x
topology: tpu7x:2x2x1
jax: 0.10.0
libtpu: 0.0.40
codegen_flags: <defaults>
</compile_context>

<pallas_src>
import jax
import jax.numpy as jnp
from jax import lax
from jax.experimental import pallas as pl
from jax.experimental.pallas import tpu as pltpu


# ----------------------------- fused Pallas kernel --------------------------

def _tempcnn_fused_kernel(
        x_ref, w1s_ref, b1_ref, w2s_ref, b2_ref, bn1s_ref, bn1b_ref,
        wih0_ref, whh0_ref, bl0_ref, wih1_ref, whh1_ref, bl1_ref,
        w3blk_ref, b3row_ref, bn2s_ref, bn2b_ref,
        wfc1_ref, bfc1_ref, wfc2_ref, bfc2_ref,
        out_ref):
    f32 = jnp.float32
    bf16 = jnp.bfloat16

    nb = out_ref.shape[0]              # batch N
    tn = x_ref.shape[0]                # len_seq * N   (rows ordered (t, n))
    t_seq = tn // nb                   # len_seq
    hid = whh0_ref.shape[0]            # LSTM hidden = 4 * hidden_size

    # ---- conv1d (k=3, stride=1, pad=1) + bias + ReLU (+ optional eval-BN affine) ----
    # xf rows are (t, n); shifting time by +/-1 == shifting rows by +/-nb, zero at edges.
    def conv_k3(xf, w_ref, b_ref, scale_ref=None, shift_ref=None):
        m, cin = xf.shape
        zero_blk = jnp.zeros((nb, cin), f32)
        xm = jnp.concatenate([zero_blk, xf[:m - nb, :]], axis=0)      # x[t-1]
        xp = jnp.concatenate([xf[nb:, :], zero_blk], axis=0)          # x[t+1]
        xc = jnp.concatenate([xm, xf, xp], axis=1).astype(bf16)       # (T*N, 3*Cin)
        y = jnp.dot(xc, w_ref[...], preferred_element_type=f32) + b_ref[...]
        y = jnp.maximum(y, 0.0)                                       # ReLU
        if scale_ref is not None:                                     # folded eval BN
            y = y * scale_ref[...] + shift_ref[...]
        return y                                                      # (T*N, Cout) f32

    h = conv_k3(x_ref[...], w1s_ref, b1_ref)                          # conv1 + relu1
    h = conv_k3(h, w2s_ref, b2_ref, bn1s_ref, bn1b_ref)               # conv2 + relu2 + bn_1

    # ---- 2-layer LSTM (batch_first), time-major flat rows (t, n) --------------------
    def lstm_layer(xf, wih_ref, whh_ref, b_ref):
        # Hoisted input projection: one (T*N, Din) x (Din, 4H) matmul.
        gxf = (jnp.dot(xf.astype(bf16), wih_ref[...],
                       preferred_element_type=f32) + b_ref[...])      # (T*N, 4H)
        whh = whh_ref[...]                                            # (H, 4H) bf16
        hcur = jnp.zeros((nb, hid), f32)
        ccur = jnp.zeros((nb, hid), f32)
        outs = []
        for t in range(t_seq):                                        # short, fully unrolled
            gates = (gxf[t * nb:(t + 1) * nb, :]
                     + jnp.dot(hcur.astype(bf16), whh,
                               preferred_element_type=f32))           # (N, 4H)
            i_g = jax.nn.sigmoid(gates[:, 0:hid])
            f_g = jax.nn.sigmoid(gates[:, hid:2 * hid])
            g_g = jnp.tanh(gates[:, 2 * hid:3 * hid])
            o_g = jax.nn.sigmoid(gates[:, 3 * hid:4 * hid])
            ccur = f_g * ccur + i_g * g_g
            hcur = o_g * jnp.tanh(ccur)
            outs.append(hcur)
        return jnp.concatenate(outs, axis=0)                          # (T*N, H), rows (t, n)

    h = lstm_layer(h, wih0_ref, whh0_ref, bl0_ref)
    h = lstm_layer(h, wih1_ref, whh1_ref, bl1_ref)                    # (T*N, H)

    # ---- conv1d_3: channels = time axis, length = H; one block-diagonal matmul ------
    # Shifts along the length (lane) axis, per (t, n) row -> never cross batch/time.
    zcol = jnp.zeros((tn, 1), f32)
    ym = jnp.concatenate([zcol, h[:, :hid - 1]], axis=1)              # y[.., l-1]
    yp = jnp.concatenate([h[:, 1:], zcol], axis=1)                    # y[.., l+1]
    ycat = jnp.concatenate([ym, h, yp], axis=0).astype(bf16)          # (3*T*N, H)
    z = jnp.dot(w3blk_ref[...], ycat, preferred_element_type=f32)     # (2T*N, H), rows (co, n)
    z = jnp.maximum(z + b3row_ref[...], 0.0)                          # + bias, relu3
    z = z * bn2s_ref[...] + bn2b_ref[...]                             # bn_2 (eval, folded)
    z = jnp.maximum(z, 0.0).astype(bf16)                              # relu4

    # ---- fc1 + relu5: contract over (channel, length) with per-channel weight slabs -
    n_fc1 = wfc1_ref.shape[2]
    acc = jnp.zeros((nb, n_fc1), f32)
    for co in range(wfc1_ref.shape[0]):                               # 2*len_seq, static
        acc = acc + jnp.dot(z[co * nb:(co + 1) * nb, :], wfc1_ref[co],
                            preferred_element_type=f32)
    h1 = jnp.maximum(acc + bfc1_ref[...], 0.0)                        # (N, 256)

    # ---- fc2 + softmax ---------------------------------------------------------------
    logits = (jnp.dot(h1.astype(bf16), wfc2_ref[...],
                      preferred_element_type=f32) + bfc2_ref[...])    # (N, num_classes)
    m = jnp.max(logits, axis=1, keepdims=True)
    e = jnp.exp(logits - m)
    s = jnp.sum(e, axis=1, keepdims=True)
    out_ref[...] = e * pl.reciprocal(s, approx=False)


# ----------------------------- wrapper ---------------------------------------

_N_INPUTS = 21


def temp_cnn_forward(x, fp):
    """x: (N, input_size, len_seq) in PyTorch NCL layout; fp: prepared params."""
    n_batch, cin, len_seq = x.shape
    # NCL -> time-major flat (t, n)-ordered rows: (len_seq * N, Cin)
    x2d = jnp.transpose(x, (2, 0, 1)).reshape(len_seq * n_batch, cin)
    num_classes = fp["bfc2"].shape[1]

    return pl.pallas_call(
        _tempcnn_fused_kernel,
        out_shape=jax.ShapeDtypeStruct((n_batch, num_classes), jnp.float32),
        in_specs=[pl.BlockSpec(memory_space=pltpu.MemorySpace.VMEM)] * _N_INPUTS,
        out_specs=pl.BlockSpec(memory_space=pltpu.MemorySpace.VMEM),
    )(x2d,
      fp["w1s"], fp["b1"],
      fp["w2s"], fp["b2"], fp["bn1s"], fp["bn1b"],
      fp["wih0"], fp["whh0"], fp["bl0"],
      fp["wih1"], fp["whh1"], fp["bl1"],
      fp["w3blk"], fp["b3row"], fp["bn2s"], fp["bn2b"],
      fp["wfc1"], fp["bfc1"], fp["wfc2"], fp["bfc2"])


# ----------------------------- parameters ------------------------------------

def init_params(key, input_size, hidden_size, len_seq, num_classes):
    """Parameters in the original PyTorch layouts."""
    H = hidden_size * 4
    ks = jax.random.split(key, 16)
    s = 0.05

    def rnd(k, shape):
        return s * jax.random.normal(k, shape, jnp.float32)

    eps = 1e-5

    # BatchNorm1d eval defaults: gamma=1, beta=0, running_mean=0, running_var=1
    def bn_affine(c):
        gamma = jnp.ones((c,), jnp.float32)
        beta = jnp.zeros((c,), jnp.float32)
        rm = jnp.zeros((c,), jnp.float32)
        rv = jnp.ones((c,), jnp.float32)
        scale = gamma / jnp.sqrt(rv + eps)
        shift = beta - rm * scale
        return scale, shift

    bn1_scale, bn1_shift = bn_affine(hidden_size * 2)
    bn2_scale, bn2_shift = bn_affine(len_seq * 2)

    return {
        "conv1_w": rnd(ks[0], (hidden_size, input_size, 3)),
        "conv1_b": rnd(ks[1], (hidden_size,)),
        "conv2_w": rnd(ks[2], (hidden_size * 2, hidden_size, 3)),
        "conv2_b": rnd(ks[3], (hidden_size * 2,)),
        "bn1_scale": bn1_scale, "bn1_shift": bn1_shift,
        "lstm0_wih": rnd(ks[4], (4 * H, hidden_size * 2)),
        "lstm0_whh": rnd(ks[5], (4 * H, H)),
        "lstm0_bih": rnd(ks[6], (4 * H,)),
        "lstm0_bhh": rnd(ks[7], (4 * H,)),
        "lstm1_wih": rnd(ks[8], (4 * H, H)),
        "lstm1_whh": rnd(ks[9], (4 * H, H)),
        "lstm1_bih": rnd(ks[10], (4 * H,)),
        "lstm1_bhh": rnd(ks[11], (4 * H,)),
        "conv3_w": rnd(ks[12], (len_seq * 2, len_seq, 3)),
        "conv3_b": rnd(ks[13], (len_seq * 2,)),
        "bn2_scale": bn2_scale, "bn2_shift": bn2_shift,
        "fc1_w": rnd(ks[14], (256, len_seq * 2 * H)),
        "fc1_b": jnp.zeros((256,), jnp.float32),
        "fc2_w": rnd(ks[15], (num_classes, 256)),
        "fc2_b": jnp.zeros((num_classes,), jnp.float32),
    }


def prepare_params(p, batch_n):
    """One-time prep: tap-stack / transpose / block-diag / bf16-cast all weights."""
    bf16 = jnp.bfloat16
    f32 = jnp.float32

    def stack_conv_taps(w):        # torch (Cout, Cin, 3) -> (3*Cin, Cout), tap-major rows
        return jnp.concatenate([jnp.transpose(w[:, :, k]) for k in range(3)], axis=0)

    H = p["lstm0_whh"].shape[1]                      # LSTM hidden (= 4*hidden_size)
    two_t = p["conv3_w"].shape[0]                    # 2 * len_seq
    n_fc1 = p["fc1_w"].shape[0]

    # conv3 as a block-diagonal matmul weight: rows (co, n), cols (k, ci, n).
    w3s = jnp.concatenate([p["conv3_w"][:, :, k] for k in range(3)], axis=1)   # (2T, 3T)
    w3blk = jnp.kron(w3s, jnp.eye(batch_n, dtype=f32))                         # (2T*N, 3T*N)

    def per_row(v):                                  # per-channel vec -> (2T*N, 1), (co, n)
        return jnp.repeat(v, batch_n).reshape(-1, 1).astype(f32)

    return {
        "w1s": stack_conv_taps(p["conv1_w"]).astype(bf16),
        "b1": p["conv1_b"].reshape(1, -1).astype(f32),
        "w2s": stack_conv_taps(p["conv2_w"]).astype(bf16),
        "b2": p["conv2_b"].reshape(1, -1).astype(f32),
        "bn1s": p["bn1_scale"].reshape(1, -1).astype(f32),
        "bn1b": p["bn1_shift"].reshape(1, -1).astype(f32),
        "wih0": jnp.transpose(p["lstm0_wih"]).astype(bf16),
        "whh0": jnp.transpose(p["lstm0_whh"]).astype(bf16),
        "bl0": (p["lstm0_bih"] + p["lstm0_bhh"]).reshape(1, -1).astype(f32),
        "wih1": jnp.transpose(p["lstm1_wih"]).astype(bf16),
        "whh1": jnp.transpose(p["lstm1_whh"]).astype(bf16),
        "bl1": (p["lstm1_bih"] + p["lstm1_bhh"]).reshape(1, -1).astype(f32),
        "w3blk": w3blk.astype(bf16),
        "b3row": per_row(p["conv3_b"]),
        "bn2s": per_row(p["bn2_scale"]),
        "bn2b": per_row(p["bn2_shift"]),
        # fc1 weight as per-channel (co) slabs of (H, 256): W[co, l, j] = fc1_w[j, co*H + l]
        "wfc1": jnp.transpose(p["fc1_w"]).reshape(two_t, H, n_fc1).astype(bf16),
        "bfc1": p["fc1_b"].reshape(1, -1).astype(f32),
        "wfc2": jnp.transpose(p["fc2_w"]).astype(bf16),
        "bfc2": p["fc2_b"].reshape(1, -1).astype(f32),
    }


# ----------------------------- main -------------------------------------------

if __name__ == "__main__":
    N = 2
    input_size = 4
    hidden_size = 32
    len_seq = 8
    num_classes = 10

    key = jax.random.PRNGKey(0)
    kx, kp = jax.random.split(key)
    x = jax.random.normal(kx, (N, input_size, len_seq), jnp.float32)   # torch NCL layout

    params = init_params(kp, input_size, hidden_size, len_seq, num_classes)
    fused_params = prepare_params(params, N)

    fwd = jax.jit(temp_cnn_forward)
    out = fwd(x, fused_params)
    out = jax.block_until_ready(out)

    assert out.shape == (N, num_classes)
    # softmax rows must sum to 1
    assert bool(jnp.allclose(jnp.sum(out, axis=1), 1.0, atol=1e-4))
    print("KERNEL_OK")
</pallas_src>

<mosaic_0001>
module attributes {stable_mosaic.version = 11 : i64} {
  func.func @_tempcnn_fused_kernel(%arg0: memref<16x4xf32, #tpu.memory_space<vmem>>, %arg1: memref<12x32xbf16, #tpu.memory_space<vmem>>, %arg2: memref<1x32xf32, #tpu.memory_space<vmem>>, %arg3: memref<96x64xbf16, #tpu.memory_space<vmem>>, %arg4: memref<1x64xf32, #tpu.memory_space<vmem>>, %arg5: memref<1x64xf32, #tpu.memory_space<vmem>>, %arg6: memref<1x64xf32, #tpu.memory_space<vmem>>, %arg7: memref<64x512xbf16, #tpu.memory_space<vmem>>, %arg8: memref<128x512xbf16, #tpu.memory_space<vmem>>, %arg9: memref<1x512xf32, #tpu.memory_space<vmem>>, %arg10: memref<128x512xbf16, #tpu.memory_space<vmem>>, %arg11: memref<128x512xbf16, #tpu.memory_space<vmem>>, %arg12: memref<1x512xf32, #tpu.memory_space<vmem>>, %arg13: memref<32x48xbf16, #tpu.memory_space<vmem>>, %arg14: memref<32x1xf32, #tpu.memory_space<vmem>>, %arg15: memref<32x1xf32, #tpu.memory_space<vmem>>, %arg16: memref<32x1xf32, #tpu.memory_space<vmem>>, %arg17: memref<16x128x256xbf16, #tpu.memory_space<vmem>>, %arg18: memref<1x256xf32, #tpu.memory_space<vmem>>, %arg19: memref<256x10xbf16, #tpu.memory_space<vmem>>, %arg20: memref<1x10xf32, #tpu.memory_space<vmem>>, %arg21: memref<2x10xf32, #tpu.memory_space<vmem>>) attributes {dimension_semantics = [], scalar_prefetch = 0 : i64, scratch_operands = 0 : i64, tpu.core_type = #tpu.core_type<tc>} {
    %c0 = arith.constant 0 : index
    %c0_0 = arith.constant 0 : index
    %0 = vector.load %arg0[%c0, %c0_0] : memref<16x4xf32, #tpu.memory_space<vmem>>, vector<16x4xf32>
    %cst = arith.constant 0.000000e+00 : f32
    %1 = vector.broadcast %cst : f32 to vector<2x4xf32>
    %2 = vector.extract_strided_slice %0 {offsets = [0, 0], sizes = [14, 4], strides = [1, 1]} : vector<16x4xf32> to vector<14x4xf32>
    %3 = tpu.concatenate %1, %2 in 0 : vector<2x4xf32>, vector<14x4xf32> -> vector<16x4xf32>
    %4 = vector.extract_strided_slice %0 {offsets = [2, 0], sizes = [14, 4], strides = [1, 1]} : vector<16x4xf32> to vector<14x4xf32>
    %5 = tpu.concatenate %4, %1 in 0 : vector<14x4xf32>, vector<2x4xf32> -> vector<16x4xf32>
    %6 = tpu.concatenate %3, %0, %5 in 1 : vector<16x4xf32>, vector<16x4xf32>, vector<16x4xf32> -> vector<16x12xf32>
    %7 = arith.truncf %6 : vector<16x12xf32> to vector<16x12xbf16>
    %c0_1 = arith.constant 0 : index
    %c0_2 = arith.constant 0 : index
    %8 = vector.load %arg1[%c0_1, %c0_2] : memref<12x32xbf16, #tpu.memory_space<vmem>>, vector<12x32xbf16>
    %cst_3 = arith.constant dense<0.000000e+00> : vector<16x32xf32>
    %9 = tpu.matmul %7, %8, %cst_3 {dimension_numbers = #tpu.dot_dimension_numbers<[1], [0], [0], [1], [0, 0, 1, 1], [], []>} : vector<16x12xbf16>, vector<12x32xbf16>, vector<16x32xf32> -> vector<16x32xf32>
    %c0_4 = arith.constant 0 : index
    %c0_5 = arith.constant 0 : index
    %10 = vector.load %arg2[%c0_4, %c0_5] : memref<1x32xf32, #tpu.memory_space<vmem>>, vector<1x32xf32>
    %11 = vector.broadcast %10 : vector<1x32xf32> to vector<16x32xf32>
    %12 = arith.addf %9, %11 : vector<16x32xf32>
    %cst_6 = arith.constant 0.000000e+00 : f32
    %13 = vector.broadcast %cst_6 : f32 to vector<16x32xf32>
    %14 = arith.maximumf %12, %13 : vector<16x32xf32>
    %cst_7 = arith.constant 0.000000e+00 : f32
    %15 = vector.broadcast %cst_7 : f32 to vector<2x32xf32>
    %16 = vector.extract_strided_slice %14 {offsets = [0, 0], sizes = [14, 32], strides = [1, 1]} : vector<16x32xf32> to vector<14x32xf32>
    %17 = tpu.concatenate %15, %16 in 0 : vector<2x32xf32>, vector<14x32xf32> -> vector<16x32xf32>
    %18 = vector.extract_strided_slice %14 {offsets = [2, 0], sizes = [14, 32], strides = [1, 1]} : vector<16x32xf32> to vector<14x32xf32>
    %19 = tpu.concatenate %18, %15 in 0 : vector<14x32xf32>, vector<2x32xf32> -> vector<16x32xf32>
    %20 = tpu.concatenate %17, %14, %19 in 1 : vector<16x32xf32>, vector<16x32xf32>, vector<16x32xf32> -> vector<16x96xf32>
    %21 = arith.truncf %20 : vector<16x96xf32> to vector<16x96xbf16>
    %c0_8 = arith.constant 0 : index
    %c0_9 = arith.constant 0 : index
    %22 = vector.load %arg3[%c0_8, %c0_9] : memref<96x64xbf16, #tpu.memory_space<vmem>>, vector<96x64xbf16>
    %cst_10 = arith.constant dense<0.000000e+00> : vector<16x64xf32>
    %23 = tpu.matmul %21, %22, %cst_10 {dimension_numbers = #tpu.dot_dimension_numbers<[1], [0], [0], [1], [0, 0, 1, 1], [], []>} : vector<16x96xbf16>, vector<96x64xbf16>, vector<16x64xf32> -> vector<16x64xf32>
    %c0_11 = arith.constant 0 : index
    %c0_12 = arith.constant 0 : index
    %24 = vector.load %arg4[%c0_11, %c0_12] : memref<1x64xf32, #tpu.memory_space<vmem>>, vector<1x64xf32>
    %25 = vector.broadcast %24 : vector<1x64xf32> to vector<16x64xf32>
    %26 = arith.addf %23, %25 : vector<16x64xf32>
    %cst_13 = arith.constant 0.000000e+00 : f32
    %27 = vector.broadcast %cst_13 : f32 to vector<16x64xf32>
    %28 = arith.maximumf %26, %27 : vector<16x64xf32>
    %c0_14 = arith.constant 0 : index
    %c0_15 = arith.constant 0 : index
    %29 = vector.load %arg5[%c0_14, %c0_15] : memref<1x64xf32, #tpu.memory_space<vmem>>, vector<1x64xf32>
    %30 = vector.broadcast %29 : vector<1x64xf32> to vector<16x64xf32>
    %31 = arith.mulf %28, %30 : vector<16x64xf32>
    %c0_16 = arith.constant 0 : index
    %c0_17 = arith.constant 0 : index
    %32 = vector.load %arg6[%c0_16, %c0_17] : memref<1x64xf32, #tpu.memory_space<vmem>>, vector<1x64xf32>
    %33 = vector.broadcast %32 : vector<1x64xf32> to vector<16x64xf32>
    %34 = arith.addf %31, %33 : vector<16x64xf32>
    %35 = arith.truncf %34 : vector<16x64xf32> to vector<16x64xbf16>
    %c0_18 = arith.constant 0 : index
    %c0_19 = arith.constant 0 : index
    %36 = vector.load %arg7[%c0_18, %c0_19] : memref<64x512xbf16, #tpu.memory_space<vmem>>, vector<64x512xbf16>
    %cst_20 = arith.constant dense<0.000000e+00> : vector<16x512xf32>
    %37 = tpu.matmul %35, %36, %cst_20 {dimension_numbers = #tpu.dot_dimension_numbers<[1], [0], [0], [1], [0, 0, 1, 1], [], []>} : vector<16x64xbf16>, vector<64x512xbf16>, vector<16x512xf32> -> vector<16x512xf32>
    %c0_21 = arith.constant 0 : index
    %c0_22 = arith.constant 0 : index
    %38 = vector.load %arg9[%c0_21, %c0_22] : memref<1x512xf32, #tpu.memory_space<vmem>>, vector<1x512xf32>
    %39 = vector.broadcast %38 : vector<1x512xf32> to vector<16x512xf32>
    %40 = arith.addf %37, %39 : vector<16x512xf32>
    %c0_23 = arith.constant 0 : index
    %c0_24 = arith.constant 0 : index
    %41 = vector.load %arg8[%c0_23, %c0_24] : memref<128x512xbf16, #tpu.memory_space<vmem>>, vector<128x512xbf16>
    %cst_25 = arith.constant 0.000000e+00 : f32
    %42 = vector.broadcast %cst_25 : f32 to vector<2x128xf32>
    %cst_26 = arith.constant 0.000000e+00 : f32
    %43 = vector.broadcast %cst_26 : f32 to vector<2x128xf32>
    %44 = vector.extract_strided_slice %40 {offsets = [0, 0], sizes = [2, 512], strides = [1, 1]} : vector<16x512xf32> to vector<2x512xf32>
    %45 = arith.truncf %42 : vector<2x128xf32> to vector<2x128xbf16>
    %cst_27 = arith.constant dense<0.000000e+00> : vector<2x512xf32>
    %46 = tpu.matmul %45, %41, %cst_27 {dimension_numbers = #tpu.dot_dimension_numbers<[1], [0], [0], [1], [0, 0, 1, 1], [], []>} : vector<2x128xbf16>, vector<128x512xbf16>, vector<2x512xf32> -> vector<2x512xf32>
    %47 = arith.addf %44, %46 : vector<2x512xf32>
    %48 = vector.extract_strided_slice %47 {offsets = [0, 0], sizes = [2, 128], strides = [1, 1]} : vector<2x512xf32> to vector<2x128xf32>
    %49 = arith.negf %48 : vector<2x128xf32>
    %50 = math.exp %49 : vector<2x128xf32>
    %cst_28 = arith.constant 1.000000e+00 : f32
    %51 = vector.broadcast %cst_28 : f32 to vector<2x128xf32>
    %52 = arith.addf %51, %50 : vector<2x128xf32>
    %53 = arith.divf %51, %52 : vector<2x128xf32>
    %54 = vector.extract_strided_slice %47 {offsets = [0, 128], sizes = [2, 128], strides = [1, 1]} : vector<2x512xf32> to vector<2x128xf32>
    %55 = arith.negf %54 : vector<2x128xf32>
    %56 = math.exp %55 : vector<2x128xf32>
    %cst_29 = arith.constant 1.000000e+00 : f32
    %57 = vector.broadcast %cst_29 : f32 to vector<2x128xf32>
    %58 = arith.addf %57, %56 : vector<2x128xf32>
    %59 = arith.divf %57, %58 : vector<2x128xf32>
    %60 = vector.extract_strided_slice %47 {offsets = [0, 256], sizes = [2, 128], strides = [1, 1]} : vector<2x512xf32> to vector<2x128xf32>
    %61 = math.tanh %60 : vector<2x128xf32>
    %62 = vector.extract_strided_slice %47 {offsets = [0, 384], sizes = [2, 128], strides = [1, 1]} : vector<2x512xf32> to vector<2x128xf32>
    %63 = arith.negf %62 : vector<2x128xf32>
    %64 = math.exp %63 : vector<2x128xf32>
    %cst_30 = arith.constant 1.000000e+00 : f32
    %65 = vector.broadcast %cst_30 : f32 to vector<2x128xf32>
    %66 = arith.addf %65, %64 : vector<2x128xf32>
    %67 = arith.divf %65, %66 : vector<2x128xf32>
    %68 = arith.mulf %59, %43 : vector<2x128xf32>
    %69 = arith.mulf %53, %61 : vector<2x128xf32>
    %70 = arith.addf %68, %69 : vector<2x128xf32>
    %71 = math.tanh %70 : vector<2x128xf32>
    %72 = arith.mulf %67, %71 : vector<2x128xf32>
    %73 = vector.extract_strided_slice %40 {offsets = [2, 0], sizes = [2, 512], strides = [1, 1]} : vector<16x512xf32> to vector<2x512xf32>
    %74 = arith.truncf %72 : vector<2x128xf32> to vector<2x128xbf16>
    %cst_31 = arith.constant dense<0.000000e+00> : vector<2x512xf32>
    %75 = tpu.matmul %74, %41, %cst_31 {dimension_numbers = #tpu.dot_dimension_numbers<[1], [0], [0], [1], [0, 0, 1, 1], [], []>} : vector<2x128xbf16>, vector<128x512xbf16>, vector<2x512xf32> -> vector<2x512xf32>
    %76 = arith.addf %73, %75 : vector<2x512xf32>
    %77 = vector.extract_strided_slice %76 {offsets = [0, 0], sizes = [2, 128], strides = [1, 1]} : vector<2x512xf32> to vector<2x128xf32>
    %78 = arith.negf %77 : vector<2x128xf32>
    %79 = math.exp %78 : vector<2x128xf32>
    %cst_32 = arith.constant 1.000000e+00 : f32
    %80 = vector.broadcast %cst_32 : f32 to vector<2x128xf32>
    %81 = arith.addf %80, %79 : vector<2x128xf32>
    %82 = arith.divf %80, %81 : vector<2x128xf32>
    %83 = vector.extract_strided_slice %76 {offsets = [0, 128], sizes = [2, 128], strides = [1, 1]} : vector<2x512xf32> to vector<2x128xf32>
    %84 = arith.negf %83 : vector<2x128xf32>
    %85 = math.exp %84 : vector<2x128xf32>
    %cst_33 = arith.constant 1.000000e+00 : f32
    %86 = vector.broadcast %cst_33 : f32 to vector<2x128xf32>
    %87 = arith.addf %86, %85 : vector<2x128xf32>
    %88 = arith.divf %86, %87 : vector<2x128xf32>
    %89 = vector.extract_strided_slice %76 {offsets = [0, 256], sizes = [2, 128], strides = [1, 1]} : vector<2x512xf32> to vector<2x128xf32>
    %90 = math.tanh %89 : vector<2x128xf32>
    %91 = vector.extract_strided_slice %76 {offsets = [0, 384], sizes = [2, 128], strides = [1, 1]} : vector<2x512xf32> to vector<2x128xf32>
    %92 = arith.negf %91 : vector<2x128xf32>
    %93 = math.exp %92 : vector<2x128xf32>
    %cst_34 = arith.constant 1.000000e+00 : f32
    %94 = vector.broadcast %cst_34 : f32 to vector<2x128xf32>
    %95 = arith.addf %94, %93 : vector<2x128xf32>
    %96 = arith.divf %94, %95 : vector<2x128xf32>
    %97 = arith.mulf %88, %70 : vector<2x128xf32>
    %98 = arith.mulf %82, %90 : vector<2x128xf32>
    %99 = arith.addf %97, %98 : vector<2x128xf32>
    %100 = math.tanh %99 : vector<2x128xf32>
    %101 = arith.mulf %96, %100 : vector<2x128xf32>
    %102 = vector.extract_strided_slice %40 {offsets = [4, 0], sizes = [2, 512], strides = [1, 1]} : vector<16x512xf32> to vector<2x512xf32>
    %103 = arith.truncf %101 : vector<2x128xf32> to vector<2x128xbf16>
    %cst_35 = arith.constant dense<0.000000e+00> : vector<2x512xf32>
    %104 = tpu.matmul %103, %41, %cst_35 {dimension_numbers = #tpu.dot_dimension_numbers<[1], [0], [0], [1], [0, 0, 1, 1], [], []>} : vector<2x128xbf16>, vector<128x512xbf16>, vector<2x512xf32> -> vector<2x512xf32>
    %105 = arith.addf %102, %104 : vector<2x512xf32>
    %106 = vector.extract_strided_slice %105 {offsets = [0, 0], sizes = [2, 128], strides = [1, 1]} : vector<2x512xf32> to vector<2x128xf32>
    %107 = arith.negf %106 : vector<2x128xf32>
    %108 = math.exp %107 : vector<2x128xf32>
    %cst_36 = arith.constant 1.000000e+00 : f32
    %109 = vector.broadcast %cst_36 : f32 to vector<2x128xf32>
    %110 = arith.addf %109, %108 : vector<2x128xf32>
    %111 = arith.divf %109, %110 : vector<2x128xf32>
    %112 = vector.extract_strided_slice %105 {offsets = [0, 128], sizes = [2, 128], strides = [1, 1]} : vector<2x512xf32> to vector<2x128xf32>
    %113 = arith.negf %112 : vector<2x128xf32>
    %114 = math.exp %113 : vector<2x128xf32>
    %cst_37 = arith.constant 1.000000e+00 : f32
    %115 = vector.broadcast %cst_37 : f32 to vector<2x128xf32>
    %116 = arith.addf %115, %114 : vector<2x128xf32>
    %117 = arith.divf %115, %116 : vector<2x128xf32>
    %118 = vector.extract_strided_slice %105 {offsets = [0, 256], sizes = [2, 128], strides = [1, 1]} : vector<2x512xf32> to vector<2x128xf32>
    %119 = math.tanh %118 : vector<2x128xf32>
    %120 = vector.extract_strided_slice %105 {offsets = [0, 384], sizes = [2, 128], strides = [1, 1]} : vector<2x512xf32> to vector<2x128xf32>
    %121 = arith.negf %120 : vector<2x128xf32>
    %122 = math.exp %121 : vector<2x128xf32>
    %cst_38 = arith.constant 1.000000e+00 : f32
    %123 = vector.broadcast %cst_38 : f32 to vector<2x128xf32>
    %124 = arith.addf %123, %122 : vector<2x128xf32>
    %125 = arith.divf %123, %124 : vector<2x128xf32>
    %126 = arith.mulf %117, %99 : vector<2x128xf32>
    %127 = arith.mulf %111, %119 : vector<2x128xf32>
    %128 = arith.addf %126, %127 : vector<2x128xf32>
    %129 = math.tanh %128 : vector<2x128xf32>
    %130 = arith.mulf %125, %129 : vector<2x128xf32>
    %131 = vector.extract_strided_slice %40 {offsets = [6, 0], sizes = [2, 512], strides = [1, 1]} : vector<16x512xf32> to vector<2x512xf32>
    %132 = arith.truncf %130 : vector<2x128xf32> to vector<2x128xbf16>
    %cst_39 = arith.constant dense<0.000000e+00> : vector<2x512xf32>
    %133 = tpu.matmul %132, %41, %cst_39 {dimension_numbers = #tpu.dot_dimension_numbers<[1], [0], [0], [1], [0, 0, 1, 1], [], []>} : vector<2x128xbf16>, vector<128x512xbf16>, vector<2x512xf32> -> vector<2x512xf32>
    %134 = arith.addf %131, %133 : vector<2x512xf32>
    %135 = vector.extract_strided_slice %134 {offsets = [0, 0], sizes = [2, 128], strides = [1, 1]} : vector<2x512xf32> to vector<2x128xf32>
    %136 = arith.negf %135 : vector<2x128xf32>
    %137 = math.exp %136 : vector<2x128xf32>
    %cst_40 = arith.constant 1.000000e+00 : f32
    %138 = vector.broadcast %cst_40 : f32 to vector<2x128xf32>
    %139 = arith.addf %138, %137 : vector<2x128xf32>
    %140 = arith.divf %138, %139 : vector<2x128xf32>
    %141 = vector.extract_strided_slice %134 {offsets = [0, 128], sizes = [2, 128], strides = [1, 1]} : vector<2x512xf32> to vector<2x128xf32>
    %142 = arith.negf %141 : vector<2x128xf32>
    %143 = math.exp %142 : vector<2x128xf32>
    %cst_41 = arith.constant 1.000000e+00 : f32
    %144 = vector.broadcast %cst_41 : f32 to vector<2x128xf32>
    %145 = arith.addf %144, %143 : vector<2x128xf32>
    %146 = arith.divf %144, %145 : vector<2x128xf32>
    %147 = vector.extract_strided_slice %134 {offsets = [0, 256], sizes = [2, 128], strides = [1, 1]} : vector<2x512xf32> to vector<2x128xf32>
    %148 = math.tanh %147 : vector<2x128xf32>
    %149 = vector.extract_strided_slice %134 {offsets = [0, 384], sizes = [2, 128], strides = [1, 1]} : vector<2x512xf32> to vector<2x128xf32>
    %150 = arith.negf %149 : vector<2x128xf32>
    %151 = math.exp %150 : vector<2x128xf32>
    %cst_42 = arith.constant 1.000000e+00 : f32
    %152 = vector.broadcast %cst_42 : f32 to vector<2x128xf32>
    %153 = arith.addf %152, %151 : vector<2x128xf32>
    %154 = arith.divf %152, %153 : vector<2x128xf32>
    %155 = arith.mulf %146, %128 : vector<2x128xf32>
    %156 = arith.mulf %140, %148 : vector<2x128xf32>
    %157 = arith.addf %155, %156 : vector<2x128xf32>
    %158 = math.tanh %157 : vector<2x128xf32>
    %159 = arith.mulf %154, %158 : vector<2x128xf32>
    %160 = vector.extract_strided_slice %40 {offsets = [8, 0], sizes = [2, 512], strides = [1, 1]} : vector<16x512xf32> to vector<2x512xf32>
    %161 = arith.truncf %159 : vector<2x128xf32> to vector<2x128xbf16>
    %cst_43 = arith.constant dense<0.000000e+00> : vector<2x512xf32>
    %162 = tpu.matmul %161, %41, %cst_43 {dimension_numbers = #tpu.dot_dimension_numbers<[1], [0], [0], [1], [0, 0, 1, 1], [], []>} : vector<2x128xbf16>, vector<128x512xbf16>, vector<2x512xf32> -> vector<2x512xf32>
    %163 = arith.addf %160, %162 : vector<2x512xf32>
    %164 = vector.extract_strided_slice %163 {offsets = [0, 0], sizes = [2, 128], strides = [1, 1]} : vector<2x512xf32> to vector<2x128xf32>
    %165 = arith.negf %164 : vector<2x128xf32>
    %166 = math.exp %165 : vector<2x128xf32>
    %cst_44 = arith.constant 1.000000e+00 : f32
    %167 = vector.broadcast %cst_44 : f32 to vector<2x128xf32>
    %168 = arith.addf %167, %166 : vector<2x128xf32>
    %169 = arith.divf %167, %168 : vector<2x128xf32>
    %170 = vector.extract_strided_slice %163 {offsets = [0, 128], sizes = [2, 128], strides = [1, 1]} : vector<2x512xf32> to vector<2x128xf32>
    %171 = arith.negf %170 : vector<2x128xf32>
    %172 = math.exp %171 : vector<2x128xf32>
    %cst_45 = arith.constant 1.000000e+00 : f32
    %173 = vector.broadcast %cst_45 : f32 to vector<2x128xf32>
    %174 = arith.addf %173, %172 : vector<2x128xf32>
    %175 = arith.divf %173, %174 : vector<2x128xf32>
    %176 = vector.extract_strided_slice %163 {offsets = [0, 256], sizes = [2, 128], strides = [1, 1]} : vector<2x512xf32> to vector<2x128xf32>
    %177 = math.tanh %176 : vector<2x128xf32>
    %178 = vector.extract_strided_slice %163 {offsets = [0, 384], sizes = [2, 128], strides = [1, 1]} : vector<2x512xf32> to vector<2x128xf32>
    %179 = arith.negf %178 : vector<2x128xf32>
    %180 = math.exp %179 : vector<2x128xf32>
    %cst_46 = arith.constant 1.000000e+00 : f32
    %181 = vector.broadcast %cst_46 : f32 to vector<2x128xf32>
    %182 = arith.addf %181, %180 : vector<2x128xf32>
    %183 = arith.divf %181, %182 : vector<2x128xf32>
    %184 = arith.mulf %175, %157 : vector<2x128xf32>
    %185 = arith.mulf %169, %177 : vector<2x128xf32>
    %186 = arith.addf %184, %185 : vector<2x128xf32>
    %187 = math.tanh %186 : vector<2x128xf32>
    %188 = arith.mulf %183, %187 : vector<2x128xf32>
    %189 = vector.extract_strided_slice %40 {offsets = [10, 0], sizes = [2, 512], strides = [1, 1]} : vector<16x512xf32> to vector<2x512xf32>
    %190 = arith.truncf %188 : vector<2x128xf32> to vector<2x128xbf16>
    %cst_47 = arith.constant dense<0.000000e+00> : vector<2x512xf32>
    %191 = tpu.matmul %190, %41, %cst_47 {dimension_numbers = #tpu.dot_dimension_numbers<[1], [0], [0], [1], [0, 0, 1, 1], [], []>} : vector<2x128xbf16>, vector<128x512xbf16>, vector<2x512xf32> -> vector<2x512xf32>
    %192 = arith.addf %189, %191 : vector<2x512xf32>
    %193 = vector.extract_strided_slice %192 {offsets = [0, 0], sizes = [2, 128], strides = [1, 1]} : vector<2x512xf32> to vector<2x128xf32>
    %194 = arith.negf %193 : vector<2x128xf32>
    %195 = math.exp %194 : vector<2x128xf32>
    %cst_48 = arith.constant 1.000000e+00 : f32
    %196 = vector.broadcast %cst_48 : f32 to vector<2x128xf32>
    %197 = arith.addf %196, %195 : vector<2x128xf32>
    %198 = arith.divf %196, %197 : vector<2x128xf32>
    %199 = vector.extract_strided_slice %192 {offsets = [0, 128], sizes = [2, 128], strides = [1, 1]} : vector<2x512xf32> to vector<2x128xf32>
    %200 = arith.negf %199 : vector<2x128xf32>
    %201 = math.exp %200 : vector<2x128xf32>
    %cst_49 = arith.constant 1.000000e+00 : f32
    %202 = vector.broadcast %cst_49 : f32 to vector<2x128xf32>
    %203 = arith.addf %202, %201 : vector<2x128xf32>
    %204 = arith.divf %202, %203 : vector<2x128xf32>
    %205 = vector.extract_strided_slice %192 {offsets = [0, 256], sizes = [2, 128], strides = [1, 1]} : vector<2x512xf32> to vector<2x128xf32>
    %206 = math.tanh %205 : vector<2x128xf32>
    %207 = vector.extract_strided_slice %192 {offsets = [0, 384], sizes = [2, 128], strides = [1, 1]} : vector<2x512xf32> to vector<2x128xf32>
    %208 = arith.negf %207 : vector<2x128xf32>
    %209 = math.exp %208 : vector<2x128xf32>
    %cst_50 = arith.constant 1.000000e+00 : f32
    %210 = vector.broadcast %cst_50 : f32 to vector<2x128xf32>
    %211 = arith.addf %210, %209 : vector<2x128xf32>
    %212 = arith.divf %210, %211 : vector<2x128xf32>
    %213 = arith.mulf %204, %186 : vector<2x128xf32>
    %214 = arith.mulf %198, %206 : vector<2x128xf32>
    %215 = arith.addf %213, %214 : vector<2x128xf32>
    %216 = math.tanh %215 : vector<2x128xf32>
    %217 = arith.mulf %212, %216 : vector<2x128xf32>
    %218 = vector.extract_strided_slice %40 {offsets = [12, 0], sizes = [2, 512], strides = [1, 1]} : vector<16x512xf32> to vector<2x512xf32>
    %219 = arith.truncf %217 : vector<2x128xf32> to vector<2x128xbf16>
    %cst_51 = arith.constant dense<0.000000e+00> : vector<2x512xf32>
    %220 = tpu.matmul %219, %41, %cst_51 {dimension_numbers = #tpu.dot_dimension_numbers<[1], [0], [0], [1], [0, 0, 1, 1], [], []>} : vector<2x128xbf16>, vector<128x512xbf16>, vector<2x512xf32> -> vector<2x512xf32>
    %221 = arith.addf %218, %220 : vector<2x512xf32>
    %222 = vector.extract_strided_slice %221 {offsets = [0, 0], sizes = [2, 128], strides = [1, 1]} : vector<2x512xf32> to vector<2x128xf32>
    %223 = arith.negf %222 : vector<2x128xf32>
    %224 = math.exp %223 : vector<2x128xf32>
    %cst_52 = arith.constant 1.000000e+00 : f32
    %225 = vector.broadcast %cst_52 : f32 to vector<2x128xf32>
    %226 = arith.addf %225, %224 : vector<2x128xf32>
    %227 = arith.divf %225, %226 : vector<2x128xf32>
    %228 = vector.extract_strided_slice %221 {offsets = [0, 128], sizes = [2, 128], strides = [1, 1]} : vector<2x512xf32> to vector<2x128xf32>
    %229 = arith.negf %228 : vector<2x128xf32>
    %230 = math.exp %229 : vector<2x128xf32>
    %cst_53 = arith.constant 1.000000e+00 : f32
    %231 = vector.broadcast %cst_53 : f32 to vector<2x128xf32>
    %232 = arith.addf %231, %230 : vector<2x128xf32>
    %233 = arith.divf %231, %232 : vector<2x128xf32>
    %234 = vector.extract_strided_slice %221 {offsets = [0, 256], sizes = [2, 128], strides = [1, 1]} : vector<2x512xf32> to vector<2x128xf32>
    %235 = math.tanh %234 : vector<2x128xf32>
    %236 = vector.extract_strided_slice %221 {offsets = [0, 384], sizes = [2, 128], strides = [1, 1]} : vector<2x512xf32> to vector<2x128xf32>
    %237 = arith.negf %236 : vector<2x128xf32>
    %238 = math.exp %237 : vector<2x128xf32>
    %cst_54 = arith.constant 1.000000e+00 : f32
    %239 = vector.broadcast %cst_54 : f32 to vector<2x128xf32>
    %240 = arith.addf %239, %238 : vector<2x128xf32>
    %241 = arith.divf %239, %240 : vector<2x128xf32>
    %242 = arith.mulf %233, %215 : vector<2x128xf32>
    %243 = arith.mulf %227, %235 : vector<2x128xf32>
    %244 = arith.addf %242, %243 : vector<2x128xf32>
    %245 = math.tanh %244 : vector<2x128xf32>
    %246 = arith.mulf %241, %245 : vector<2x128xf32>
    %247 = vector.extract_strided_slice %40 {offsets = [14, 0], sizes = [2, 512], strides = [1, 1]} : vector<16x512xf32> to vector<2x512xf32>
    %248 = arith.truncf %246 : vector<2x128xf32> to vector<2x128xbf16>
    %cst_55 = arith.constant dense<0.000000e+00> : vector<2x512xf32>
    %249 = tpu.matmul %248, %41, %cst_55 {dimension_numbers = #tpu.dot_dimension_numbers<[1], [0], [0], [1], [0, 0, 1, 1], [], []>} : vector<2x128xbf16>, vector<128x512xbf16>, vector<2x512xf32> -> vector<2x512xf32>
    %250 = arith.addf %247, %249 : vector<2x512xf32>
    %251 = vector.extract_strided_slice %250 {offsets = [0, 0], sizes = [2, 128], strides = [1, 1]} : vector<2x512xf32> to vector<2x128xf32>
    %252 = arith.negf %251 : vector<2x128xf32>
    %253 = math.exp %252 : vector<2x128xf32>
    %cst_56 = arith.constant 1.000000e+00 : f32
    %254 = vector.broadcast %cst_56 : f32 to vector<2x128xf32>
    %255 = arith.addf %254, %253 : vector<2x128xf32>
    %256 = arith.divf %254, %255 : vector<2x128xf32>
    %257 = vector.extract_strided_slice %250 {offsets = [0, 128], sizes = [2, 128], strides = [1, 1]} : vector<2x512xf32> to vector<2x128xf32>
    %258 = arith.negf %257 : vector<2x128xf32>
    %259 = math.exp %258 : vector<2x128xf32>
    %cst_57 = arith.constant 1.000000e+00 : f32
    %260 = vector.broadcast %cst_57 : f32 to vector<2x128xf32>
    %261 = arith.addf %260, %259 : vector<2x128xf32>
    %262 = arith.divf %260, %261 : vector<2x128xf32>
    %263 = vector.extract_strided_slice %250 {offsets = [0, 256], sizes = [2, 128], strides = [1, 1]} : vector<2x512xf32> to vector<2x128xf32>
    %264 = math.tanh %263 : vector<2x128xf32>
    %265 = vector.extract_strided_slice %250 {offsets = [0, 384], sizes = [2, 128], strides = [1, 1]} : vector<2x512xf32> to vector<2x128xf32>
    %266 = arith.negf %265 : vector<2x128xf32>
    %267 = math.exp %266 : vector<2x128xf32>
    %cst_58 = arith.constant 1.000000e+00 : f32
    %268 = vector.broadcast %cst_58 : f32 to vector<2x128xf32>
    %269 = arith.addf %268, %267 : vector<2x128xf32>
    %270 = arith.divf %268, %269 : vector<2x128xf32>
    %271 = arith.mulf %262, %244 : vector<2x128xf32>
    %272 = arith.mulf %256, %264 : vector<2x128xf32>
    %273 = arith.addf %271, %272 : vector<2x128xf32>
    %274 = math.tanh %273 : vector<2x128xf32>
    %275 = arith.mulf %270, %274 : vector<2x128xf32>
    %276 = tpu.concatenate %72, %101, %130, %159, %188, %217, %246, %275 in 0 : vector<2x128xf32>, vector<2x128xf32>, vector<2x128xf32>, vector<2x128xf32>, vector<2x128xf32>, vector<2x128xf32>, vector<2x128xf32>, vector<2x128xf32> -> vector<16x128xf32>
    %277 = arith.truncf %276 : vector<16x128xf32> to vector<16x128xbf16>
    %c0_59 = arith.constant 0 : index
    %c0_60 = arith.constant 0 : index
    %278 = vector.load %arg10[%c0_59, %c0_60] : memref<128x512xbf16, #tpu.memory_space<vmem>>, vector<128x512xbf16>
    %cst_61 = arith.constant dense<0.000000e+00> : vector<16x512xf32>
    %279 = tpu.matmul %277, %278, %cst_61 {dimension_numbers = #tpu.dot_dimension_numbers<[1], [0], [0], [1], [0, 0, 1, 1], [], []>} : vector<16x128xbf16>, vector<128x512xbf16>, vector<16x512xf32> -> vector<16x512xf32>
    %c0_62 = arith.constant 0 : index
    %c0_63 = arith.constant 0 : index
    %280 = vector.load %arg12[%c0_62, %c0_63] : memref<1x512xf32, #tpu.memory_space<vmem>>, vector<1x512xf32>
    %281 = vector.broadcast %280 : vector<1x512xf32> to vector<16x512xf32>
    %282 = arith.addf %279, %281 : vector<16x512xf32>
    %c0_64 = arith.constant 0 : index
    %c0_65 = arith.constant 0 : index
    %283 = vector.load %arg11[%c0_64, %c0_65] : memref<128x512xbf16, #tpu.memory_space<vmem>>, vector<128x512xbf16>
    %cst_66 = arith.constant 0.000000e+00 : f32
    %284 = vector.broadcast %cst_66 : f32 to vector<2x128xf32>
    %cst_67 = arith.constant 0.000000e+00 : f32
    %285 = vector.broadcast %cst_67 : f32 to vector<2x128xf32>
    %286 = vector.extract_strided_slice %282 {offsets = [0, 0], sizes = [2, 512], strides = [1, 1]} : vector<16x512xf32> to vector<2x512xf32>
    %287 = arith.truncf %284 : vector<2x128xf32> to vector<2x128xbf16>
    %cst_68 = arith.constant dense<0.000000e+00> : vector<2x512xf32>
    %288 = tpu.matmul %287, %283, %cst_68 {dimension_numbers = #tpu.dot_dimension_numbers<[1], [0], [0], [1], [0, 0, 1, 1], [], []>} : vector<2x128xbf16>, vector<128x512xbf16>, vector<2x512xf32> -> vector<2x512xf32>
    %289 = arith.addf %286, %288 : vector<2x512xf32>
    %290 = vector.extract_strided_slice %289 {offsets = [0, 0], sizes = [2, 128], strides = [1, 1]} : vector<2x512xf32> to vector<2x128xf32>
    %291 = arith.negf %290 : vector<2x128xf32>
    %292 = math.exp %291 : vector<2x128xf32>
    %cst_69 = arith.constant 1.000000e+00 : f32
    %293 = vector.broadcast %cst_69 : f32 to vector<2x128xf32>
    %294 = arith.addf %293, %292 : vector<2x128xf32>
    %295 = arith.divf %293, %294 : vector<2x128xf32>
    %296 = vector.extract_strided_slice %289 {offsets = [0, 128], sizes = [2, 128], strides = [1, 1]} : vector<2x512xf32> to vector<2x128xf32>
    %297 = arith.negf %296 : vector<2x128xf32>
    %298 = math.exp %297 : vector<2x128xf32>
    %cst_70 = arith.constant 1.000000e+00 : f32
    %299 = vector.broadcast %cst_70 : f32 to vector<2x128xf32>
    %300 = arith.addf %299, %298 : vector<2x128xf32>
    %301 = arith.divf %299, %300 : vector<2x128xf32>
    %302 = vector.extract_strided_slice %289 {offsets = [0, 256], sizes = [2, 128], strides = [1, 1]} : vector<2x512xf32> to vector<2x128xf32>
    %303 = math.tanh %302 : vector<2x128xf32>
    %304 = vector.extract_strided_slice %289 {offsets = [0, 384], sizes = [2, 128], strides = [1, 1]} : vector<2x512xf32> to vector<2x128xf32>
    %305 = arith.negf %304 : vector<2x128xf32>
    %306 = math.exp %305 : vector<2x128xf32>
    %cst_71 = arith.constant 1.000000e+00 : f32
    %307 = vector.broadcast %cst_71 : f32 to vector<2x128xf32>
    %308 = arith.addf %307, %306 : vector<2x128xf32>
    %309 = arith.divf %307, %308 : vector<2x128xf32>
    %310 = arith.mulf %301, %285 : vector<2x128xf32>
    %311 = arith.mulf %295, %303 : vector<2x128xf32>
    %312 = arith.addf %310, %311 : vector<2x128xf32>
    %313 = math.tanh %312 : vector<2x128xf32>
    %314 = arith.mulf %309, %313 : vector<2x128xf32>
    %315 = vector.extract_strided_slice %282 {offsets = [2, 0], sizes = [2, 512], strides = [1, 1]} : vector<16x512xf32> to vector<2x512xf32>
    %316 = arith.truncf %314 : vector<2x128xf32> to vector<2x128xbf16>
    %cst_72 = arith.constant dense<0.000000e+00> : vector<2x512xf32>
    %317 = tpu.matmul %316, %283, %cst_72 {dimension_numbers = #tpu.dot_dimension_numbers<[1], [0], [0], [1], [0, 0, 1, 1], [], []>} : vector<2x128xbf16>, vector<128x512xbf16>, vector<2x512xf32> -> vector<2x512xf32>
    %318 = arith.addf %315, %317 : vector<2x512xf32>
    %319 = vector.extract_strided_slice %318 {offsets = [0, 0], sizes = [2, 128], strides = [1, 1]} : vector<2x512xf32> to vector<2x128xf32>
    %320 = arith.negf %319 : vector<2x128xf32>
    %321 = math.exp %320 : vector<2x128xf32>
    %cst_73 = arith.constant 1.000000e+00 : f32
    %322 = vector.broadcast %cst_73 : f32 to vector<2x128xf32>
    %323 = arith.addf %322, %321 : vector<2x128xf32>
    %324 = arith.divf %322, %323 : vector<2x128xf32>
    %325 = vector.extract_strided_slice %318 {offsets = [0, 128], sizes = [2, 128], strides = [1, 1]} : vector<2x512xf32> to vector<2x128xf32>
    %326 = arith.negf %325 : vector<2x128xf32>
    %327 = math.exp %326 : vector<2x128xf32>
    %cst_74 = arith.constant 1.000000e+00 : f32
    %328 = vector.broadcast %cst_74 : f32 to vector<2x128xf32>
    %329 = arith.addf %328, %327 : vector<2x128xf32>
    %330 = arith.divf %328, %329 : vector<2x128xf32>
    %331 = vector.extract_strided_slice %318 {offsets = [0, 256], sizes = [2, 128], strides = [1, 1]} : vector<2x512xf32> to vector<2x128xf32>
    %332 = math.tanh %331 : vector<2x128xf32>
    %333 = vector.extract_strided_slice %318 {offsets = [0, 384], sizes = [2, 128], strides = [1, 1]} : vector<2x512xf32> to vector<2x128xf32>
    %334 = arith.negf %333 : vector<2x128xf32>
    %335 = math.exp %334 : vector<2x128xf32>
    %cst_75 = arith.constant 1.000000e+00 : f32
    %336 = vector.broadcast %cst_75 : f32 to vector<2x128xf32>
    %337 = arith.addf %336, %335 : vector<2x128xf32>
    %338 = arith.divf %336, %337 : vector<2x128xf32>
    %339 = arith.mulf %330, %312 : vector<2x128xf32>
    %340 = arith.mulf %324, %332 : vector<2x128xf32>
    %341 = arith.addf %339, %340 : vector<2x128xf32>
    %342 = math.tanh %341 : vector<2x128xf32>
    %343 = arith.mulf %338, %342 : vector<2x128xf32>
    %344 = vector.extract_strided_slice %282 {offsets = [4, 0], sizes = [2, 512], strides = [1, 1]} : vector<16x512xf32> to vector<2x512xf32>
    %345 = arith.truncf %343 : vector<2x128xf32> to vector<2x128xbf16>
    %cst_76 = arith.constant dense<0.000000e+00> : vector<2x512xf32>
    %346 = tpu.matmul %345, %283, %cst_76 {dimension_numbers = #tpu.dot_dimension_numbers<[1], [0], [0], [1], [0, 0, 1, 1], [], []>} : vector<2x128xbf16>, vector<128x512xbf16>, vector<2x512xf32> -> vector<2x512xf32>
    %347 = arith.addf %344, %346 : vector<2x512xf32>
    %348 = vector.extract_strided_slice %347 {offsets = [0, 0], sizes = [2, 128], strides = [1, 1]} : vector<2x512xf32> to vector<2x128xf32>
    %349 = arith.negf %348 : vector<2x128xf32>
    %350 = math.exp %349 : vector<2x128xf32>
    %cst_77 = arith.constant 1.000000e+00 : f32
    %351 = vector.broadcast %cst_77 : f32 to vector<2x128xf32>
    %352 = arith.addf %351, %350 : vector<2x128xf32>
    %353 = arith.divf %351, %352 : vector<2x128xf32>
    %354 = vector.extract_strided_slice %347 {offsets = [0, 128], sizes = [2, 128], strides = [1, 1]} : vector<2x512xf32> to vector<2x128xf32>
    %355 = arith.negf %354 : vector<2x128xf32>
    %356 = math.exp %355 : vector<2x128xf32>
    %cst_78 = arith.constant 1.000000e+00 : f32
    %357 = vector.broadcast %cst_78 : f32 to vector<2x128xf32>
    %358 = arith.addf %357, %356 : vector<2x128xf32>
    %359 = arith.divf %357, %358 : vector<2x128xf32>
    %360 = vector.extract_strided_slice %347 {offsets = [0, 256], sizes = [2, 128], strides = [1, 1]} : vector<2x512xf32> to vector<2x128xf32>
    %361 = math.tanh %360 : vector<2x128xf32>
    %362 = vector.extract_strided_slice %347 {offsets = [0, 384], sizes = [2, 128], strides = [1, 1]} : vector<2x512xf32> to vector<2x128xf32>
    %363 = arith.negf %362 : vector<2x128xf32>
    %364 = math.exp %363 : vector<2x128xf32>
    %cst_79 = arith.constant 1.000000e+00 : f32
    %365 = vector.broadcast %cst_79 : f32 to vector<2x128xf32>
    %366 = arith.addf %365, %364 : vector<2x128xf32>
    %367 = arith.divf %365, %366 : vector<2x128xf32>
    %368 = arith.mulf %359, %341 : vector<2x128xf32>
    %369 = arith.mulf %353, %361 : vector<2x128xf32>
    %370 = arith.addf %368, %369 : vector<2x128xf32>
    %371 = math.tanh %370 : vector<2x128xf32>
    %372 = arith.mulf %367, %371 : vector<2x128xf32>
    %373 = vector.extract_strided_slice %282 {offsets = [6, 0], sizes = [2, 512], strides = [1, 1]} : vector<16x512xf32> to vector<2x512xf32>
    %374 = arith.truncf %372 : vector<2x128xf32> to vector<2x128xbf16>
    %cst_80 = arith.constant dense<0.000000e+00> : vector<2x512xf32>
    %375 = tpu.matmul %374, %283, %cst_80 {dimension_numbers = #tpu.dot_dimension_numbers<[1], [0], [0], [1], [0, 0, 1, 1], [], []>} : vector<2x128xbf16>, vector<128x512xbf16>, vector<2x512xf32> -> vector<2x512xf32>
    %376 = arith.addf %373, %375 : vector<2x512xf32>
    %377 = vector.extract_strided_slice %376 {offsets = [0, 0], sizes = [2, 128], strides = [1, 1]} : vector<2x512xf32> to vector<2x128xf32>
    %378 = arith.negf %377 : vector<2x128xf32>
    %379 = math.exp %378 : vector<2x128xf32>
    %cst_81 = arith.constant 1.000000e+00 : f32
    %380 = vector.broadcast %cst_81 : f32 to vector<2x128xf32>
    %381 = arith.addf %380, %379 : vector<2x128xf32>
    %382 = arith.divf %380, %381 : vector<2x128xf32>
    %383 = vector.extract_strided_slice %376 {offsets = [0, 128], sizes = [2, 128], strides = [1, 1]} : vector<2x512xf32> to vector<2x128xf32>
    %384 = arith.negf %383 : vector<2x128xf32>
    %385 = math.exp %384 : vector<2x128xf32>
    %cst_82 = arith.constant 1.000000e+00 : f32
    %386 = vector.broadcast %cst_82 : f32 to vector<2x128xf32>
    %387 = arith.addf %386, %385 : vector<2x128xf32>
    %388 = arith.divf %386, %387 : vector<2x128xf32>
    %389 = vector.extract_strided_slice %376 {offsets = [0, 256], sizes = [2, 128], strides = [1, 1]} : vector<2x512xf32> to vector<2x128xf32>
    %390 = math.tanh %389 : vector<2x128xf32>
    %391 = vector.extract_strided_slice %376 {offsets = [0, 384], sizes = [2, 128], strides = [1, 1]} : vector<2x512xf32> to vector<2x128xf32>
    %392 = arith.negf %391 : vector<2x128xf32>
    %393 = math.exp %392 : vector<2x128xf32>
    %cst_83 = arith.constant 1.000000e+00 : f32
    %394 = vector.broadcast %cst_83 : f32 to vector<2x128xf32>
    %395 = arith.addf %394, %393 : vector<2x128xf32>
    %396 = arith.divf %394, %395 : vector<2x128xf32>
    %397 = arith.mulf %388, %370 : vector<2x128xf32>
    %398 = arith.mulf %382, %390 : vector<2x128xf32>
    %399 = arith.addf %397, %398 : vector<2x128xf32>
    %400 = math.tanh %399 : vector<2x128xf32>
    %401 = arith.mulf %396, %400 : vector<2x128xf32>
    %402 = vector.extract_strided_slice %282 {offsets = [8, 0], sizes = [2, 512], strides = [1, 1]} : vector<16x512xf32> to vector<2x512xf32>
    %403 = arith.truncf %401 : vector<2x128xf32> to vector<2x128xbf16>
    %cst_84 = arith.constant dense<0.000000e+00> : vector<2x512xf32>
    %404 = tpu.matmul %403, %283, %cst_84 {dimension_numbers = #tpu.dot_dimension_numbers<[1], [0], [0], [1], [0, 0, 1, 1], [], []>} : vector<2x128xbf16>, vector<128x512xbf16>, vector<2x512xf32> -> vector<2x512xf32>
    %405 = arith.addf %402, %404 : vector<2x512xf32>
    %406 = vector.extract_strided_slice %405 {offsets = [0, 0], sizes = [2, 128], strides = [1, 1]} : vector<2x512xf32> to vector<2x128xf32>
    %407 = arith.negf %406 : vector<2x128xf32>
    %408 = math.exp %407 : vector<2x128xf32>
    %cst_85 = arith.constant 1.000000e+00 : f32
    %409 = vector.broadcast %cst_85 : f32 to vector<2x128xf32>
    %410 = arith.addf %409, %408 : vector<2x128xf32>
    %411 = arith.divf %409, %410 : vector<2x128xf32>
    %412 = vector.extract_strided_slice %405 {offsets = [0, 128], sizes = [2, 128], strides = [1, 1]} : vector<2x512xf32> to vector<2x128xf32>
    %413 = arith.negf %412 : vector<2x128xf32>
    %414 = math.exp %413 : vector<2x128xf32>
    %cst_86 = arith.constant 1.000000e+00 : f32
    %415 = vector.broadcast %cst_86 : f32 to vector<2x128xf32>
    %416 = arith.addf %415, %414 : vector<2x128xf32>
    %417 = arith.divf %415, %416 : vector<2x128xf32>
    %418 = vector.extract_strided_slice %405 {offsets = [0, 256], sizes = [2, 128], strides = [1, 1]} : vector<2x512xf32> to vector<2x128xf32>
    %419 = math.tanh %418 : vector<2x128xf32>
    %420 = vector.extract_strided_slice %405 {offsets = [0, 384], sizes = [2, 128], strides = [1, 1]} : vector<2x512xf32> to vector<2x128xf32>
    %421 = arith.negf %420 : vector<2x128xf32>
    %422 = math.exp %421 : vector<2x128xf32>
    %cst_87 = arith.constant 1.000000e+00 : f32
    %423 = vector.broadcast %cst_87 : f32 to vector<2x128xf32>
    %424 = arith.addf %423, %422 : vector<2x128xf32>
    %425 = arith.divf %423, %424 : vector<2x128xf32>
    %426 = arith.mulf %417, %399 : vector<2x128xf32>
    %427 = arith.mulf %411, %419 : vector<2x128xf32>
    %428 = arith.addf %426, %427 : vector<2x128xf32>
    %429 = math.tanh %428 : vector<2x128xf32>
    %430 = arith.mulf %425, %429 : vector<2x128xf32>
    %431 = vector.extract_strided_slice %282 {offsets = [10, 0], sizes = [2, 512], strides = [1, 1]} : vector<16x512xf32> to vector<2x512xf32>
    %432 = arith.truncf %430 : vector<2x128xf32> to vector<2x128xbf16>
    %cst_88 = arith.constant dense<0.000000e+00> : vector<2x512xf32>
    %433 = tpu.matmul %432, %283, %cst_88 {dimension_numbers = #tpu.dot_dimension_numbers<[1], [0], [0], [1], [0, 0, 1, 1], [], []>} : vector<2x128xbf16>, vector<128x512xbf16>, vector<2x512xf32> -> vector<2x512xf32>
    %434 = arith.addf %431, %433 : vector<2x512xf32>
    %435 = vector.extract_strided_slice %434 {offsets = [0, 0], sizes = [2, 128], strides = [1, 1]} : vector<2x512xf32> to vector<2x128xf32>
    %436 = arith.negf %435 : vector<2x128xf32>
    %437 = math.exp %436 : vector<2x128xf32>
    %cst_89 = arith.constant 1.000000e+00 : f32
    %438 = vector.broadcast %cst_89 : f32 to vector<2x128xf32>
    %439 = arith.addf %438, %437 : vector<2x128xf32>
    %440 = arith.divf %438, %439 : vector<2x128xf32>
    %441 = vector.extract_strided_slice %434 {offsets = [0, 128], sizes = [2, 128], strides = [1, 1]} : vector<2x512xf32> to vector<2x128xf32>
    %442 = arith.negf %441 : vector<2x128xf32>
    %443 = math.exp %442 : vector<2x128xf32>
    %cst_90 = arith.constant 1.000000e+00 : f32
    %444 = vector.broadcast %cst_90 : f32 to vector<2x128xf32>
    %445 = arith.addf %444, %443 : vector<2x128xf32>
    %446 = arith.divf %444, %445 : vector<2x128xf32>
    %447 = vector.extract_strided_slice %434 {offsets = [0, 256], sizes = [2, 128], strides = [1, 1]} : vector<2x512xf32> to vector<2x128xf32>
    %448 = math.tanh %447 : vector<2x128xf32>
    %449 = vector.extract_strided_slice %434 {offsets = [0, 384], sizes = [2, 128], strides = [1, 1]} : vector<2x512xf32> to vector<2x128xf32>
    %450 = arith.negf %449 : vector<2x128xf32>
    %451 = math.exp %450 : vector<2x128xf32>
    %cst_91 = arith.constant 1.000000e+00 : f32
    %452 = vector.broadcast %cst_91 : f32 to vector<2x128xf32>
    %453 = arith.addf %452, %451 : vector<2x128xf32>
    %454 = arith.divf %452, %453 : vector<2x128xf32>
    %455 = arith.mulf %446, %428 : vector<2x128xf32>
    %456 = arith.mulf %440, %448 : vector<2x128xf32>
    %457 = arith.addf %455, %456 : vector<2x128xf32>
    %458 = math.tanh %457 : vector<2x128xf32>
    %459 = arith.mulf %454, %458 : vector<2x128xf32>
    %460 = vector.extract_strided_slice %282 {offsets = [12, 0], sizes = [2, 512], strides = [1, 1]} : vector<16x512xf32> to vector<2x512xf32>
    %461 = arith.truncf %459 : vector<2x128xf32> to vector<2x128xbf16>
    %cst_92 = arith.constant dense<0.000000e+00> : vector<2x512xf32>
    %462 = tpu.matmul %461, %283, %cst_92 {dimension_numbers = #tpu.dot_dimension_numbers<[1], [0], [0], [1], [0, 0, 1, 1], [], []>} : vector<2x128xbf16>, vector<128x512xbf16>, vector<2x512xf32> -> vector<2x512xf32>
    %463 = arith.addf %460, %462 : vector<2x512xf32>
    %464 = vector.extract_strided_slice %463 {offsets = [0, 0], sizes = [2, 128], strides = [1, 1]} : vector<2x512xf32> to vector<2x128xf32>
    %465 = arith.negf %464 : vector<2x128xf32>
    %466 = math.exp %465 : vector<2x128xf32>
    %cst_93 = arith.constant 1.000000e+00 : f32
    %467 = vector.broadcast %cst_93 : f32 to vector<2x128xf32>
    %468 = arith.addf %467, %466 : vector<2x128xf32>
    %469 = arith.divf %467, %468 : vector<2x128xf32>
    %470 = vector.extract_strided_slice %463 {offsets = [0, 128], sizes = [2, 128], strides = [1, 1]} : vector<2x512xf32> to vector<2x128xf32>
    %471 = arith.negf %470 : vector<2x128xf32>
    %472 = math.exp %471 : vector<2x128xf32>
    %cst_94 = arith.constant 1.000000e+00 : f32
    %473 = vector.broadcast %cst_94 : f32 to vector<2x128xf32>
    %474 = arith.addf %473, %472 : vector<2x128xf32>
    %475 = arith.divf %473, %474 : vector<2x128xf32>
    %476 = vector.extract_strided_slice %463 {offsets = [0, 256], sizes = [2, 128], strides = [1, 1]} : vector<2x512xf32> to vector<2x128xf32>
    %477 = math.tanh %476 : vector<2x128xf32>
    %478 = vector.extract_strided_slice %463 {offsets = [0, 384], sizes = [2, 128], strides = [1, 1]} : vector<2x512xf32> to vector<2x128xf32>
    %479 = arith.negf %478 : vector<2x128xf32>
    %480 = math.exp %479 : vector<2x128xf32>
    %cst_95 = arith.constant 1.000000e+00 : f32
    %481 = vector.broadcast %cst_95 : f32 to vector<2x128xf32>
    %482 = arith.addf %481, %480 : vector<2x128xf32>
    %483 = arith.divf %481, %482 : vector<2x128xf32>
    %484 = arith.mulf %475, %457 : vector<2x128xf32>
    %485 = arith.mulf %469, %477 : vector<2x128xf32>
    %486 = arith.addf %484, %485 : vector<2x128xf32>
    %487 = math.tanh %486 : vector<2x128xf32>
    %488 = arith.mulf %483, %487 : vector<2x128xf32>
    %489 = vector.extract_strided_slice %282 {offsets = [14, 0], sizes = [2, 512], strides = [1, 1]} : vector<16x512xf32> to vector<2x512xf32>
    %490 = arith.truncf %488 : vector<2x128xf32> to vector<2x128xbf16>
    %cst_96 = arith.constant dense<0.000000e+00> : vector<2x512xf32>
    %491 = tpu.matmul %490, %283, %cst_96 {dimension_numbers = #tpu.dot_dimension_numbers<[1], [0], [0], [1], [0, 0, 1, 1], [], []>} : vector<2x128xbf16>, vector<128x512xbf16>, vector<2x512xf32> -> vector<2x512xf32>
    %492 = arith.addf %489, %491 : vector<2x512xf32>
    %493 = vector.extract_strided_slice %492 {offsets = [0, 0], sizes = [2, 128], strides = [1, 1]} : vector<2x512xf32> to vector<2x128xf32>
    %494 = arith.negf %493 : vector<2x128xf32>
    %495 = math.exp %494 : vector<2x128xf32>
    %cst_97 = arith.constant 1.000000e+00 : f32
    %496 = vector.broadcast %cst_97 : f32 to vector<2x128xf32>
    %497 = arith.addf %496, %495 : vector<2x128xf32>
    %498 = arith.divf %496, %497 : vector<2x128xf32>
    %499 = vector.extract_strided_slice %492 {offsets = [0, 128], sizes = [2, 128], strides = [1, 1]} : vector<2x512xf32> to vector<2x128xf32>
    %500 = arith.negf %499 : vector<2x128xf32>
    %501 = math.exp %500 : vector<2x128xf32>
    %cst_98 = arith.constant 1.000000e+00 : f32
    %502 = vector.broadcast %cst_98 : f32 to vector<2x128xf32>
    %503 = arith.addf %502, %501 : vector<2x128xf32>
    %504 = arith.divf %502, %503 : vector<2x128xf32>
    %505 = vector.extract_strided_slice %492 {offsets = [0, 256], sizes = [2, 128], strides = [1, 1]} : vector<2x512xf32> to vector<2x128xf32>
    %506 = math.tanh %505 : vector<2x128xf32>
    %507 = vector.extract_strided_slice %492 {offsets = [0, 384], sizes = [2, 128], strides = [1, 1]} : vector<2x512xf32> to vector<2x128xf32>
    %508 = arith.negf %507 : vector<2x128xf32>
    %509 = math.exp %508 : vector<2x128xf32>
    %cst_99 = arith.constant 1.000000e+00 : f32
    %510 = vector.broadcast %cst_99 : f32 to vector<2x128xf32>
    %511 = arith.addf %510, %509 : vector<2x128xf32>
    %512 = arith.divf %510, %511 : vector<2x128xf32>
    %513 = arith.mulf %504, %486 : vector<2x128xf32>
    %514 = arith.mulf %498, %506 : vector<2x128xf32>
    %515 = arith.addf %513, %514 : vector<2x128xf32>
    %516 = math.tanh %515 : vector<2x128xf32>
    %517 = arith.mulf %512, %516 : vector<2x128xf32>
    %518 = tpu.concatenate %314, %343, %372, %401, %430, %459, %488, %517 in 0 : vector<2x128xf32>, vector<2x128xf32>, vector<2x128xf32>, vector<2x128xf32>, vector<2x128xf32>, vector<2x128xf32>, vector<2x128xf32>, vector<2x128xf32> -> vector<16x128xf32>
    %cst_100 = arith.constant 0.000000e+00 : f32
    %519 = vector.broadcast %cst_100 : f32 to vector<16x1xf32>
    %520 = vector.extract_strided_slice %518 {offsets = [0, 0], sizes = [16, 127], strides = [1, 1]} : vector<16x128xf32> to vector<16x127xf32>
    %521 = tpu.concatenate %519, %520 in 1 : vector<16x1xf32>, vector<16x127xf32> -> vector<16x128xf32>
    %522 = vector.extract_strided_slice %518 {offsets = [0, 1], sizes = [16, 127], strides = [1, 1]} : vector<16x128xf32> to vector<16x127xf32>
    %523 = tpu.concatenate %522, %519 in 1 : vector<16x127xf32>, vector<16x1xf32> -> vector<16x128xf32>
    %524 = tpu.concatenate %521, %518, %523 in 0 : vector<16x128xf32>, vector<16x128xf32>, vector<16x128xf32> -> vector<48x128xf32>
    %525 = arith.truncf %524 : vector<48x128xf32> to vector<48x128xbf16>
    %c0_101 = arith.constant 0 : index
    %c0_102 = arith.constant 0 : index
    %526 = vector.load %arg13[%c0_101, %c0_102] : memref<32x48xbf16, #tpu.memory_space<vmem>>, vector<32x48xbf16>
    %cst_103 = arith.constant dense<0.000000e+00> : vector<32x128xf32>
    %527 = tpu.matmul %526, %525, %cst_103 {dimension_numbers = #tpu.dot_dimension_numbers<[1], [0], [0], [1], [0, 0, 1, 1], [], []>} : vector<32x48xbf16>, vector<48x128xbf16>, vector<32x128xf32> -> vector<32x128xf32>
    %c0_104 = arith.constant 0 : index
    %c0_105 = arith.constant 0 : index
    %528 = vector.load %arg14[%c0_104, %c0_105] : memref<32x1xf32, #tpu.memory_space<vmem>>, vector<32x1xf32>
    %529 = vector.broadcast %528 : vector<32x1xf32> to vector<32x128xf32>
    %530 = arith.addf %527, %529 : vector<32x128xf32>
    %cst_106 = arith.constant 0.000000e+00 : f32
    %531 = vector.broadcast %cst_106 : f32 to vector<32x128xf32>
    %532 = arith.maximumf %530, %531 : vector<32x128xf32>
    %c0_107 = arith.constant 0 : index
    %c0_108 = arith.constant 0 : index
    %533 = vector.load %arg15[%c0_107, %c0_108] : memref<32x1xf32, #tpu.memory_space<vmem>>, vector<32x1xf32>
    %534 = vector.broadcast %533 : vector<32x1xf32> to vector<32x128xf32>
    %535 = arith.mulf %532, %534 : vector<32x128xf32>
    %c0_109 = arith.constant 0 : index
    %c0_110 = arith.constant 0 : index
    %536 = vector.load %arg16[%c0_109, %c0_110] : memref<32x1xf32, #tpu.memory_space<vmem>>, vector<32x1xf32>
    %537 = vector.broadcast %536 : vector<32x1xf32> to vector<32x128xf32>
    %538 = arith.addf %535, %537 : vector<32x128xf32>
    %cst_111 = arith.constant 0.000000e+00 : f32
    %539 = vector.broadcast %cst_111 : f32 to vector<32x128xf32>
    %540 = arith.maximumf %538, %539 : vector<32x128xf32>
    %541 = arith.truncf %540 : vector<32x128xf32> to vector<32x128xbf16>
    %cst_112 = arith.constant 0.000000e+00 : f32
    %542 = vector.broadcast %cst_112 : f32 to vector<2x256xf32>
    %543 = vector.extract_strided_slice %541 {offsets = [0, 0], sizes = [2, 128], strides = [1, 1]} : vector<32x128xbf16> to vector<2x128xbf16>
    %c0_113 = arith.constant 0 : index
    %c0_114 = arith.constant 0 : index
    %c0_115 = arith.constant 0 : index
    %544 = vector.load %arg17[%c0_113, %c0_114, %c0_115] : memref<16x128x256xbf16, #tpu.memory_space<vmem>>, vector<1x128x256xbf16>
    %545 = vector.shape_cast %544 : vector<1x128x256xbf16> to vector<128x256xbf16>
    %cst_116 = arith.constant dense<0.000000e+00> : vector<2x256xf32>
    %546 = tpu.matmul %543, %545, %cst_116 {dimension_numbers = #tpu.dot_dimension_numbers<[1], [0], [0], [1], [0, 0, 1, 1], [], []>} : vector<2x128xbf16>, vector<128x256xbf16>, vector<2x256xf32> -> vector<2x256xf32>
    %547 = arith.addf %542, %546 : vector<2x256xf32>
    %548 = vector.extract_strided_slice %541 {offsets = [2, 0], sizes = [2, 128], strides = [1, 1]} : vector<32x128xbf16> to vector<2x128xbf16>
    %c1 = arith.constant 1 : index
    %c0_117 = arith.constant 0 : index
    %c0_118 = arith.constant 0 : index
    %549 = vector.load %arg17[%c1, %c0_117, %c0_118] : memref<16x128x256xbf16, #tpu.memory_space<vmem>>, vector<1x128x256xbf16>
    %550 = vector.shape_cast %549 : vector<1x128x256xbf16> to vector<128x256xbf16>
    %cst_119 = arith.constant dense<0.000000e+00> : vector<2x256xf32>
    %551 = tpu.matmul %548, %550, %cst_119 {dimension_numbers = #tpu.dot_dimension_numbers<[1], [0], [0], [1], [0, 0, 1, 1], [], []>} : vector<2x128xbf16>, vector<128x256xbf16>, vector<2x256xf32> -> vector<2x256xf32>
    %552 = arith.addf %547, %551 : vector<2x256xf32>
    %553 = vector.extract_strided_slice %541 {offsets = [4, 0], sizes = [2, 128], strides = [1, 1]} : vector<32x128xbf16> to vector<2x128xbf16>
    %c2 = arith.constant 2 : index
    %c0_120 = arith.constant 0 : index
    %c0_121 = arith.constant 0 : index
    %554 = vector.load %arg17[%c2, %c0_120, %c0_121] : memref<16x128x256xbf16, #tpu.memory_space<vmem>>, vector<1x128x256xbf16>
    %555 = vector.shape_cast %554 : vector<1x128x256xbf16> to vector<128x256xbf16>
    %cst_122 = arith.constant dense<0.000000e+00> : vector<2x256xf32>
    %556 = tpu.matmul %553, %555, %cst_122 {dimension_numbers = #tpu.dot_dimension_numbers<[1], [0], [0], [1], [0, 0, 1, 1], [], []>} : vector<2x128xbf16>, vector<128x256xbf16>, vector<2x256xf32> -> vector<2x256xf32>
    %557 = arith.addf %552, %556 : vector<2x256xf32>
    %558 = vector.extract_strided_slice %541 {offsets = [6, 0], sizes = [2, 128], strides = [1, 1]} : vector<32x128xbf16> to vector<2x128xbf16>
    %c3 = arith.constant 3 : index
    %c0_123 = arith.constant 0 : index
    %c0_124 = arith.constant 0 : index
    %559 = vector.load %arg17[%c3, %c0_123, %c0_124] : memref<16x128x256xbf16, #tpu.memory_space<vmem>>, vector<1x128x256xbf16>
    %560 = vector.shape_cast %559 : vector<1x128x256xbf16> to vector<128x256xbf16>
    %cst_125 = arith.constant dense<0.000000e+00> : vector<2x256xf32>
    %561 = tpu.matmul %558, %560, %cst_125 {dimension_numbers = #tpu.dot_dimension_numbers<[1], [0], [0], [1], [0, 0, 1, 1], [], []>} : vector<2x128xbf16>, vector<128x256xbf16>, vector<2x256xf32> -> vector<2x256xf32>
    %562 = arith.addf %557, %561 : vector<2x256xf32>
    %563 = vector.extract_strided_slice %541 {offsets = [8, 0], sizes = [2, 128], strides = [1, 1]} : vector<32x128xbf16> to vector<2x128xbf16>
    %c4 = arith.constant 4 : index
    %c0_126 = arith.constant 0 : index
    %c0_127 = arith.constant 0 : index
    %564 = vector.load %arg17[%c4, %c0_126, %c0_127] : memref<16x128x256xbf16, #tpu.memory_space<vmem>>, vector<1x128x256xbf16>
    %565 = vector.shape_cast %564 : vector<1x128x256xbf16> to vector<128x256xbf16>
    %cst_128 = arith.constant dense<0.000000e+00> : vector<2x256xf32>
    %566 = tpu.matmul %563, %565, %cst_128 {dimension_numbers = #tpu.dot_dimension_numbers<[1], [0], [0], [1], [0, 0, 1, 1], [], []>} : vector<2x128xbf16>, vector<128x256xbf16>, vector<2x256xf32> -> vector<2x256xf32>
    %567 = arith.addf %562, %566 : vector<2x256xf32>
    %568 = vector.extract_strided_slice %541 {offsets = [10, 0], sizes = [2, 128], strides = [1, 1]} : vector<32x128xbf16> to vector<2x128xbf16>
    %c5 = arith.constant 5 : index
    %c0_129 = arith.constant 0 : index
    %c0_130 = arith.constant 0 : index
    %569 = vector.load %arg17[%c5, %c0_129, %c0_130] : memref<16x128x256xbf16, #tpu.memory_space<vmem>>, vector<1x128x256xbf16>
    %570 = vector.shape_cast %569 : vector<1x128x256xbf16> to vector<128x256xbf16>
    %cst_131 = arith.constant dense<0.000000e+00> : vector<2x256xf32>
    %571 = tpu.matmul %568, %570, %cst_131 {dimension_numbers = #tpu.dot_dimension_numbers<[1], [0], [0], [1], [0, 0, 1, 1], [], []>} : vector<2x128xbf16>, vector<128x256xbf16>, vector<2x256xf32> -> vector<2x256xf32>
    %572 = arith.addf %567, %571 : vector<2x256xf32>
    %573 = vector.extract_strided_slice %541 {offsets = [12, 0], sizes = [2, 128], strides = [1, 1]} : vector<32x128xbf16> to vector<2x128xbf16>
    %c6 = arith.constant 6 : index
    %c0_132 = arith.constant 0 : index
    %c0_133 = arith.constant 0 : index
    %574 = vector.load %arg17[%c6, %c0_132, %c0_133] : memref<16x128x256xbf16, #tpu.memory_space<vmem>>, vector<1x128x256xbf16>
    %575 = vector.shape_cast %574 : vector<1x128x256xbf16> to vector<128x256xbf16>
    %cst_134 = arith.constant dense<0.000000e+00> : vector<2x256xf32>
    %576 = tpu.matmul %573, %575, %cst_134 {dimension_numbers = #tpu.dot_dimension_numbers<[1], [0], [0], [1], [0, 0, 1, 1], [], []>} : vector<2x128xbf16>, vector<128x256xbf16>, vector<2x256xf32> -> vector<2x256xf32>
    %577 = arith.addf %572, %576 : vector<2x256xf32>
    %578 = vector.extract_strided_slice %541 {offsets = [14, 0], sizes = [2, 128], strides = [1, 1]} : vector<32x128xbf16> to vector<2x128xbf16>
    %c7 = arith.constant 7 : index
    %c0_135 = arith.constant 0 : index
    %c0_136 = arith.constant 0 : index
    %579 = vector.load %arg17[%c7, %c0_135, %c0_136] : memref<16x128x256xbf16, #tpu.memory_space<vmem>>, vector<1x128x256xbf16>
    %580 = vector.shape_cast %579 : vector<1x128x256xbf16> to vector<128x256xbf16>
    %cst_137 = arith.constant dense<0.000000e+00> : vector<2x256xf32>
    %581 = tpu.matmul %578, %580, %cst_137 {dimension_numbers = #tpu.dot_dimension_numbers<[1], [0], [0], [1], [0, 0, 1, 1], [], []>} : vector<2x128xbf16>, vector<128x256xbf16>, vector<2x256xf32> -> vector<2x256xf32>
    %582 = arith.addf %577, %581 : vector<2x256xf32>
    %583 = vector.extract_strided_slice %541 {offsets = [16, 0], sizes = [2, 128], strides = [1, 1]} : vector<32x128xbf16> to vector<2x128xbf16>
    %c8 = arith.constant 8 : index
    %c0_138 = arith.constant 0 : index
    %c0_139 = arith.constant 0 : index
    %584 = vector.load %arg17[%c8, %c0_138, %c0_139] : memref<16x128x256xbf16, #tpu.memory_space<vmem>>, vector<1x128x256xbf16>
    %585 = vector.shape_cast %584 : vector<1x128x256xbf16> to vector<128x256xbf16>
    %cst_140 = arith.constant dense<0.000000e+00> : vector<2x256xf32>
    %586 = tpu.matmul %583, %585, %cst_140 {dimension_numbers = #tpu.dot_dimension_numbers<[1], [0], [0], [1], [0, 0, 1, 1], [], []>} : vector<2x128xbf16>, vector<128x256xbf16>, vector<2x256xf32> -> vector<2x256xf32>
    %587 = arith.addf %582, %586 : vector<2x256xf32>
    %588 = vector.extract_strided_slice %541 {offsets = [18, 0], sizes = [2, 128], strides = [1, 1]} : vector<32x128xbf16> to vector<2x128xbf16>
    %c9 = arith.constant 9 : index
    %c0_141 = arith.constant 0 : index
    %c0_142 = arith.constant 0 : index
    %589 = vector.load %arg17[%c9, %c0_141, %c0_142] : memref<16x128x256xbf16, #tpu.memory_space<vmem>>, vector<1x128x256xbf16>
    %590 = vector.shape_cast %589 : vector<1x128x256xbf16> to vector<128x256xbf16>
    %cst_143 = arith.constant dense<0.000000e+00> : vector<2x256xf32>
    %591 = tpu.matmul %588, %590, %cst_143 {dimension_numbers = #tpu.dot_dimension_numbers<[1], [0], [0], [1], [0, 0, 1, 1], [], []>} : vector<2x128xbf16>, vector<128x256xbf16>, vector<2x256xf32> -> vector<2x256xf32>
    %592 = arith.addf %587, %591 : vector<2x256xf32>
    %593 = vector.extract_strided_slice %541 {offsets = [20, 0], sizes = [2, 128], strides = [1, 1]} : vector<32x128xbf16> to vector<2x128xbf16>
    %c10 = arith.constant 10 : index
    %c0_144 = arith.constant 0 : index
    %c0_145 = arith.constant 0 : index
    %594 = vector.load %arg17[%c10, %c0_144, %c0_145] : memref<16x128x256xbf16, #tpu.memory_space<vmem>>, vector<1x128x256xbf16>
    %595 = vector.shape_cast %594 : vector<1x128x256xbf16> to vector<128x256xbf16>
    %cst_146 = arith.constant dense<0.000000e+00> : vector<2x256xf32>
    %596 = tpu.matmul %593, %595, %cst_146 {dimension_numbers = #tpu.dot_dimension_numbers<[1], [0], [0], [1], [0, 0, 1, 1], [], []>} : vector<2x128xbf16>, vector<128x256xbf16>, vector<2x256xf32> -> vector<2x256xf32>
    %597 = arith.addf %592, %596 : vector<2x256xf32>
    %598 = vector.extract_strided_slice %541 {offsets = [22, 0], sizes = [2, 128], strides = [1, 1]} : vector<32x128xbf16> to vector<2x128xbf16>
    %c11 = arith.constant 11 : index
    %c0_147 = arith.constant 0 : index
    %c0_148 = arith.constant 0 : index
    %599 = vector.load %arg17[%c11, %c0_147, %c0_148] : memref<16x128x256xbf16, #tpu.memory_space<vmem>>, vector<1x128x256xbf16>
    %600 = vector.shape_cast %599 : vector<1x128x256xbf16> to vector<128x256xbf16>
    %cst_149 = arith.constant dense<0.000000e+00> : vector<2x256xf32>
    %601 = tpu.matmul %598, %600, %cst_149 {dimension_numbers = #tpu.dot_dimension_numbers<[1], [0], [0], [1], [0, 0, 1, 1], [], []>} : vector<2x128xbf16>, vector<128x256xbf16>, vector<2x256xf32> -> vector<2x256xf32>
    %602 = arith.addf %597, %601 : vector<2x256xf32>
    %603 = vector.extract_strided_slice %541 {offsets = [24, 0], sizes = [2, 128], strides = [1, 1]} : vector<32x128xbf16> to vector<2x128xbf16>
    %c12 = arith.constant 12 : index
    %c0_150 = arith.constant 0 : index
    %c0_151 = arith.constant 0 : index
    %604 = vector.load %arg17[%c12, %c0_150, %c0_151] : memref<16x128x256xbf16, #tpu.memory_space<vmem>>, vector<1x128x256xbf16>
    %605 = vector.shape_cast %604 : vector<1x128x256xbf16> to vector<128x256xbf16>
    %cst_152 = arith.constant dense<0.000000e+00> : vector<2x256xf32>
    %606 = tpu.matmul %603, %605, %cst_152 {dimension_numbers = #tpu.dot_dimension_numbers<[1], [0], [0], [1], [0, 0, 1, 1], [], []>} : vector<2x128xbf16>, vector<128x256xbf16>, vector<2x256xf32> -> vector<2x256xf32>
    %607 = arith.addf %602, %606 : vector<2x256xf32>
    %608 = vector.extract_strided_slice %541 {offsets = [26, 0], sizes = [2, 128], strides = [1, 1]} : vector<32x128xbf16> to vector<2x128xbf16>
    %c13 = arith.constant 13 : index
    %c0_153 = arith.constant 0 : index
    %c0_154 = arith.constant 0 : index
    %609 = vector.load %arg17[%c13, %c0_153, %c0_154] : memref<16x128x256xbf16, #tpu.memory_space<vmem>>, vector<1x128x256xbf16>
    %610 = vector.shape_cast %609 : vector<1x128x256xbf16> to vector<128x256xbf16>
    %cst_155 = arith.constant dense<0.000000e+00> : vector<2x256xf32>
    %611 = tpu.matmul %608, %610, %cst_155 {dimension_numbers = #tpu.dot_dimension_numbers<[1], [0], [0], [1], [0, 0, 1, 1], [], []>} : vector<2x128xbf16>, vector<128x256xbf16>, vector<2x256xf32> -> vector<2x256xf32>
    %612 = arith.addf %607, %611 : vector<2x256xf32>
    %613 = vector.extract_strided_slice %541 {offsets = [28, 0], sizes = [2, 128], strides = [1, 1]} : vector<32x128xbf16> to vector<2x128xbf16>
    %c14 = arith.constant 14 : index
    %c0_156 = arith.constant 0 : index
    %c0_157 = arith.constant 0 : index
    %614 = vector.load %arg17[%c14, %c0_156, %c0_157] : memref<16x128x256xbf16, #tpu.memory_space<vmem>>, vector<1x128x256xbf16>
    %615 = vector.shape_cast %614 : vector<1x128x256xbf16> to vector<128x256xbf16>
    %cst_158 = arith.constant dense<0.000000e+00> : vector<2x256xf32>
    %616 = tpu.matmul %613, %615, %cst_158 {dimension_numbers = #tpu.dot_dimension_numbers<[1], [0], [0], [1], [0, 0, 1, 1], [], []>} : vector<2x128xbf16>, vector<128x256xbf16>, vector<2x256xf32> -> vector<2x256xf32>
    %617 = arith.addf %612, %616 : vector<2x256xf32>
    %618 = vector.extract_strided_slice %541 {offsets = [30, 0], sizes = [2, 128], strides = [1, 1]} : vector<32x128xbf16> to vector<2x128xbf16>
    %c15 = arith.constant 15 : index
    %c0_159 = arith.constant 0 : index
    %c0_160 = arith.constant 0 : index
    %619 = vector.load %arg17[%c15, %c0_159, %c0_160] : memref<16x128x256xbf16, #tpu.memory_space<vmem>>, vector<1x128x256xbf16>
    %620 = vector.shape_cast %619 : vector<1x128x256xbf16> to vector<128x256xbf16>
    %cst_161 = arith.constant dense<0.000000e+00> : vector<2x256xf32>
    %621 = tpu.matmul %618, %620, %cst_161 {dimension_numbers = #tpu.dot_dimension_numbers<[1], [0], [0], [1], [0, 0, 1, 1], [], []>} : vector<2x128xbf16>, vector<128x256xbf16>, vector<2x256xf32> -> vector<2x256xf32>
    %622 = arith.addf %617, %621 : vector<2x256xf32>
    %c0_162 = arith.constant 0 : index
    %c0_163 = arith.constant 0 : index
    %623 = vector.load %arg18[%c0_162, %c0_163] : memref<1x256xf32, #tpu.memory_space<vmem>>, vector<1x256xf32>
    %624 = vector.broadcast %623 : vector<1x256xf32> to vector<2x256xf32>
    %625 = arith.addf %622, %624 : vector<2x256xf32>
    %cst_164 = arith.constant 0.000000e+00 : f32
    %626 = vector.broadcast %cst_164 : f32 to vector<2x256xf32>
    %627 = arith.maximumf %625, %626 : vector<2x256xf32>
    %628 = arith.truncf %627 : vector<2x256xf32> to vector<2x256xbf16>
    %c0_165 = arith.constant 0 : index
    %c0_166 = arith.constant 0 : index
    %629 = vector.load %arg19[%c0_165, %c0_166] : memref<256x10xbf16, #tpu.memory_space<vmem>>, vector<256x10xbf16>
    %cst_167 = arith.constant dense<0.000000e+00> : vector<2x10xf32>
    %630 = tpu.matmul %628, %629, %cst_167 {dimension_numbers = #tpu.dot_dimension_numbers<[1], [0], [0], [1], [0, 0, 1, 1], [], []>} : vector<2x256xbf16>, vector<256x10xbf16>, vector<2x10xf32> -> vector<2x10xf32>
    %c0_168 = arith.constant 0 : index
    %c0_169 = arith.constant 0 : index
    %631 = vector.load %arg20[%c0_168, %c0_169] : memref<1x10xf32, #tpu.memory_space<vmem>>, vector<1x10xf32>
    %632 = vector.broadcast %631 : vector<1x10xf32> to vector<2x10xf32>
    %633 = arith.addf %630, %632 : vector<2x10xf32>
    %cst_170 = arith.constant dense<0xFF800000> : vector<2xf32>
    %634 = vector.multi_reduction <maximumf>, %633, %cst_170 [1] : vector<2x10xf32> to vector<2xf32>
    %635 = vector.shape_cast %634 : vector<2xf32> to vector<2x1xf32>
    %636 = vector.broadcast %635 : vector<2x1xf32> to vector<2x10xf32>
    %637 = arith.subf %633, %636 : vector<2x10xf32>
    %638 = math.exp %637 : vector<2x10xf32>
    %cst_171 = arith.constant dense<0.000000e+00> : vector<2xf32>
    %639 = vector.multi_reduction <add>, %638, %cst_171 [1] : vector<2x10xf32> to vector<2xf32>
    %640 = vector.shape_cast %639 : vector<2xf32> to vector<2x1xf32>
    %641 = tpu.reciprocal %640 : vector<2x1xf32> -> vector<2x1xf32>
    %642 = vector.broadcast %641 : vector<2x1xf32> to vector<2x10xf32>
    %643 = arith.mulf %638, %642 : vector<2x10xf32>
    %c0_172 = arith.constant 0 : index
    %c0_173 = arith.constant 0 : index
    %644 = vector.load %arg21[%c0_172, %c0_173] : memref<2x10xf32, #tpu.memory_space<vmem>>, vector<2x10xf32>
    tpu.vector_store %arg21[%c0_172, %c0_173], %643 {strides = array<i32>} : memref<2x10xf32, #tpu.memory_space<vmem>>, vector<2x10xf32>,
    return
  }
}

</mosaic_0001>

<bundles_post_ra>
// kernel: temp_cnn_forward.1
= control target key start
LH: loop header
LB: loop body
LE: loop exit
PB: predicated region body
PF: predicated region fallthrough
CT: control target
= control target key end

     0   :  { %s9356_s0 = inlined_call_operand.vmem [shape: f32[16,4], index: 0, kind: input, shape index: {}]   ;;  %s9357_s1 = inlined_call_operand.hbm [shape: bf16[12,32], index: 1, kind: input, shape index: {}]   ;;  %s9358_s2 = inlined_call_operand.hbm [shape: f32[1,32], index: 2, kind: input, shape index: {}]   ;;  %s9359_s3 = inlined_call_operand.vmem [shape: bf16[96,64], index: 3, kind: input, shape index: {}]   ;;  %s9360_s4 = inlined_call_operand.hbm [shape: f32[1,64], index: 4, kind: input, shape index: {}]   ;;  %s9361_s5 = inlined_call_operand.hbm [shape: f32[1,64], index: 5, kind: input, shape index: {}]   ;;  %s9362_s6 = inlined_call_operand.hbm [shape: f32[1,64], index: 6, kind: input, shape index: {}]   ;;  %s9363_s7 = inlined_call_operand.vmem [shape: bf16[64,512], index: 7, kind: input, shape index: {}]   ;;  %s9364_s8 = inlined_call_operand.vmem [shape: bf16[128,512], index: 8, kind: input, shape index: {}]   ;;  %s9365_s9 = inlined_call_operand.hbm [shape: f32[1,512], index: 9, kind: input, shape index: {}]   ;;  %s9366_s10 = inlined_call_operand.hbm [shape: bf16[128,512], index: 10, kind: input, shape index: {}]   ;;  %s9367_s11 = inlined_call_operand.hbm [shape: bf16[128,512], index: 11, kind: input, shape index: {}]   ;;  %s9368_s12 = inlined_call_operand.hbm [shape: f32[1,512], index: 12, kind: input, shape index: {}]   ;;  %s9369_s13 = inlined_call_operand.vmem [shape: bf16[32,48], index: 13, kind: input, shape index: {}]   ;;  %s9370_s14 = inlined_call_operand.vmem [shape: f32[32,1], index: 14, kind: input, shape index: {}]   ;;  %s9371_s15 = inlined_call_operand.vmem [shape: f32[32,1], index: 15, kind: input, shape index: {}]   ;;  %s9372_s16 = inlined_call_operand.vmem [shape: f32[32,1], index: 16, kind: input, shape index: {}]   ;;  %s9373_s17 = inlined_call_operand.hbm [shape: bf16[16,128,256], index: 17, kind: input, shape index: {}]   ;;  %s9374_s18 = inlined_call_operand.vmem [shape: f32[1,256], index: 18, kind: input, shape index: {}]   ;;  %s9375_s19 = inlined_call_operand.vmem [shape: bf16[256,10], index: 19, kind: input, shape index: {}]   ;;  %s9376_s20 = inlined_call_operand.hbm [shape: f32[1,10], index: 20, kind: input, shape index: {}]   ;;  %s9377_s21 = inlined_call_operand.hbm [shape: f32[2,10], index: 21, kind: output, shape index: {}]  }
   0x1   :  { %9391 = sst [smem:[#allocation28_spill]] %s9356_s0 }
   0x2   :  { %9392 = sst [smem:[#allocation29_spill]] %s9357_s1 }
   0x3   :  { %9393 = sst [smem:[#allocation30_spill]] %s9358_s2 }
   0x4   :  { %9394 = sst [smem:[#allocation31_spill]] %s9359_s3 }
   0x5   :  { %9395 = sst [smem:[#allocation32_spill]] %s9360_s4 }
   0x6   :  { %9396 = sst [smem:[#allocation33_spill]] %s9361_s5 }
   0x7   :  { %26 = vsyncpa [#allocation3], 0 }
   0x8   :  { %27 = vsyncpa [#allocation6], 0 }
   0x9   :  { %28 = vsyncpa [#allocation9], 0 }
   0xa   :  { %29 = vsyncpa [#allocation12], 0 }
   0xb   :  { %30 = vsyncpa [#allocation15], 0 }
   0xc   :  { %31 = vsyncpa [#allocation18], 0 }
   0xd   :  { %32 = vsyncpa [#allocation4], 0  ;;  %s7792_s2 = smov [#allocation5]   ;;  %s7793_s26 = smov [#allocation8]  }
   0xe   :  { %s53_s25 = sshll.u32 %s7792_s2, 4  ;;  %s75_s27 = sshll.u32 %s7793_s26, 4  ;;  %s54_s25 = int_to_ptr.vmem [resolvable:$true] %s53_s25  ;;  %s76_s27 = int_to_ptr.vmem [resolvable:$true] %s75_s27 }
   0xf   :  { %s9397_s29 = sld [smem:[#allocation30_spill]] }
  0x15   :  { %s7514_s0 = scalar_lea.hbm %s9397_s29, 16 }
  0x16   :  { %p7515_p0 = scmp.ne.s32.totalorder %s9397_s29, %s7514_s0  ;;  %p7518_p1 = scmp.lt.u32.totalorder %s7514_s0, %s9397_s29 }
  0x18   :  { %p7520_p2 = pnand %p7518_p1, %p7515_p0 }
  0x1a   :  { %7523 = shalt.err (!%p7520_p2)
}
  0x1b   :  { %s7524_s23 = scalar_lea.vmem %s54_s25, 16  ;;  %s7528_s1 = scalar_lea.vmem %s54_s25, 32 }
  0x1c   :  { %p7525_p3 = scmp.ne.s32.totalorder %s54_s25, %s7524_s23  ;;  %p7529_p4 = scmp.lt.s32.totalorder %s54_s25, %s54_s25 }
  0x1d   :  { %p7530_p5 = scmp.lt.s32.totalorder %s7528_s1, %s7524_s23 }
  0x1f   :  { %p7531_p6 = por %p7530_p5, %p7529_p4 }
  0x21   :  { %p7532_p7 = pnand %p7531_p6, %p7525_p3 }
  0x23   :  { %7535 = shalt.err (!%p7532_p7)
}
  0x24   :  { %56 = dma.hbm_to_vmem [thread:$0]  %s9397_s29, 16, %s54_s25, [#allocation6]  }
  0x25   :  { %s9398_s28 = sld [smem:[#allocation33_spill]] }
  0x2b   :  { %s7536_s4 = scalar_lea.hbm %s9398_s28, 16 }
  0x2c   :  { %p7537_p8 = scmp.ne.s32.totalorder %s9398_s28, %s7536_s4  ;;  %p7540_p9 = scmp.lt.u32.totalorder %s7536_s4, %s9398_s28 }
  0x2e   :  { %p7542_p10 = pnand %p7540_p9, %p7537_p8 }
  0x30   :  { %7545 = shalt.err (!%p7542_p10)
}
  0x31   :  { %s7546_s23 = scalar_lea.vmem %s76_s27, 16  ;;  %s7550_s1 = scalar_lea.vmem %s76_s27, 32 }
  0x32   :  { %p7547_p11 = scmp.ne.s32.totalorder %s76_s27, %s7546_s23  ;;  %p7551_p12 = scmp.lt.s32.totalorder %s76_s27, %s76_s27 }
  0x33   :  { %p7552_p13 = scmp.lt.s32.totalorder %s7550_s1, %s7546_s23 }
  0x35   :  { %p7553_p0 = por %p7552_p13, %p7551_p12 }
  0x37   :  { %p7554_p1 = pnand %p7553_p0, %p7547_p11 }
  0x39   :  { %7557 = shalt.err (!%p7554_p1)
}
  0x3a   :  { %78 = dma.hbm_to_vmem [thread:$0]  %s9398_s28, 16, %s76_s27, [#allocation9]  }
  0x3b   :  { %s7794_s24 = smov [#allocation11]   ;;  %s7558_s4 = scalar_lea.hbm %s9365_s9, 64 }
  0x3c   :  { %s99_s2 = sshll.u32 %s7794_s24, 4  ;;  %p7559_p2 = scmp.ne.s32.totalorder %s9365_s9, %s7558_s4  ;;  %s100_s2 = int_to_ptr.vmem [resolvable:$true] %s99_s2 }
  0x3d   :  { %p7562_p3 = scmp.lt.u32.totalorder %s7558_s4, %s9365_s9 }
  0x3f   :  { %p7564_p4 = pnand %p7562_p3, %p7559_p2 }
  0x41   :  { %7567 = shalt.err (!%p7564_p4)
}
  0x42   :  { %s7568_s23 = scalar_lea.vmem %s100_s2, 64  ;;  %p7573_p6 = scmp.lt.s32.totalorder %s100_s2, %s100_s2 }
  0x43   :  { %p7569_p5 = scmp.ne.s32.totalorder %s100_s2, %s7568_s23  ;;  %p7574_p7 = scmp.lt.s32.totalorder %s7568_s23, %s7568_s23 }
  0x45   :  { %p7575_p8 = por %p7574_p7, %p7573_p6 }
  0x47   :  { %p7576_p9 = pnand %p7575_p8, %p7569_p5 }
  0x49   :  { %7579 = shalt.err (!%p7576_p9)
}
  0x4a   :  { %102 = dma.hbm_to_vmem [thread:$0]  %s9365_s9, 64, %s100_s2, [#allocation12]  }
  0x4b   :  { %s7795_s1 = smov [#allocation14]   ;;  %s7796_s29 = smov [#allocation17]  }
  0x4c   :  { %s120_s25 = sshll.u32 %s7795_s1, 4  ;;  %s150_s24 = sshll.u32 %s7796_s29, 4  ;;  %s121_s25 = int_to_ptr.vmem [resolvable:$true] %s120_s25  ;;  %s151_s24 = int_to_ptr.vmem [resolvable:$true] %s150_s24 }
  0x4d   :  { %s7580_s4 = scalar_lea.hbm %s9367_s11, 4096 }
  0x4e   :  { %p7581_p10 = scmp.ne.s32.totalorder %s9367_s11, %s7580_s4  ;;  %p7584_p11 = scmp.lt.u32.totalorder %s7580_s4, %s9367_s11 }
  0x50   :  { %p7586_p12 = pnand %p7584_p11, %p7581_p10 }
  0x52   :  { %7589 = shalt.err (!%p7586_p12)
}
  0x53   :  { %s7590_s9 = scalar_lea.vmem %s121_s25, 4096  ;;  %p7595_p0 = scmp.lt.s32.totalorder %s121_s25, %s121_s25 }
  0x54   :  { %p7591_p13 = scmp.ne.s32.totalorder %s121_s25, %s7590_s9  ;;  %p7596_p1 = scmp.lt.s32.totalorder %s7590_s9, %s7590_s9 }
  0x56   :  { %p7597_p2 = por %p7596_p1, %p7595_p0 }
  0x58   :  { %p7598_p3 = pnand %p7597_p2, %p7591_p13 }
  0x5a   :  { %7601 = shalt.err (!%p7598_p3)
}
  0x5b   :  { %s9384_s2 = smov 256   ;;  %s9386_s23 = smov 16  }
  0x5c   :  { %126 = dma.hbm_to_vmem [thread:$0]  %s9367_s11, 4096, %s121_s25, [#allocation15], %s9384_s2, %s9384_s2, %s9386_s23  }
  0x5d   :  { %s7602_s26 = scalar_lea.hbm %s9373_s17, 32768 }
  0x5e   :  { %p7603_p4 = scmp.ne.s32.totalorder %s9373_s17, %s7602_s26  ;;  %p7606_p5 = scmp.lt.u32.totalorder %s7602_s26, %s9373_s17 }
  0x60   :  { %p7608_p6 = pnand %p7606_p5, %p7603_p4 }
  0x62   :  { %7611 = shalt.err (!%p7608_p6)
}
  0x63   :  { %s7612_s5 = scalar_lea.vmem %s151_s24, 32768  ;;  %p7617_p8 = scmp.lt.s32.totalorder %s151_s24, %s151_s24 }
  0x64   :  { %p7613_p7 = scmp.ne.s32.totalorder %s151_s24, %s7612_s5  ;;  %p7618_p9 = scmp.lt.s32.totalorder %s7612_s5, %s7612_s5 }
  0x66   :  { %p7619_p10 = por %p7618_p9, %p7617_p8 }
  0x68   :  { %p7620_p11 = pnand %p7619_p10, %p7613_p7 }
  0x6a   :  { %7623 = shalt.err (!%p7620_p11)
}
  0x6b   :  { %s7799_s11 = smov 128   ;;  %s9385_s25 = smov 8  }
  0x6c   :  { %156 = dma.hbm_to_vmem [thread:$0]  %s9373_s17, 32768, %s151_s24, [#allocation18], %s7799_s11, %s7799_s11, %s9385_s25  }
  0x6d   :  { %s7801_s27 = smov [#allocation2]   ;;  %s9399_s26 = sld [smem:[#allocation29_spill]] }
  0x6e   :  { %s40_s28 = sshll.u32 %s7801_s27, 4  ;;  %s41_s28 = int_to_ptr.vmem [resolvable:$true] %s40_s28 }
  0x73   :  { %s7624_s3 = scalar_lea.hbm %s9399_s26, 128 }
  0x74   :  { %p7625_p12 = scmp.ne.s32.totalorder %s9399_s26, %s7624_s3  ;;  %p7628_p13 = scmp.lt.u32.totalorder %s7624_s3, %s9399_s26 }
  0x76   :  { %p7630_p0 = pnand %p7628_p13, %p7625_p12 }
  0x78   :  { %7633 = shalt.err (!%p7630_p0)
}
  0x79   :  { %s7634_s2 = scalar_lea.vmem %s41_s28, 128  ;;  %p7639_p2 = scmp.lt.s32.totalorder %s41_s28, %s41_s28 }
  0x7a   :  { %p7635_p1 = scmp.ne.s32.totalorder %s41_s28, %s7634_s2  ;;  %p7640_p3 = scmp.lt.s32.totalorder %s7634_s2, %s7634_s2 }
  0x7c   :  { %p7641_p4 = por %p7640_p3, %p7639_p2 }
  0x7e   :  { %p7642_p5 = pnand %p7641_p4, %p7635_p1 }
  0x80   :  { %7645 = shalt.err (!%p7642_p5)
}
  0x81   :  { %s7802_s17 = smov 64   ;;  %s7803_s24 = smov 4  }
  0x82   :  { %46 = dma.hbm_to_vmem [thread:$0]  %s9399_s26, 128, %s41_s28, [#allocation3], %s7802_s17, %s7802_s17, %s7803_s24  }
  0x83   :  { %s7804_s9 = smov [#allocation7]   ;;  %s7805_s1 = smov [#allocation10]  }
  0x84   :  { %s65_s27 = sshll.u32 %s7804_s9, 4  ;;  %s85_s29 = sshll.u32 %s7805_s1, 4  ;;  %s66_s27 = int_to_ptr.vmem [resolvable:$true] %s65_s27  ;;  %s86_s29 = int_to_ptr.vmem [resolvable:$true] %s85_s29 }
  0x85   :  { %s9400_s4 = sld [smem:[#allocation32_spill]] }
  0x8b   :  { %s7646_s30 = scalar_lea.hbm %s9400_s4, 16 }
  0x8c   :  { %p7647_p6 = scmp.ne.s32.totalorder %s9400_s4, %s7646_s30  ;;  %p7650_p7 = scmp.lt.u32.totalorder %s7646_s30, %s9400_s4 }
  0x8e   :  { %p7652_p8 = pnand %p7650_p7, %p7647_p6 }
  0x90   :  { %7655 = shalt.err (!%p7652_p8)
}
  0x91   :  { %s7656_s28 = scalar_lea.vmem %s66_s27, 16  ;;  %s7660_s26 = scalar_lea.vmem %s66_s27, 32 }
  0x92   :  { %p7657_p9 = scmp.ne.s32.totalorder %s66_s27, %s7656_s28  ;;  %p7661_p10 = scmp.lt.s32.totalorder %s66_s27, %s66_s27 }
  0x93   :  { %p7662_p11 = scmp.lt.s32.totalorder %s7660_s26, %s7656_s28 }
  0x95   :  { %p7663_p12 = por %p7662_p11, %p7661_p10 }
  0x97   :  { %p7664_p13 = pnand %p7663_p12, %p7657_p9 }
  0x99   :  { %7667 = shalt.err (!%p7664_p13)
}
  0x9a   :  { %68 = dma.hbm_to_vmem [thread:$0]  %s9400_s4, 16, %s66_s27, [#allocation6]  }
  0x9b   :  { %s7668_s3 = scalar_lea.hbm %s9362_s6, 16 }
  0x9c   :  { %p7669_p0 = scmp.ne.s32.totalorder %s9362_s6, %s7668_s3  ;;  %p7672_p1 = scmp.lt.u32.totalorder %s7668_s3, %s9362_s6 }
  0x9e   :  { %p7674_p2 = pnand %p7672_p1, %p7669_p0 }
  0xa0   :  { %7677 = shalt.err (!%p7674_p2)
}
  0xa1   :  { %s7678_s0 = scalar_lea.vmem %s86_s29, 16  ;;  %s7682_s5 = scalar_lea.vmem %s86_s29, 32 }
  0xa2   :  { %p7679_p3 = scmp.ne.s32.totalorder %s86_s29, %s7678_s0  ;;  %p7683_p4 = scmp.lt.s32.totalorder %s86_s29, %s86_s29 }
  0xa3   :  { %p7684_p5 = scmp.lt.s32.totalorder %s7682_s5, %s7678_s0 }
  0xa5   :  { %p7685_p6 = por %p7684_p5, %p7683_p4 }
  0xa7   :  { %p7686_p7 = pnand %p7685_p6, %p7679_p3 }
  0xa9   :  { %7689 = shalt.err (!%p7686_p7)
}
  0xaa   :  { %88 = dma.hbm_to_vmem [thread:$0]  %s9362_s6, 16, %s86_s29, [#allocation9]  }
  0xab   :  { %s7806_s28 = smov [#allocation13]   ;;  %s7807_s11 = smov [#allocation16]  }
  0xac   :  { %s108_s26 = sshll.u32 %s7806_s28, 4  ;;  %s133_s22 = sshll.u32 %s7807_s11, 4  ;;  %s109_s26 = int_to_ptr.vmem [resolvable:$true] %s108_s26  ;;  %s134_s22 = int_to_ptr.vmem [resolvable:$true] %s133_s22 }
  0xad   :  { %s7690_s3 = scalar_lea.hbm %s9366_s10, 4096 }
  0xae   :  { %p7691_p8 = scmp.ne.s32.totalorder %s9366_s10, %s7690_s3  ;;  %p7694_p9 = scmp.lt.u32.totalorder %s7690_s3, %s9366_s10 }
  0xb0   :  { %p7696_p10 = pnand %p7694_p9, %p7691_p8 }
  0xb2   :  { %7699 = shalt.err (!%p7696_p10)
}
  0xb3   :  { %s7700_s6 = scalar_lea.vmem %s109_s26, 4096  ;;  %p7705_p12 = scmp.lt.s32.totalorder %s109_s26, %s109_s26 }
  0xb4   :  { %p7701_p11 = scmp.ne.s32.totalorder %s109_s26, %s7700_s6  ;;  %p7706_p13 = scmp.lt.s32.totalorder %s7700_s6, %s7700_s6 }
  0xb6   :  { %p7707_p0 = por %p7706_p13, %p7705_p12 }
  0xb8   :  { %p7708_p1 = pnand %p7707_p0, %p7701_p11 }
  0xba   :  { %7711 = shalt.err (!%p7708_p1)
}
  0xbb   :  { %s9401_s29 = smov 16   ;;  %s9402_s0 = smov 256  }
  0xbc   :  { %114 = dma.hbm_to_vmem [thread:$0]  %s9366_s10, 4096, %s109_s26, [#allocation12], %s9402_s0, %s9402_s0, %s9401_s29  }
  0xbd   :  { %s7712_s11 = scalar_lea.hbm %s9368_s12, 64 }
  0xbe   :  { %p7713_p2 = scmp.ne.s32.totalorder %s9368_s12, %s7712_s11  ;;  %p7716_p3 = scmp.lt.u32.totalorder %s7712_s11, %s9368_s12 }
  0xc0   :  { %p7718_p4 = pnand %p7716_p3, %p7713_p2 }
  0xc2   :  { %7721 = shalt.err (!%p7718_p4)
}
  0xc3   :  { %s7722_s25 = scalar_lea.vmem %s134_s22, 64  ;;  %p7727_p6 = scmp.lt.s32.totalorder %s134_s22, %s134_s22 }
  0xc4   :  { %p7723_p5 = scmp.ne.s32.totalorder %s134_s22, %s7722_s25  ;;  %p7728_p7 = scmp.lt.s32.totalorder %s7722_s25, %s7722_s25 }
  0xc6   :  { %p7729_p8 = por %p7728_p7, %p7727_p6 }
  0xc8   :  { %p7730_p9 = pnand %p7729_p8, %p7723_p5 }
  0xca   :  { %7733 = shalt.err (!%p7730_p9)
}
  0xcb   :  { %136 = dma.hbm_to_vmem [thread:$0]  %s9368_s12, 64, %s134_s22, [#allocation15]  }
  0xcc   :  { %s7808_s2 = smov [#allocation19]   ;;  %s7734_s0 = scalar_lea.hbm %s9376_s20, 16 }
  0xcd   :  { %s167_s30 = sshll.u32 %s7808_s2, 4  ;;  %p7735_p10 = scmp.ne.s32.totalorder %s9376_s20, %s7734_s0  ;;  %s168_s30 = int_to_ptr.vmem [resolvable:$true] %s167_s30 }
  0xce   :  { %p7738_p11 = scmp.lt.u32.totalorder %s7734_s0, %s9376_s20 }
  0xd0   :  { %p7740_p12 = pnand %p7738_p11, %p7735_p10 }
  0xd2   :  { %7743 = shalt.err (!%p7740_p12)
}
  0xd3   :  { %s7744_s11 = scalar_lea.vmem %s168_s30, 16  ;;  %s7748_s12 = scalar_lea.vmem %s168_s30, 32 }
  0xd4   :  { %p7745_p13 = scmp.ne.s32.totalorder %s168_s30, %s7744_s11  ;;  %p7749_p0 = scmp.lt.s32.totalorder %s168_s30, %s168_s30 }
  0xd5   :  { %p7750_p1 = scmp.lt.s32.totalorder %s7748_s12, %s7744_s11 }
  0xd7   :  { %p7751_p2 = por %p7750_p1, %p7749_p0 }
  0xd9   :  { %p7752_p3 = pnand %p7751_p2, %p7745_p13 }
  0xdb   :  { %7755 = shalt.err (!%p7752_p3)
}
  0xdc   :  { %170 = dma.hbm_to_vmem [thread:$0]  %s9376_s20, 16, %s168_s30, [#allocation18]  }
  0xdd   :  { %7778 = dma.done.wait [#allocation3], 128  }
  0xde   :  { %7779 = vsyncadd [#allocation3], 4294967168 }
  0xdf   :  { %7780 = dma.done.wait [#allocation6], 32  }
  0xe0   :  { %7781 = vsyncadd [#allocation6], 4294967264 }
  0xe1   :  { %7782 = dma.done.wait [#allocation9], 32  }
  0xe2   :  { %7783 = vsyncadd [#allocation9], 4294967264 }
  0xe3   :  { %7784 = dma.done.wait [#allocation12], 4160  }
  0xe4   :  { %7785 = vsyncadd [#allocation12], 4294963136 }
  0xe5   :  { %7786 = dma.done.wait [#allocation15], 4160  }
  0xe6   :  { %7787 = vsyncadd [#allocation15], 4294963136 }
  0xe7   :  { %7788 = dma.done.wait [#allocation18], 32784  }
  0xe8   :  { %7789 = vsyncadd [#allocation18], 4294934512  ;;  %v7809_v0 = vmov 0.0   ;;  %vm7810_vm0 = vmmov 0   ;;  %s9403_s3 = sld [smem:[#allocation28_spill]]  ;;  %vm209_vm1 = vcmask 1041408  }
  0xe9   :  { %6525 = vmatprep.subr.bf16.mxu0 %v7809_v0  ;;  %6531 = vmatprep.subr.bf16.mxu1 %v7809_v0  ;;  %vm216_vm2 = vcmask 1045504   ;;  %v6613_v8 = vld [vmem:[#allocation2] sm:$0x3f]   ;;  %s9404_s10 = smov 8   ;;  %vm235_vm3 = vcmask 31744   ;;  %vm238_vm4 = vcmask 64512  }
  0xea   :  { %6527 = vmatprep.mubr.msk.bf16.mxu0 %vm7810_vm0, %v7809_v0  ;;  %6543 = vmatprep.mubr.msk.bf16.mxu1 %vm7810_vm0, %v7809_v0  ;;  %v261_v12 = vsel %vm216_vm2, %v6613_v8, 0  ;;  %vm256_vm5 = vcmask 97280   ;;  %s9405_s2 = sld [smem:[#allocation31_spill]]  ;;  %v6029_v31 = vld [vmem:[#allocation5] ss:$0 sm:$0xff]  ;;  %s7811_s25 = smov 32  }
  0xeb   :  { %6526 = vmatpush3.bf16.msra.mxu0 %v261_v12  ;;  %v6622_v42 = vld [vmem:[%s9363_s7 + $0x4] ss:$16 sps:$4 sm:$0xff]   ;;  %v6623_v43 = vld [vmem:[%s9363_s7 + $0x8] ss:$16 sps:$4 sm:$0xff]   ;;  %v6625_v44 = vld [vmem:[%s9363_s7 + $0xc] ss:$16 sps:$4 sm:$0xff]  }
  0xec   :  { %624 = vmatprep.subr.bf16.mxu0 %v6625_v44  ;;  %vm332_vm6 = vcmask 261120   ;;  %vm335_vm7 = vcmask 523264   ;;  %vm394_vm8 = vcmask 785408   ;;  %v6632_v8 = vld [vmem:[%s9363_s7 + $0x40] ss:$16 sps:$4 sm:$0xff]   ;;  %vm1855_vm9 = vcmask 1043456  }
  0xed   :  { %v6638_v12 = vld [vmem:[%s9363_s7 + $0x60] ss:$16 sps:$4 sm:$0xff]   ;;  %v8240_v44 = vld [vmem:[%s9364_s8 + $0x6c] ss:$16 sps:$4 sm:$0xff]   ;;  %s7814_s9 = smov 1   ;;  %vm3416_vm10 = vcmask 392192  }
  0xee   :  { %v205_v1 = vld [vmem:[%s9403_s3] sm:$0xff]  ;;  %v206_v2 = vld [vmem:[%s9403_s3 + $0x8] sm:$0xff]  ;;  %vm3363_vm11 = vcmask 7168   ;;  %vm3372_vm14 = vcmask 1039360   ;;  %vm5996_vm0 = vcmask 74752  }
  0xef   :  { %v211_v3 = vrot.slane %v206_v2, 6  ;;  %v6581_v4 = vpack.i.bf16 %v206_v2, %v205_v1  ;;  %v210_v5 = vrot.slane %v205_v1, 6  ;;  %v217_v6 = vrot.slane %v205_v1, 2  ;;  %vm6206_vm12 = vmneg %vm3363_vm11 }
  0xf0   :  { %v218_v7 = vrot.slane %v206_v2, 2  ;;  %v6614_v26 = vld [vmem:[%s9405_s2] sm:$0xff]   ;;  %v6615_v27 = vld [vmem:[%s9405_s2 + $0x8] sm:$0xff]   ;;  %v6616_v28 = vld [vmem:[%s9405_s2 + $0x10] sm:$0xff]  }
  0xf1   :  { %6582 = vrot.lane.b32.xlu0 %v6581_v4, %s7803_s24  ;;  %v212_v9 = vsel %vm209_vm1, %v210_v5, %v211_v3  ;;  %v215_v17 = vsel %vm209_vm1, 0.0, %v210_v5  ;;  %6532 = vmatpush3.bf16.msra.mxu1 %v6614_v26  ;;  %v6617_v29 = vld [vmem:[%s9405_s2 + $0x18] sm:$0xff]   ;;  %v6618_v30 = vld [vmem:[%s9405_s2 + $0x20] sm:$0xff]   ;;  %v6619_v33 = vld [vmem:[%s9405_s2 + $0x28] sm:$0xff]  }
  0xf2   :  { %v219_v10 = vsel %vm216_vm2, %v217_v6, %v218_v7  ;;  %v221_v11 = vsel %vm216_vm2, %v218_v7, 0.0  ;;  %6533 = vmatprep.subr.bf16.mxu1 %v7809_v0  ;;  %v6628_v2 = vld [vmem:[%s9363_s7 + $0x24] ss:$16 sps:$4 sm:$0xff]   ;;  %v6631_v3 = vld [vmem:[%s9363_s7 + $0x2c] ss:$16 sps:$4 sm:$0xff]   ;;  %vm6208_vm13 = vmpackc.low %vm6206_vm12, %vm6206_vm12 }
  0xf3   :  { %v6586_v13 = vpack.i.bf16 %v221_v11, %v219_v10  ;;  %v6626_v4 = vld [vmem:[%s9363_s7 + $0x20] ss:$16 sps:$4 sm:$0xff]   ;;  %v6629_v5 = vld [vmem:[%s9363_s7 + $0x28] ss:$16 sps:$4 sm:$0xff]   ;;  %v6634_v6 = vld [vmem:[%s9363_s7 + $0x44] ss:$16 sps:$4 sm:$0xff]  }
  0xf4   :  { %v6637_v7 = vld [vmem:[%s9363_s7 + $0x4c] ss:$16 sps:$4 sm:$0xff]   ;;  %v6640_v10 = vld [vmem:[%s9363_s7 + $0x64] ss:$16 sps:$4 sm:$0xff]   ;;  %vm6211_vm15 = vmpackc.low %vm3372_vm14, %vm3372_vm14 }
  0xf5   :  { %6587 = vrot.lane.b32.xlu0 %v6586_v13, %s9404_s10  ;;  %6534 = vmatpush3.bf16.msra.mxu1 %v6615_v27  ;;  %v6643_v11 = vld [vmem:[%s9363_s7 + $0x6c] ss:$16 sps:$4 sm:$0xff]   ;;  %v6641_v13 = vld [vmem:[%s9363_s7 + $0x68] ss:$16 sps:$4 sm:$0xff]  }
  0xf6   :  { %6535 = vmatprep.subr.bf16.mxu1 %v7809_v0 }
  0xf9   :  { %6536 = vmatpush3.bf16.msra.mxu1 %v6616_v28  ;;  %v6041_v28 = vld [vmem:[#allocation10] ss:$0 sm:$0xff] }
  0xfa   :  { %6537 = vmatprep.subr.bf16.mxu1 %v7809_v0 }
  0xfd   :  { %6538 = vmatpush3.bf16.msra.mxu1 %v6617_v29 }
  0xfe   :  { %6539 = vmatprep.subr.bf16.mxu1 %v7809_v0 }
 0x101   :  { %6540 = vmatpush3.bf16.msra.mxu1 %v6618_v30 }
 0x102   :  { %6541 = vmatprep.subr.bf16.mxu1 %v7809_v0  ;;  %v6620_v0 = vld [vmem:[%s9363_s7] ss:$16 sps:$4 sm:$0xff]  }
 0x105   :  { %6542 = vmatpush3.bf16.msra.mxu1 %v6619_v33  ;;  %v8178_v33 = vld [vmem:[%s9364_s8 + $0x8] ss:$16 sps:$4 sm:$0xff]  }
 0x106   :  { %581 = vmatprep.subr.bf16.mxu1 %v6622_v42  ;;  %v8228_v42 = vld [vmem:[%s9364_s8 + $0x48] ss:$16 sps:$4 sm:$0xff]  }
 0x163   :  { %v6583_v14 = vpop.permute.xlu0 %6582 }
 0x164   :  { %v6585_v15 = vunpack.i.h.bf16 %v6583_v14  ;;  %v6584_v16 = vunpack.i.l.bf16 %v6583_v14  ;;  %v8157_v14 = vld [vmem:[%s9364_s8 + $0x4] ss:$16 sps:$4 sm:$0xff]  }
 0x166   :  { %v236_v21 = vsel %vm235_vm3, %v215_v17, %v6584_v16  ;;  %v237_v22 = vsel %vm235_vm3, %v212_v9, %v6585_v15  ;;  %v6635_v9 = vld [vmem:[%s9363_s7 + $0x48] ss:$16 sps:$4 sm:$0xff]   ;;  %v8162_v15 = vld [vmem:[%s9364_s8 + $0xc] ss:$16 sps:$4 sm:$0xff]   ;;  %v9389_v16 = vmov 0  }
 0x167   :  { %v6588_v18 = vpop.permute.xlu0 %6587  ;;  %6612 = vset.pattern.permute.xlu1 %v9389_v16  ;;  %6611 = vset.pattern.permute.xlu0 %v9389_v16  ;;  %v6032_v17 = vld [vmem:[#allocation7] ss:$0 sm:$0xff] }
 0x168   :  { %v6590_v19 = vunpack.i.h.bf16 %v6588_v18  ;;  %v6589_v20 = vunpack.i.l.bf16 %v6588_v18 }
 0x16a   :  { %v239_v23 = vsel %vm238_vm4, %v236_v21, %v6589_v20  ;;  %v240_v24 = vsel %vm238_vm4, %v237_v22, %v6590_v19  ;;  %v6040_v21 = vld [vmem:[#allocation8] ss:$0 sm:$0xff] }
 0x16b   :  { %v241_v25 = vpack.c.bf16 %v240_v24, %v239_v23 }
 0x16d   :  { %6528 = vmatmul.mubr.msk.bf16.vlgmr.msra.gmra.mrb[0].mxu0 %vm256_vm5, %v241_v25 }
 0x16e   :  { %625 = vmatpush1.bf16.msra.mxu0 %v6623_v43  ;;  %656 = vmatprep.mubr.bf16.mxu0 %v9389_v16  ;;  %v8235_v43 = vld [vmem:[%s9364_s8 + $0x64] ss:$16 sps:$4 sm:$0xff]  }
 0x16f   :  { %626 = vmatprep.subr.bf16.mxu0 %v6631_v3  ;;  %v476_v3 = vld [vmem:[#allocation11] sm:$0xf] }
 0x172   :  { %627 = vmatpush1.bf16.msra.mxu0 %v6629_v5 }
 0x173   :  { %628 = vmatprep.subr.bf16.mxu0 %v6637_v7 }
 0x176   :  { %629 = vmatpush1.bf16.msra.mxu0 %v6635_v9 }
 0x177   :  { %630 = vmatprep.subr.bf16.mxu0 %v6643_v11 }
 0x17a   :  { %631 = vmatpush1.bf16.msra.mxu0 %v6641_v13 }
 0x17b   :  { %900 = vmatprep.subr.bf16.mxu0 %v8162_v15 }
 0x240   :  { %v297_v32 = vpop.f32.mrb[0].mxu0 }
 0x241   :  { %v298_v34 = vadd.f32 %v6029_v31, %v297_v32  ;;  %v6529_v35 = vpop.f32.mrb[1].mxu0  ;;  %v8173_v32 = vld [vmem:[%s9364_s8] ss:$16 sps:$4 sm:$0xff]  }
 0x242   :  { %v300_v36 = vpop.f32.mrb[2].mxu0  ;;  %v8183_v35 = vld [vmem:[%s9364_s8 + $0x24] ss:$16 sps:$4 sm:$0xff]  }
 0x243   :  { %v304_v37 = vmax.f32 %v298_v34, 0.0  ;;  %v301_v38 = vadd.f32 %v6029_v31, %v300_v36  ;;  %v6530_v39 = vpop.f32.mrb[3].mxu0  ;;  %v8188_v36 = vld [vmem:[%s9364_s8 + $0x2c] ss:$16 sps:$4 sm:$0xff]  }
 0x244   :  { %v8209_v39 = vld [vmem:[%s9364_s8 + $0x44] ss:$16 sps:$4 sm:$0xff]  }
 0x245   :  { %v308_v40 = vrot.slane %v304_v37, 6  ;;  %v305_v41 = vmax.f32 %v301_v38, 0.0  ;;  %v314_v45 = vrot.slane %v304_v37, 2  ;;  %v8202_v38 = vld [vmem:[%s9364_s8 + $0x28] ss:$16 sps:$4 sm:$0xff]  }
 0x247   :  { %v309_v46 = vrot.slane %v305_v41, 6  ;;  %v6591_v47 = vpack.i.bf16 %v305_v41, %v304_v37  ;;  %v315_v48 = vrot.slane %v305_v41, 2  ;;  %v313_v57 = vsel %vm209_vm1, 0.0, %v308_v40  ;;  %v8197_v37 = vld [vmem:[%s9364_s8 + $0x20] ss:$16 sps:$4 sm:$0xff]  }
 0x248   :  { %v8223_v41 = vld [vmem:[%s9364_s8 + $0x40] ss:$16 sps:$4 sm:$0xff]  }
 0x249   :  { %6592 = vrot.lane.b32.xlu1 %v6591_v47, %s7811_s25  ;;  %v316_v49 = vsel %vm216_vm2, %v314_v45, %v315_v48  ;;  %v318_v50 = vsel %vm216_vm2, %v315_v48, 0.0  ;;  %v310_v51 = vsel %vm209_vm1, %v308_v40, %v309_v46  ;;  %v8214_v40 = vld [vmem:[%s9364_s8 + $0x4c] ss:$16 sps:$4 sm:$0xff]   ;;  %v8247_v45 = vld [vmem:[%s9364_s8 + $0x60] ss:$16 sps:$4 sm:$0xff]  }
 0x24a   :  { %v6596_v52 = vpack.i.bf16 %v318_v50, %v316_v49  ;;  %v8252_v46 = vld [vmem:[%s9364_s8 + $0x68] ss:$16 sps:$4 sm:$0xff]   ;;  %v8259_v47 = vld [vmem:[%s9364_s8 + $0x84] ss:$16 sps:$4 sm:$0xff]   ;;  %v8264_v48 = vld [vmem:[%s9364_s8 + $0x8c] ss:$16 sps:$4 sm:$0xff]  }
 0x24b   :  { %v8271_v49 = vld [vmem:[%s9364_s8 + $0x80] ss:$16 sps:$4 sm:$0xff]   ;;  %v8276_v50 = vld [vmem:[%s9364_s8 + $0x88] ss:$16 sps:$4 sm:$0xff]  }
 0x24d   :  { %6597 = vrot.lane.b32.xlu1 %v6596_v52, %s7802_s17  ;;  %v8288_v52 = vld [vmem:[%s9364_s8 + $0xac] ss:$16 sps:$4 sm:$0xff]  }
 0x2bb   :  { %v6593_v53 = vpop.permute.xlu1 %6592 }
 0x2bc   :  { %v6595_v54 = vunpack.i.h.bf16 %v6593_v53  ;;  %v6594_v55 = vunpack.i.l.bf16 %v6593_v53  ;;  %v8295_v53 = vld [vmem:[%s9364_s8 + $0xa0] ss:$16 sps:$4 sm:$0xff]  }
 0x2be   :  { %v333_v60 = vsel %vm332_vm6, %v313_v57, %v6594_v55  ;;  %v334_v61 = vsel %vm332_vm6, %v310_v51, %v6595_v54  ;;  %v8283_v51 = vld [vmem:[%s9364_s8 + $0xa4] ss:$16 sps:$4 sm:$0xff]   ;;  %v8300_v54 = vld [vmem:[%s9364_s8 + $0xa8] ss:$16 sps:$4 sm:$0xff]   ;;  %v8319_v57 = vld [vmem:[%s9364_s8 + $0xc0] ss:$16 sps:$4 sm:$0xff]  }
 0x2bf   :  { %v6598_v56 = vpop.permute.xlu1 %6597  ;;  %v8307_v55 = vld [vmem:[%s9364_s8 + $0xc4] ss:$16 sps:$4 sm:$0xff]  }
 0x2c0   :  { %v6600_v58 = vunpack.i.h.bf16 %v6598_v56  ;;  %v6599_v59 = vunpack.i.l.bf16 %v6598_v56  ;;  %v8312_v56 = vld [vmem:[%s9364_s8 + $0xcc] ss:$16 sps:$4 sm:$0xff]  }
 0x2c2   :  { %v336_v62 = vsel %vm335_vm7, %v333_v60, %v6599_v59  ;;  %v337_v63 = vsel %vm335_vm7, %v334_v61, %v6600_v58  ;;  %v8324_v58 = vld [vmem:[%s9364_s8 + $0xc8] ss:$16 sps:$4 sm:$0xff]   ;;  %v8331_v59 = vld [vmem:[%s9364_s8 + $0xe4] ss:$16 sps:$4 sm:$0xff]   ;;  %v8336_v60 = vld [vmem:[%s9364_s8 + $0xec] ss:$16 sps:$4 sm:$0xff]  }
 0x2c3   :  { %v338_v1 = vpack.c.bf16 %v337_v63, %v336_v62  ;;  %v8343_v61 = vld [vmem:[%s9364_s8 + $0xe0] ss:$16 sps:$4 sm:$0xff]   ;;  %v8348_v62 = vld [vmem:[%s9364_s8 + $0xe8] ss:$16 sps:$4 sm:$0xff]   ;;  %v478_v63 = vlaneseq }
 0x2c5   :  { %6544 = vmatmul.mubr.msk.bf16.vlgmr.msra.gmra.mrb[0].mxu1 %vm394_vm8, %v338_v1 }
 0x2c6   :  { %582 = vmatpush1.bf16.msra.mxu1 %v6620_v0  ;;  %613 = vmatprep.mubr.bf16.mxu1 %v9389_v16  ;;  %v8392_v0 = vshrl.u32 %v478_v63, 7 }
 0x2c7   :  { %583 = vmatprep.subr.bf16.mxu1 %v6628_v2 }
 0x2c8   :  { %v8395_v1 = vsub.s32 0, %v8392_v0  ;;  %v9388_v2 = vsub.s32 2, %v8392_v0  ;;  %v9387_v5 = vsub.s32 3, %v8392_v0 }
 0x2ca   :  { %584 = vmatpush1.bf16.msra.mxu1 %v6626_v4  ;;  %v8399_v4 = vsub.s32 1, %v8392_v0  ;;  %v489_v9 = vrot.slane %v476_v3, %v9388_v2  ;;  %v493_v13 = vrot.slane %v476_v3, %v9387_v5 }
 0x2cb   :  { %585 = vmatprep.subr.bf16.mxu1 %v6634_v6 }
 0x2ce   :  { %586 = vmatpush1.bf16.msra.mxu1 %v6632_v8  ;;  %v481_v8 = vrot.slane %v476_v3, %v8395_v1 }
 0x2cf   :  { %587 = vmatprep.subr.bf16.mxu1 %v6640_v10 }
 0x2d2   :  { %588 = vmatpush1.bf16.msra.mxu1 %v6638_v12  ;;  %v485_v12 = vrot.slane %v476_v3, %v8399_v4 }
 0x2d3   :  { %859 = vmatprep.subr.bf16.mxu1 %v8157_v14 }
 0x398   :  { %v432_v18 = vpop.f32.mrb[0].mxu1 }
 0x399   :  { %v433_v19 = vadd.f32 %v6032_v17, %v432_v18  ;;  %v6545_v20 = vpop.f32.mrb[1].mxu1 }
 0x39a   :  { %v435_v22 = vpop.f32.mrb[2].mxu1 }
 0x39b   :  { %v439_v23 = vmax.f32 %v433_v19, 0.0  ;;  %v436_v24 = vadd.f32 %v6032_v17, %v435_v22  ;;  %v6546_v25 = vpop.f32.mrb[3].mxu1 }
 0x39d   :  { %v448_v26 = vmul.f32 %v6040_v21, %v439_v23  ;;  %v440_v27 = vmax.f32 %v436_v24, 0.0 }
 0x39f   :  { %v449_v29 = vmul.f32 %v6040_v21, %v440_v27  ;;  %v457_v30 = vadd.f32 %v6041_v28, %v448_v26 }
 0x3a1   :  { %v458_v31 = vadd.f32 %v6041_v28, %v449_v29 }
 0x3a3   :  { %v459_v34 = vpack.c.bf16 %v458_v31, %v457_v30 }
 0x3a5   :  { %6058 = vmatmul.mubr.msk.bf16.vlgmr.msra.gmra.mrb[4].mxu1 %vm335_vm7, %v459_v34  ;;  %6059 = vmatmul.mubr.msk.bf16.vlgmr.msra.gmra.mrb[4].mxu0 %vm335_vm7, %v459_v34 }
 0x3a6   :  { %860 = vmatpush1.bf16.msra.mxu1 %v8173_v32  ;;  %901 = vmatpush1.bf16.msra.mxu0 %v8178_v33 }
 0x3a7   :  { %861 = vmatprep.subr.bf16.mxu1 %v8183_v35  ;;  %902 = vmatprep.subr.bf16.mxu0 %v8188_v36 }
 0x3a8   :  { %891 = vmatprep.mubr.bf16.mxu1 %v9389_v16  ;;  %932 = vmatprep.mubr.bf16.mxu0 %v9389_v16 }
 0x3aa   :  { %862 = vmatpush1.bf16.msra.mxu1 %v8197_v37  ;;  %903 = vmatpush1.bf16.msra.mxu0 %v8202_v38 }
 0x3ab   :  { %863 = vmatprep.subr.bf16.mxu1 %v8209_v39  ;;  %904 = vmatprep.subr.bf16.mxu0 %v8214_v40 }
 0x3ae   :  { %864 = vmatpush1.bf16.msra.mxu1 %v8223_v41  ;;  %905 = vmatpush1.bf16.msra.mxu0 %v8228_v42 }
 0x3af   :  { %865 = vmatprep.subr.bf16.mxu1 %v8235_v43  ;;  %906 = vmatprep.subr.bf16.mxu0 %v8240_v44 }
 0x3b2   :  { %866 = vmatpush1.bf16.msra.mxu1 %v8247_v45  ;;  %907 = vmatpush1.bf16.msra.mxu0 %v8252_v46 }
 0x3b3   :  { %867 = vmatprep.subr.bf16.mxu1 %v8259_v47  ;;  %908 = vmatprep.subr.bf16.mxu0 %v8264_v48 }
 0x3b6   :  { %868 = vmatpush1.bf16.msra.mxu1 %v8271_v49  ;;  %909 = vmatpush1.bf16.msra.mxu0 %v8276_v50 }
 0x3b7   :  { %869 = vmatprep.subr.bf16.mxu1 %v8283_v51  ;;  %910 = vmatprep.subr.bf16.mxu0 %v8288_v52 }
 0x3ba   :  { %870 = vmatpush1.bf16.msra.mxu1 %v8295_v53  ;;  %911 = vmatpush1.bf16.msra.mxu0 %v8300_v54 }
 0x3bb   :  { %871 = vmatprep.subr.bf16.mxu1 %v8307_v55  ;;  %912 = vmatprep.subr.bf16.mxu0 %v8312_v56 }
 0x3be   :  { %872 = vmatpush1.bf16.msra.mxu1 %v8319_v57  ;;  %913 = vmatpush1.bf16.msra.mxu0 %v8324_v58 }
 0x3bf   :  { %873 = vmatprep.subr.bf16.mxu1 %v8331_v59  ;;  %914 = vmatprep.subr.bf16.mxu0 %v8336_v60 }
 0x3c2   :  { %874 = vmatpush1.bf16.msra.mxu1 %v8343_v61  ;;  %915 = vmatpush1.bf16.msra.mxu0 %v8348_v62 }
 0x3c3   :  { %970 = vmatprep.subr.bf16.mxu1 %v8157_v14  ;;  %1011 = vmatprep.subr.bf16.mxu0 %v8162_v15 }
 0x3c5   :  { %892 = vmatmul.mubr.bf16.vlgmr.msra.gmra.mrb[8].mxu1 %v9389_v16  ;;  %933 = vmatmul.mubr.bf16.vlgmr.msra.gmra.mrb[8].mxu0 %v9389_v16 }
 0x3c6   :  { %971 = vmatpush1.bf16.msra.mxu1 %v8173_v32  ;;  %1012 = vmatpush1.bf16.msra.mxu0 %v8178_v33 }
 0x3c7   :  { %972 = vmatprep.subr.bf16.mxu1 %v8183_v35  ;;  %1013 = vmatprep.subr.bf16.mxu0 %v8188_v36 }
 0x3c8   :  { %1002 = vmatprep.mubr.bf16.mxu1 %v9389_v16  ;;  %1043 = vmatprep.mubr.bf16.mxu0 %v9389_v16 }
 0x3ca   :  { %973 = vmatpush1.bf16.msra.mxu1 %v8197_v37  ;;  %1014 = vmatpush1.bf16.msra.mxu0 %v8202_v38 }
 0x3cb   :  { %974 = vmatprep.subr.bf16.mxu1 %v8209_v39  ;;  %1015 = vmatprep.subr.bf16.mxu0 %v8214_v40 }
 0x3ce   :  { %975 = vmatpush1.bf16.msra.mxu1 %v8223_v41  ;;  %1016 = vmatpush1.bf16.msra.mxu0 %v8228_v42 }
 0x3cf   :  { %976 = vmatprep.subr.bf16.mxu1 %v8235_v43  ;;  %1017 = vmatprep.subr.bf16.mxu0 %v8240_v44 }
 0x3d2   :  { %977 = vmatpush1.bf16.msra.mxu1 %v8247_v45  ;;  %1018 = vmatpush1.bf16.msra.mxu0 %v8252_v46 }
 0x3d3   :  { %978 = vmatprep.subr.bf16.mxu1 %v8259_v47  ;;  %1019 = vmatprep.subr.bf16.mxu0 %v8264_v48 }
 0x3d6   :  { %979 = vmatpush1.bf16.msra.mxu1 %v8271_v49  ;;  %1020 = vmatpush1.bf16.msra.mxu0 %v8276_v50 }
 0x3d7   :  { %980 = vmatprep.subr.bf16.mxu1 %v8283_v51  ;;  %1021 = vmatprep.subr.bf16.mxu0 %v8288_v52 }
 0x3da   :  { %981 = vmatpush1.bf16.msra.mxu1 %v8295_v53  ;;  %1022 = vmatpush1.bf16.msra.mxu0 %v8300_v54 }
 0x3db   :  { %982 = vmatprep.subr.bf16.mxu1 %v8307_v55  ;;  %1023 = vmatprep.subr.bf16.mxu0 %v8312_v56 }
 0x3de   :  { %983 = vmatpush1.bf16.msra.mxu1 %v8319_v57  ;;  %1024 = vmatpush1.bf16.msra.mxu0 %v8324_v58 }
 0x3df   :  { %984 = vmatprep.subr.bf16.mxu1 %v8331_v59  ;;  %1025 = vmatprep.subr.bf16.mxu0 %v8336_v60 }
 0x3e2   :  { %985 = vmatpush1.bf16.msra.mxu1 %v8343_v61  ;;  %1026 = vmatpush1.bf16.msra.mxu0 %v8348_v62 }
 0x3e3   :  { %1099 = vmatprep.subr.bf16.mxu1 %v8157_v14  ;;  %1140 = vmatprep.subr.bf16.mxu0 %v8162_v15 }
 0x478   :  { %v615_v6 = vpop.f32.mrb[4].mxu1  ;;  %v658_v7 = vpop.f32.mrb[4].mxu0 }
 0x479   :  { %v617_v10 = vpop.f32.mrb[5].mxu1  ;;  %v660_v11 = vpop.f32.mrb[5].mxu0  ;;  %v8416_v25 = vadd.f32 %v615_v6, %v481_v8 }
 0x47a   :  { %v619_v17 = vpop.f32.mrb[6].mxu1  ;;  %v662_v18 = vpop.f32.mrb[6].mxu0  ;;  %v8418_v26 = vadd.f32 %v617_v10, %v485_v12 }
 0x47b   :  { %v8408_v19 = vadd.f32 %v619_v17, %v481_v8  ;;  %v8410_v20 = vadd.f32 %v662_v18, %v489_v9  ;;  %v621_v21 = vpop.f32.mrb[7].mxu1  ;;  %v664_v22 = vpop.f32.mrb[7].mxu0  ;;  %v8425_v8 = vadd.f32 %v658_v7, %v489_v9 }
 0x47c   :  { %v8412_v23 = vadd.f32 %v621_v21, %v485_v12  ;;  %v8414_v24 = vadd.f32 %v664_v22, %v493_v13  ;;  %v8422_v22 = vadd.f32 %v660_v11, %v493_v13 }
 0x498   :  { %v893_v27 = vpop.f32.mrb[8].mxu1  ;;  %v934_v28 = vpop.f32.mrb[8].mxu0 }
 0x499   :  { %v941_v29 = vadd.f32 %v893_v27, %v8416_v25  ;;  %v895_v30 = vpop.f32.mrb[9].mxu1  ;;  %v936_v31 = vpop.f32.mrb[9].mxu0  ;;  %v943_v12 = vadd.f32 %v934_v28, %v8425_v8 }
 0x49a   :  { %v942_v34 = vadd.f32 %v895_v30, %v8418_v26  ;;  %v897_v63 = vpop.f32.mrb[10].mxu1  ;;  %v938_v3 = vpop.f32.mrb[10].mxu0  ;;  %v944_v6 = vadd.f32 %v936_v31, %v8422_v22 }
 0x49b   :  { %v6092_v17 = vmul.f32 -1.442695, %v941_v29  ;;  %v898_v18 = vpop.f32.mrb[11].mxu1  ;;  %v939_v21 = vpop.f32.mrb[11].mxu0 }
 0x49c   :  { %v6093_v5 = vmul.f32 -1.442695, %v942_v34  ;;  %v6094_v10 = vmul.f32 -1.442695, %v944_v6 }
 0x49d   :  { %7190 = vpow2.f32 %v6092_v17 }
 0x49e   :  { %7192 = vpow2.f32 %v6093_v5 }
 0x49f   :  { %7194 = vpow2.f32 %v6094_v10 }
 0x4a0   :  { %7196 = vtanh.f32 %v943_v12 }
 0x4a7   :  { %v7191_v27 = vpop.eup %7190 }
 0x4a8   :  { %v7193_v2 = vpop.eup %7192  ;;  %v948_v30 = vadd.f32 1.0, %v7191_v27 }
 0x4a9   :  { %v954_v29 = vadd.f32 1.0, %v7193_v2  ;;  %v7195_v34 = vpop.eup %7194 }
 0x4aa   :  { %7198 = vrcp.f32 %v948_v30  ;;  %v7197_v63 = vpop.eup %7196  ;;  %v961_v3 = vadd.f32 1.0, %v7195_v34 }
 0x4ab   :  { %7200 = vrcp.f32 %v954_v29 }
 0x4ac   :  { %7202 = vrcp.f32 %v961_v3 }
 0x4b4   :  { %v7199_v11 = vpop.eup %7198 }
 0x4b5   :  { %v7201_v13 = vpop.eup %7200  ;;  %v965_v5 = vmul.f32 %v7199_v11, %v7197_v63 }
 0x4b6   :  { %v964_v31 = vmul.f32 0.0, %v7201_v13  ;;  %v7203_v9 = vpop.eup %7202 }
 0x4b8   :  { %v8428_v7 = vadd.f32 %v965_v5, %v964_v31 }
 0x4ba   :  { %7204 = vtanh.f32 %v8428_v7 }
 0x4c4   :  { %v7205_v28 = vpop.eup %7204 }
 0x4c5   :  { %v8431_v17 = vmul.f32 %v7205_v28, %v7203_v9 }
 0x4c7   :  { %v969_v2 = vpack.c.bf16 %v8431_v17, %v8431_v17 }
 0x4c9   :  { %1003 = vmatmul.mubr.bf16.vlgmr.msra.gmra.mrb[12].mxu1 %v969_v2  ;;  %1044 = vmatmul.mubr.bf16.vlgmr.msra.gmra.mrb[12].mxu0 %v969_v2 }
 0x4ca   :  { %1100 = vmatpush1.bf16.msra.mxu1 %v8173_v32  ;;  %1141 = vmatpush1.bf16.msra.mxu0 %v8178_v33 }
 0x4cb   :  { %1101 = vmatprep.subr.bf16.mxu1 %v8183_v35  ;;  %1142 = vmatprep.subr.bf16.mxu0 %v8188_v36 }
 0x4cc   :  { %1131 = vmatprep.mubr.bf16.mxu1 %v9389_v16  ;;  %1172 = vmatprep.mubr.bf16.mxu0 %v9389_v16 }
 0x4ce   :  { %1102 = vmatpush1.bf16.msra.mxu1 %v8197_v37  ;;  %1143 = vmatpush1.bf16.msra.mxu0 %v8202_v38 }
 0x4cf   :  { %1103 = vmatprep.subr.bf16.mxu1 %v8209_v39  ;;  %1144 = vmatprep.subr.bf16.mxu0 %v8214_v40 }
 0x4d2   :  { %1104 = vmatpush1.bf16.msra.mxu1 %v8223_v41  ;;  %1145 = vmatpush1.bf16.msra.mxu0 %v8228_v42 }
 0x4d3   :  { %1105 = vmatprep.subr.bf16.mxu1 %v8235_v43  ;;  %1146 = vmatprep.subr.bf16.mxu0 %v8240_v44 }
 0x4d6   :  { %1106 = vmatpush1.bf16.msra.mxu1 %v8247_v45  ;;  %1147 = vmatpush1.bf16.msra.mxu0 %v8252_v46 }
 0x4d7   :  { %1107 = vmatprep.subr.bf16.mxu1 %v8259_v47  ;;  %1148 = vmatprep.subr.bf16.mxu0 %v8264_v48 }
 0x4da   :  { %1108 = vmatpush1.bf16.msra.mxu1 %v8271_v49  ;;  %1149 = vmatpush1.bf16.msra.mxu0 %v8276_v50 }
 0x4db   :  { %1109 = vmatprep.subr.bf16.mxu1 %v8283_v51  ;;  %1150 = vmatprep.subr.bf16.mxu0 %v8288_v52 }
 0x4de   :  { %1110 = vmatpush1.bf16.msra.mxu1 %v8295_v53  ;;  %1151 = vmatpush1.bf16.msra.mxu0 %v8300_v54 }
 0x4df   :  { %1111 = vmatprep.subr.bf16.mxu1 %v8307_v55  ;;  %1152 = vmatprep.subr.bf16.mxu0 %v8312_v56 }
 0x4e2   :  { %1112 = vmatpush1.bf16.msra.mxu1 %v8319_v57  ;;  %1153 = vmatpush1.bf16.msra.mxu0 %v8324_v58 }
 0x4e3   :  { %1113 = vmatprep.subr.bf16.mxu1 %v8331_v59  ;;  %1154 = vmatprep.subr.bf16.mxu0 %v8336_v60 }
 0x4e6   :  { %1114 = vmatpush1.bf16.msra.mxu1 %v8343_v61  ;;  %1155 = vmatpush1.bf16.msra.mxu0 %v8348_v62 }
 0x4e7   :  { %1228 = vmatprep.subr.bf16.mxu1 %v8157_v14  ;;  %1269 = vmatprep.subr.bf16.mxu0 %v8162_v15 }
 0x59c   :  { %v1004_v18 = vpop.f32.mrb[12].mxu1  ;;  %v1045_v21 = vpop.f32.mrb[12].mxu0 }
 0x59d   :  { %v1056_v6 = vrot.slane %v1004_v18, 6  ;;  %v1006_v10 = vpop.f32.mrb[13].mxu1  ;;  %v1047_v12 = vpop.f32.mrb[13].mxu0  ;;  %v1058_v28 = vrot.slane %v1045_v21, 6 }
 0x59e   :  { %v1057_v27 = vrot.slane %v1006_v10, 6  ;;  %v1008_v30 = vpop.f32.mrb[14].mxu1  ;;  %v1049_v29 = vpop.f32.mrb[14].mxu0  ;;  %v1059_v31 = vrot.slane %v1047_v12, 6  ;;  %v1088_v12 = vrot.slane %v8428_v7, 6 }
 0x59f   :  { %v1064_v34 = vadd.f32 %v1056_v6, %v8416_v25  ;;  %v1009_v63 = vpop.f32.mrb[15].mxu1  ;;  %v1050_v11 = vpop.f32.mrb[15].mxu0  ;;  %v1066_v18 = vadd.f32 %v1058_v28, %v8425_v8 }
 0x5a0   :  { %v1065_v13 = vadd.f32 %v1057_v27, %v8418_v26  ;;  %v1067_v9 = vadd.f32 %v1059_v31, %v8422_v22 }
 0x5a1   :  { %v6095_v5 = vmul.f32 -1.442695, %v1064_v34 }
 0x5a2   :  { %v6096_v3 = vmul.f32 -1.442695, %v1065_v13  ;;  %v6097_v2 = vmul.f32 -1.442695, %v1067_v9 }
 0x5a3   :  { %7206 = vpow2.f32 %v6095_v5 }
 0x5a4   :  { %7208 = vpow2.f32 %v6096_v3 }
 0x5a5   :  { %7210 = vpow2.f32 %v6097_v2 }
 0x5a6   :  { %7212 = vtanh.f32 %v1066_v18 }
 0x5ad   :  { %v7207_v10 = vpop.eup %7206 }
 0x5ae   :  { %v7209_v30 = vpop.eup %7208  ;;  %v1071_v29 = vadd.f32 1.0, %v7207_v10 }
 0x5af   :  { %v1077_v6 = vadd.f32 1.0, %v7209_v30  ;;  %v7211_v27 = vpop.eup %7210 }
 0x5b0   :  { %7214 = vrcp.f32 %v1071_v29  ;;  %v7213_v34 = vpop.eup %7212  ;;  %v1084_v5 = vadd.f32 1.0, %v7211_v27 }
 0x5b1   :  { %7216 = vrcp.f32 %v1077_v6 }
 0x5b2   :  { %7218 = vrcp.f32 %v1084_v5 }
 0x5ba   :  { %v7215_v63 = vpop.eup %7214 }
 0x5bb   :  { %v7217_v11 = vpop.eup %7216  ;;  %v1091_v13 = vmul.f32 %v7215_v63, %v7213_v34 }
 0x5bc   :  { %v1090_v21 = vmul.f32 %v7217_v11, %v1088_v12  ;;  %v7219_v31 = vpop.eup %7218 }
 0x5be   :  { %v8474_v3 = vadd.f32 %v1091_v13, %v1090_v21 }
 0x5c0   :  { %7220 = vtanh.f32 %v8474_v3 }
 0x5ca   :  { %v7221_v9 = vpop.eup %7220 }
 0x5cb   :  { %v8477_v28 = vmul.f32 %v7221_v9, %v7219_v31 }
 0x5cd   :  { %v1095_v2 = vpack.c.bf16 %v8477_v28, %v8477_v28 }
 0x5cf   :  { %v1097_v18 = vrot.slane %v1095_v2, 1 }
 0x5d1   :  { %1132 = vmatmul.mubr.bf16.vlgmr.msra.gmra.mrb[16].mxu1 %v1097_v18  ;;  %1173 = vmatmul.mubr.bf16.vlgmr.msra.gmra.mrb[16].mxu0 %v1097_v18 }
 0x5d2   :  { %1229 = vmatpush1.bf16.msra.mxu1 %v8173_v32  ;;  %1270 = vmatpush1.bf16.msra.mxu0 %v8178_v33 }
 0x5d3   :  { %1230 = vmatprep.subr.bf16.mxu1 %v8183_v35  ;;  %1271 = vmatprep.subr.bf16.mxu0 %v8188_v36 }
 0x5d4   :  { %1260 = vmatprep.mubr.bf16.mxu1 %v9389_v16  ;;  %1301 = vmatprep.mubr.bf16.mxu0 %v9389_v16 }
 0x5d6   :  { %1231 = vmatpush1.bf16.msra.mxu1 %v8197_v37  ;;  %1272 = vmatpush1.bf16.msra.mxu0 %v8202_v38 }
 0x5d7   :  { %1232 = vmatprep.subr.bf16.mxu1 %v8209_v39  ;;  %1273 = vmatprep.subr.bf16.mxu0 %v8214_v40 }
 0x5da   :  { %1233 = vmatpush1.bf16.msra.mxu1 %v8223_v41  ;;  %1274 = vmatpush1.bf16.msra.mxu0 %v8228_v42 }
 0x5db   :  { %1234 = vmatprep.subr.bf16.mxu1 %v8235_v43  ;;  %1275 = vmatprep.subr.bf16.mxu0 %v8240_v44 }
 0x5de   :  { %1235 = vmatpush1.bf16.msra.mxu1 %v8247_v45  ;;  %1276 = vmatpush1.bf16.msra.mxu0 %v8252_v46 }
 0x5df   :  { %1236 = vmatprep.subr.bf16.mxu1 %v8259_v47  ;;  %1277 = vmatprep.subr.bf16.mxu0 %v8264_v48 }
 0x5e2   :  { %1237 = vmatpush1.bf16.msra.mxu1 %v8271_v49  ;;  %1278 = vmatpush1.bf16.msra.mxu0 %v8276_v50 }
 0x5e3   :  { %1238 = vmatprep.subr.bf16.mxu1 %v8283_v51  ;;  %1279 = vmatprep.subr.bf16.mxu0 %v8288_v52 }
 0x5e6   :  { %1239 = vmatpush1.bf16.msra.mxu1 %v8295_v53  ;;  %1280 = vmatpush1.bf16.msra.mxu0 %v8300_v54 }
 0x5e7   :  { %1240 = vmatprep.subr.bf16.mxu1 %v8307_v55  ;;  %1281 = vmatprep.subr.bf16.mxu0 %v8312_v56 }
 0x5ea   :  { %1241 = vmatpush1.bf16.msra.mxu1 %v8319_v57  ;;  %1282 = vmatpush1.bf16.msra.mxu0 %v8324_v58 }
 0x5eb   :  { %1242 = vmatprep.subr.bf16.mxu1 %v8331_v59  ;;  %1283 = vmatprep.subr.bf16.mxu0 %v8336_v60 }
 0x5ee   :  { %1243 = vmatpush1.bf16.msra.mxu1 %v8343_v61  ;;  %1284 = vmatpush1.bf16.msra.mxu0 %v8348_v62 }
 0x5ef   :  { %1357 = vmatprep.subr.bf16.mxu1 %v8157_v14  ;;  %1398 = vmatprep.subr.bf16.mxu0 %v8162_v15 }
 0x6a4   :  { %v1133_v7 = vpop.f32.mrb[16].mxu1  ;;  %v1174_v10 = vpop.f32.mrb[16].mxu0 }
 0x6a5   :  { %v1185_v30 = vrot.slane %v1133_v7, 4  ;;  %v1135_v29 = vpop.f32.mrb[17].mxu1  ;;  %v1176_v6 = vpop.f32.mrb[17].mxu0  ;;  %v1187_v18 = vrot.slane %v1174_v10, 4 }
 0x6a6   :  { %v1186_v27 = vrot.slane %v1135_v29, 4  ;;  %v1137_v34 = vpop.f32.mrb[18].mxu1  ;;  %v1178_v63 = vpop.f32.mrb[18].mxu0  ;;  %v1188_v9 = vrot.slane %v1176_v6, 4  ;;  %v1217_v6 = vrot.slane %v8474_v3, 6 }
 0x6a7   :  { %v1193_v12 = vadd.f32 %v1185_v30, %v8416_v25  ;;  %v1138_v11 = vpop.f32.mrb[19].mxu1  ;;  %v1179_v13 = vpop.f32.mrb[19].mxu0  ;;  %v1195_v16 = vadd.f32 %v1187_v18, %v8425_v8  ;;  %v1854_v18 = vsel %vm209_vm1, %v8431_v17, %v8477_v28 }
 0x6a8   :  { %v1194_v5 = vadd.f32 %v1186_v27, %v8418_v26  ;;  %v1196_v2 = vadd.f32 %v1188_v9, %v8422_v22 }
 0x6a9   :  { %v6098_v21 = vmul.f32 -1.442695, %v1193_v12 }
 0x6aa   :  { %v6099_v31 = vmul.f32 -1.442695, %v1194_v5  ;;  %v6100_v7 = vmul.f32 -1.442695, %v1196_v2 }
 0x6ab   :  { %7222 = vpow2.f32 %v6098_v21 }
 0x6ac   :  { %7224 = vpow2.f32 %v6099_v31 }
 0x6ad   :  { %7226 = vpow2.f32 %v6100_v7 }
 0x6ae   :  { %7228 = vtanh.f32 %v1195_v16 }
 0x6b5   :  { %v7223_v29 = vpop.eup %7222 }
 0x6b6   :  { %v7225_v34 = vpop.eup %7224  ;;  %v1200_v63 = vadd.f32 1.0, %v7223_v29 }
 0x6b7   :  { %v1206_v30 = vadd.f32 1.0, %v7225_v34  ;;  %v7227_v27 = vpop.eup %7226  ;;  %v9406_v34 = vmov 0  }
 0x6b8   :  { %7230 = vrcp.f32 %v1200_v63  ;;  %v7229_v12 = vpop.eup %7228  ;;  %v1213_v21 = vadd.f32 1.0, %v7227_v27 }
 0x6b9   :  { %7232 = vrcp.f32 %v1206_v30 }
 0x6ba   :  { %7234 = vrcp.f32 %v1213_v21 }
 0x6c2   :  { %v7231_v11 = vpop.eup %7230 }
 0x6c3   :  { %v7233_v13 = vpop.eup %7232  ;;  %v1220_v5 = vmul.f32 %v7231_v11, %v7229_v12 }
 0x6c4   :  { %v1219_v10 = vmul.f32 %v7233_v13, %v1217_v6  ;;  %v7235_v9 = vpop.eup %7234 }
 0x6c6   :  { %v8520_v31 = vadd.f32 %v1220_v5, %v1219_v10 }
 0x6c8   :  { %7236 = vtanh.f32 %v8520_v31 }
 0x6d2   :  { %v7237_v2 = vpop.eup %7236 }
 0x6d3   :  { %v1223_v16 = vmul.f32 %v7237_v2, %v7235_v9 }
 0x6d5   :  { %v1224_v7 = vpack.c.bf16 %v1223_v16, %v1223_v16  ;;  %v8527_v3 = vsel %vm1855_vm9, %v1854_v18, %v1223_v16 }
 0x6d7   :  { %v1226_v29 = vrot.slane %v1224_v7, 2 }
 0x6d9   :  { %1261 = vmatmul.mubr.bf16.vlgmr.msra.gmra.mrb[20].mxu1 %v1226_v29  ;;  %1302 = vmatmul.mubr.bf16.vlgmr.msra.gmra.mrb[20].mxu0 %v1226_v29 }
 0x6da   :  { %1358 = vmatpush1.bf16.msra.mxu1 %v8173_v32  ;;  %1399 = vmatpush1.bf16.msra.mxu0 %v8178_v33 }
 0x6db   :  { %1359 = vmatprep.subr.bf16.mxu1 %v8183_v35  ;;  %1400 = vmatprep.subr.bf16.mxu0 %v8188_v36 }
 0x6dc   :  { %1389 = vmatprep.mubr.bf16.mxu1 %v9406_v34  ;;  %1430 = vmatprep.mubr.bf16.mxu0 %v9406_v34 }
 0x6de   :  { %1360 = vmatpush1.bf16.msra.mxu1 %v8197_v37  ;;  %1401 = vmatpush1.bf16.msra.mxu0 %v8202_v38 }
 0x6df   :  { %1361 = vmatprep.subr.bf16.mxu1 %v8209_v39  ;;  %1402 = vmatprep.subr.bf16.mxu0 %v8214_v40 }
 0x6e2   :  { %1362 = vmatpush1.bf16.msra.mxu1 %v8223_v41  ;;  %1403 = vmatpush1.bf16.msra.mxu0 %v8228_v42 }
 0x6e3   :  { %1363 = vmatprep.subr.bf16.mxu1 %v8235_v43  ;;  %1404 = vmatprep.subr.bf16.mxu0 %v8240_v44 }
 0x6e6   :  { %1364 = vmatpush1.bf16.msra.mxu1 %v8247_v45  ;;  %1405 = vmatpush1.bf16.msra.mxu0 %v8252_v46 }
 0x6e7   :  { %1365 = vmatprep.subr.bf16.mxu1 %v8259_v47  ;;  %1406 = vmatprep.subr.bf16.mxu0 %v8264_v48 }
 0x6ea   :  { %1366 = vmatpush1.bf16.msra.mxu1 %v8271_v49  ;;  %1407 = vmatpush1.bf16.msra.mxu0 %v8276_v50 }
 0x6eb   :  { %1367 = vmatprep.subr.bf16.mxu1 %v8283_v51  ;;  %1408 = vmatprep.subr.bf16.mxu0 %v8288_v52 }
 0x6ee   :  { %1368 = vmatpush1.bf16.msra.mxu1 %v8295_v53  ;;  %1409 = vmatpush1.bf16.msra.mxu0 %v8300_v54 }
 0x6ef   :  { %1369 = vmatprep.subr.bf16.mxu1 %v8307_v55  ;;  %1410 = vmatprep.subr.bf16.mxu0 %v8312_v56 }
 0x6f2   :  { %1370 = vmatpush1.bf16.msra.mxu1 %v8319_v57  ;;  %1411 = vmatpush1.bf16.msra.mxu0 %v8324_v58 }
 0x6f3   :  { %1371 = vmatprep.subr.bf16.mxu1 %v8331_v59  ;;  %1412 = vmatprep.subr.bf16.mxu0 %v8336_v60 }
 0x6f6   :  { %1372 = vmatpush1.bf16.msra.mxu1 %v8343_v61  ;;  %1413 = vmatpush1.bf16.msra.mxu0 %v8348_v62 }
 0x6f7   :  { %1471 = vmatprep.subr.bf16.mxu1 %v8157_v14  ;;  %1512 = vmatprep.subr.bf16.mxu0 %v8162_v15 }
 0x7ac   :  { %v1262_v17 = vpop.f32.mrb[20].mxu1  ;;  %v1303_v28 = vpop.f32.mrb[20].mxu0 }
 0x7ad   :  { %v1314_v63 = vrot.slane %v1262_v17, 2  ;;  %v1264_v30 = vpop.f32.mrb[21].mxu1  ;;  %v1305_v27 = vpop.f32.mrb[21].mxu0  ;;  %v1316_v7 = vrot.slane %v1303_v28, 2 }
 0x7ae   :  { %v1315_v12 = vrot.slane %v1264_v30, 2  ;;  %v1266_v11 = vpop.f32.mrb[22].mxu1  ;;  %v1307_v6 = vpop.f32.mrb[22].mxu0  ;;  %v1317_v16 = vrot.slane %v1305_v27, 2  ;;  %v1346_v27 = vrot.slane %v8520_v31, 6 }
 0x7af   :  { %v1322_v13 = vadd.f32 %v1314_v63, %v8416_v25  ;;  %v1267_v5 = vpop.f32.mrb[23].mxu1  ;;  %v1308_v21 = vpop.f32.mrb[23].mxu0  ;;  %v1324_v17 = vadd.f32 %v1316_v7, %v8425_v8 }
 0x7b0   :  { %v1323_v10 = vadd.f32 %v1315_v12, %v8418_v26  ;;  %v1325_v18 = vadd.f32 %v1317_v16, %v8422_v22 }
 0x7b1   :  { %v6101_v9 = vmul.f32 -1.442695, %v1322_v13 }
 0x7b2   :  { %v6102_v2 = vmul.f32 -1.442695, %v1323_v10  ;;  %v6103_v29 = vmul.f32 -1.442695, %v1325_v18 }
 0x7b3   :  { %7238 = vpow2.f32 %v6101_v9 }
 0x7b4   :  { %7240 = vpow2.f32 %v6102_v2 }
 0x7b5   :  { %7242 = vpow2.f32 %v6103_v29 }
 0x7b6   :  { %7244 = vtanh.f32 %v1324_v17 }
 0x7bd   :  { %v7239_v30 = vpop.eup %7238 }
 0x7be   :  { %v7241_v11 = vpop.eup %7240  ;;  %v1329_v6 = vadd.f32 1.0, %v7239_v30 }
 0x7bf   :  { %v1335_v25 = vadd.f32 1.0, %v7241_v11  ;;  %v7243_v26 = vpop.eup %7242 }
 0x7c0   :  { %7246 = vrcp.f32 %v1329_v6  ;;  %v7245_v63 = vpop.eup %7244  ;;  %v1342_v22 = vadd.f32 1.0, %v7243_v26 }
 0x7c1   :  { %7248 = vrcp.f32 %v1335_v25 }
 0x7c2   :  { %7250 = vrcp.f32 %v1342_v22 }
 0x7ca   :  { %v7247_v12 = vpop.eup %7246 }
 0x7cb   :  { %v7249_v13 = vpop.eup %7248  ;;  %v1349_v5 = vmul.f32 %v7247_v12, %v7245_v63 }
 0x7cc   :  { %v1348_v28 = vmul.f32 %v7249_v13, %v1346_v27  ;;  %v7251_v8 = vpop.eup %7250 }
 0x7ce   :  { %v8568_v21 = vadd.f32 %v1349_v5, %v1348_v28 }
 0x7d0   :  { %7252 = vtanh.f32 %v8568_v21 }
 0x7da   :  { %v7253_v10 = vpop.eup %7252 }
 0x7db   :  { %v1352_v9 = vmul.f32 %v7253_v10, %v7251_v8 }
 0x7dd   :  { %v1353_v2 = vpack.c.bf16 %v1352_v9, %v1352_v9  ;;  %v8573_v16 = vsel %vm216_vm2, %v8527_v3, %v1352_v9 }
 0x7df   :  { %v1355_v18 = vrot.slane %v1353_v2, 3  ;;  %v1463_v2 = vrot.slane %v8568_v21, 6 }
 0x7e1   :  { %1390 = vmatmul.mubr.bf16.vlgmr.msra.gmra.mrb[24].mxu1 %v1355_v18  ;;  %1431 = vmatmul.mubr.bf16.vlgmr.msra.gmra.mrb[24].mxu0 %v1355_v18 }
 0x7e2   :  { %1472 = vmatpush1.bf16.msra.mxu1 %v8173_v32  ;;  %1513 = vmatpush1.bf16.msra.mxu0 %v8178_v33 }
 0x7e3   :  { %1473 = vmatprep.subr.bf16.mxu1 %v8183_v35  ;;  %1514 = vmatprep.subr.bf16.mxu0 %v8188_v36 }
 0x7e4   :  { %1503 = vmatprep.mubr.bf16.mxu1 %v9406_v34  ;;  %1544 = vmatprep.mubr.bf16.mxu0 %v9406_v34 }
 0x7e6   :  { %1474 = vmatpush1.bf16.msra.mxu1 %v8197_v37  ;;  %1515 = vmatpush1.bf16.msra.mxu0 %v8202_v38 }
 0x7e7   :  { %1475 = vmatprep.subr.bf16.mxu1 %v8209_v39  ;;  %1516 = vmatprep.subr.bf16.mxu0 %v8214_v40 }
 0x7ea   :  { %1476 = vmatpush1.bf16.msra.mxu1 %v8223_v41  ;;  %1517 = vmatpush1.bf16.msra.mxu0 %v8228_v42 }
 0x7eb   :  { %1477 = vmatprep.subr.bf16.mxu1 %v8235_v43  ;;  %1518 = vmatprep.subr.bf16.mxu0 %v8240_v44 }
 0x7ee   :  { %1478 = vmatpush1.bf16.msra.mxu1 %v8247_v45  ;;  %1519 = vmatpush1.bf16.msra.mxu0 %v8252_v46 }
 0x7ef   :  { %1479 = vmatprep.subr.bf16.mxu1 %v8259_v47  ;;  %1520 = vmatprep.subr.bf16.mxu0 %v8264_v48 }
 0x7f2   :  { %1480 = vmatpush1.bf16.msra.mxu1 %v8271_v49  ;;  %1521 = vmatpush1.bf16.msra.mxu0 %v8276_v50 }
 0x7f3   :  { %1481 = vmatprep.subr.bf16.mxu1 %v8283_v51  ;;  %1522 = vmatprep.subr.bf16.mxu0 %v8288_v52 }
 0x7f6   :  { %1482 = vmatpush1.bf16.msra.mxu1 %v8295_v53  ;;  %1523 = vmatpush1.bf16.msra.mxu0 %v8300_v54 }
 0x7f7   :  { %1483 = vmatprep.subr.bf16.mxu1 %v8307_v55  ;;  %1524 = vmatprep.subr.bf16.mxu0 %v8312_v56 }
 0x7fa   :  { %1484 = vmatpush1.bf16.msra.mxu1 %v8319_v57  ;;  %1525 = vmatpush1.bf16.msra.mxu0 %v8324_v58 }
 0x7fb   :  { %1485 = vmatprep.subr.bf16.mxu1 %v8331_v59  ;;  %1526 = vmatprep.subr.bf16.mxu0 %v8336_v60 }
 0x7fe   :  { %1486 = vmatpush1.bf16.msra.mxu1 %v8343_v61  ;;  %1527 = vmatpush1.bf16.msra.mxu0 %v8348_v62 }
 0x7ff   :  { %1600 = vmatprep.subr.bf16.mxu1 %v8157_v14  ;;  %1641 = vmatprep.subr.bf16.mxu0 %v8162_v15 }
 0x8b4   :  { %v1391_v31 = vpop.f32.mrb[24].mxu1  ;;  %v1432_v3 = vpop.f32.mrb[24].mxu0 }
 0x8b5   :  { %v1439_v7 = vadd.f32 %v1391_v31, %v8408_v19  ;;  %v1393_v29 = vpop.f32.mrb[25].mxu1  ;;  %v1434_v17 = vpop.f32.mrb[25].mxu0  ;;  %v1441_v15 = vadd.f32 %v1432_v3, %v8410_v20 }
 0x8b6   :  { %v1440_v30 = vadd.f32 %v1393_v29, %v8412_v23  ;;  %v1395_v11 = vpop.f32.mrb[26].mxu1  ;;  %v1436_v6 = vpop.f32.mrb[26].mxu0  ;;  %v1442_v14 = vadd.f32 %v1434_v17, %v8414_v24 }
 0x8b7   :  { %v6104_v25 = vmul.f32 -1.442695, %v1439_v7  ;;  %v1396_v26 = vpop.f32.mrb[27].mxu1  ;;  %v1437_v63 = vpop.f32.mrb[27].mxu0 }
 0x8b8   :  { %v6105_v12 = vmul.f32 -1.442695, %v1440_v30  ;;  %v6106_v27 = vmul.f32 -1.442695, %v1442_v14 }
 0x8b9   :  { %7254 = vpow2.f32 %v6104_v25 }
 0x8ba   :  { %7256 = vpow2.f32 %v6105_v12 }
 0x8bb   :  { %7258 = vpow2.f32 %v6106_v27 }
 0x8bc   :  { %7260 = vtanh.f32 %v1441_v15 }
 0x8c3   :  { %v7255_v13 = vpop.eup %7254 }
 0x8c4   :  { %v7257_v5 = vpop.eup %7256  ;;  %v1446_v22 = vadd.f32 1.0, %v7255_v13 }
 0x8c5   :  { %v1452_v28 = vadd.f32 1.0, %v7257_v5  ;;  %v7259_v8 = vpop.eup %7258  ;;  %v7452_v5 = vld [vmem:[%s9364_s8] ss:$16 sps:$4 sm:$0xff]  }
 0x8c6   :  { %7262 = vrcp.f32 %v1446_v22  ;;  %v7261_v10 = vpop.eup %7260  ;;  %v1459_v7 = vadd.f32 1.0, %v7259_v8  ;;  %v7453_v22 = vld [vmem:[%s9364_s8 + $0x8] ss:$16 sps:$4 sm:$0xff]   ;;  %v7455_v8 = vld [vmem:[%s9364_s8 + $0x2c] ss:$16 sps:$4 sm:$0xff]  }
 0x8c7   :  { %7264 = vrcp.f32 %v1452_v28  ;;  %v7454_v28 = vld [vmem:[%s9364_s8 + $0x24] ss:$16 sps:$4 sm:$0xff]  }
 0x8c8   :  { %7266 = vrcp.f32 %v1459_v7  ;;  %v7461_v7 = vld [vmem:[%s9364_s8 + $0x48] ss:$16 sps:$4 sm:$0xff]  }
 0x8d0   :  { %v7263_v9 = vpop.eup %7262 }
 0x8d1   :  { %v7265_v18 = vpop.eup %7264  ;;  %v1466_v31 = vmul.f32 %v7263_v9, %v7261_v10  ;;  %v7456_v10 = vld [vmem:[%s9364_s8 + $0x20] ss:$16 sps:$4 sm:$0xff]   ;;  %v7457_v9 = vld [vmem:[%s9364_s8 + $0x28] ss:$16 sps:$4 sm:$0xff]  }
 0x8d2   :  { %v1465_v29 = vmul.f32 %v7265_v18, %v1463_v2  ;;  %v7267_v3 = vpop.eup %7266  ;;  %v7458_v2 = vld [vmem:[%s9364_s8 + $0x44] ss:$16 sps:$4 sm:$0xff]   ;;  %v7459_v18 = vld [vmem:[%s9364_s8 + $0x4c] ss:$16 sps:$4 sm:$0xff]  }
 0x8d4   :  { %v8614_v17 = vadd.f32 %v1466_v31, %v1465_v29  ;;  %v7460_v31 = vld [vmem:[%s9364_s8 + $0x40] ss:$16 sps:$4 sm:$0xff]   ;;  %v7462_v29 = vld [vmem:[%s9364_s8 + $0x64] ss:$16 sps:$4 sm:$0xff]  }
 0x8d6   :  { %7268 = vtanh.f32 %v8614_v17 }
 0x8e0   :  { %v7269_v30 = vpop.eup %7268 }
 0x8e1   :  { %v8617_v11 = vmul.f32 %v7269_v30, %v7267_v3  ;;  %v7464_v3 = vld [vmem:[%s9364_s8 + $0x60] ss:$16 sps:$4 sm:$0xff]   ;;  %v7465_v30 = vld [vmem:[%s9364_s8 + $0x68] ss:$16 sps:$4 sm:$0xff]  }
 0x8e3   :  { %v1470_v6 = vpack.c.bf16 %v8617_v11, %v8617_v11 }
 0x8e5   :  { %1504 = vmatmul.mubr.bf16.vlgmr.msra.gmra.mrb[28].mxu1 %v1470_v6  ;;  %1545 = vmatmul.mubr.bf16.vlgmr.msra.gmra.mrb[28].mxu0 %v1470_v6  ;;  %v7466_v6 = vld [vmem:[%s9364_s8 + $0x84] ss:$16 sps:$4 sm:$0xff]  }
 0x8e6   :  { %1601 = vmatpush1.bf16.msra.mxu1 %v8173_v32  ;;  %1642 = vmatpush1.bf16.msra.mxu0 %v8178_v33  ;;  %v7450_v32 = vld [vmem:[%s9364_s8 + $0x4] ss:$16 sps:$4 sm:$0xff]   ;;  %v7451_v33 = vld [vmem:[%s9364_s8 + $0xc] ss:$16 sps:$4 sm:$0xff]  }
 0x8e7   :  { %1602 = vmatprep.subr.bf16.mxu1 %v8183_v35  ;;  %1643 = vmatprep.subr.bf16.mxu0 %v8188_v36 }
 0x8e8   :  { %1632 = vmatprep.mubr.bf16.mxu1 %v9406_v34  ;;  %1673 = vmatprep.mubr.bf16.mxu0 %v9406_v34 }
 0x8ea   :  { %1603 = vmatpush1.bf16.msra.mxu1 %v8197_v37  ;;  %1644 = vmatpush1.bf16.msra.mxu0 %v8202_v38 }
 0x8eb   :  { %1604 = vmatprep.subr.bf16.mxu1 %v8209_v39  ;;  %1645 = vmatprep.subr.bf16.mxu0 %v8214_v40 }
 0x8ee   :  { %1605 = vmatpush1.bf16.msra.mxu1 %v8223_v41  ;;  %1646 = vmatpush1.bf16.msra.mxu0 %v8228_v42 }
 0x8ef   :  { %1606 = vmatprep.subr.bf16.mxu1 %v8235_v43  ;;  %1647 = vmatprep.subr.bf16.mxu0 %v8240_v44 }
 0x8f2   :  { %1607 = vmatpush1.bf16.msra.mxu1 %v8247_v45  ;;  %1648 = vmatpush1.bf16.msra.mxu0 %v8252_v46 }
 0x8f3   :  { %1608 = vmatprep.subr.bf16.mxu1 %v8259_v47  ;;  %1649 = vmatprep.subr.bf16.mxu0 %v8264_v48 }
 0x8f6   :  { %1609 = vmatpush1.bf16.msra.mxu1 %v8271_v49  ;;  %1650 = vmatpush1.bf16.msra.mxu0 %v8276_v50 }
 0x8f7   :  { %1610 = vmatprep.subr.bf16.mxu1 %v8283_v51  ;;  %1651 = vmatprep.subr.bf16.mxu0 %v8288_v52 }
 0x8fa   :  { %1611 = vmatpush1.bf16.msra.mxu1 %v8295_v53  ;;  %1652 = vmatpush1.bf16.msra.mxu0 %v8300_v54 }
 0x8fb   :  { %1612 = vmatprep.subr.bf16.mxu1 %v8307_v55  ;;  %1653 = vmatprep.subr.bf16.mxu0 %v8312_v56 }
 0x8fe   :  { %1613 = vmatpush1.bf16.msra.mxu1 %v8319_v57  ;;  %1654 = vmatpush1.bf16.msra.mxu0 %v8324_v58 }
 0x8ff   :  { %1614 = vmatprep.subr.bf16.mxu1 %v8331_v59  ;;  %1655 = vmatprep.subr.bf16.mxu0 %v8336_v60 }
 0x902   :  { %1615 = vmatpush1.bf16.msra.mxu1 %v8343_v61  ;;  %1656 = vmatpush1.bf16.msra.mxu0 %v8348_v62  ;;  %v1589_v61 = vrot.slane %v8614_v17, 6  ;;  %v7463_v17 = vld [vmem:[%s9364_s8 + $0x6c] ss:$16 sps:$4 sm:$0xff]  }
 0x903   :  { %1729 = vmatprep.subr.bf16.mxu1 %v7450_v32  ;;  %1770 = vmatprep.subr.bf16.mxu0 %v7451_v33  ;;  %v7467_v32 = vld [vmem:[%s9364_s8 + $0x8c] ss:$16 sps:$4 sm:$0xff]   ;;  %v7468_v33 = vld [vmem:[%s9364_s8 + $0x80] ss:$16 sps:$4 sm:$0xff]  }
 0x9b8   :  { %v1505_v35 = vpop.f32.mrb[28].mxu1  ;;  %v1546_v36 = vpop.f32.mrb[28].mxu0 }
 0x9b9   :  { %v1557_v37 = vrot.slane %v1505_v35, 6  ;;  %v1507_v38 = vpop.f32.mrb[29].mxu1  ;;  %v1548_v39 = vpop.f32.mrb[29].mxu0  ;;  %v1559_v51 = vrot.slane %v1546_v36, 6  ;;  %v7469_v35 = vld [vmem:[%s9364_s8 + $0x88] ss:$16 sps:$4 sm:$0xff]  }
 0x9ba   :  { %v1558_v40 = vrot.slane %v1507_v38, 6  ;;  %v1509_v41 = vpop.f32.mrb[30].mxu1  ;;  %v1550_v42 = vpop.f32.mrb[30].mxu0  ;;  %v1560_v49 = vrot.slane %v1548_v39, 6  ;;  %v7470_v36 = vld [vmem:[%s9364_s8 + $0xa4] ss:$16 sps:$4 sm:$0xff]  }
 0x9bb   :  { %v1565_v43 = vadd.f32 %v1557_v37, %v8408_v19  ;;  %v1510_v44 = vpop.f32.mrb[31].mxu1  ;;  %v1551_v45 = vpop.f32.mrb[31].mxu0  ;;  %v1567_v53 = vadd.f32 %v1559_v51, %v8410_v20  ;;  %v7471_v37 = vld [vmem:[%s9364_s8 + $0xac] ss:$16 sps:$4 sm:$0xff]   ;;  %v7472_v38 = vld [vmem:[%s9364_s8 + $0xa0] ss:$16 sps:$4 sm:$0xff]  }
 0x9bc   :  { %v1566_v46 = vadd.f32 %v1558_v40, %v8412_v23  ;;  %v1568_v50 = vadd.f32 %v1560_v49, %v8414_v24  ;;  %v7473_v39 = vld [vmem:[%s9364_s8 + $0xa8] ss:$16 sps:$4 sm:$0xff]   ;;  %v7474_v40 = vld [vmem:[%s9364_s8 + $0xc4] ss:$16 sps:$4 sm:$0xff]   ;;  %v7475_v41 = vld [vmem:[%s9364_s8 + $0xcc] ss:$16 sps:$4 sm:$0xff]  }
 0x9bd   :  { %v6107_v47 = vmul.f32 -1.442695, %v1565_v43  ;;  %v7476_v42 = vld [vmem:[%s9364_s8 + $0xc0] ss:$16 sps:$4 sm:$0xff]   ;;  %v7477_v43 = vld [vmem:[%s9364_s8 + $0xc8] ss:$16 sps:$4 sm:$0xff]  }
 0x9be   :  { %v6108_v48 = vmul.f32 -1.442695, %v1566_v46  ;;  %v6109_v52 = vmul.f32 -1.442695, %v1568_v50  ;;  %v7478_v44 = vld [vmem:[%s9364_s8 + $0xe4] ss:$16 sps:$4 sm:$0xff]  }
 0x9bf   :  { %7270 = vpow2.f32 %v6107_v47  ;;  %v7479_v45 = vld [vmem:[%s9364_s8 + $0xec] ss:$16 sps:$4 sm:$0xff]   ;;  %v7480_v46 = vld [vmem:[%s9364_s8 + $0xe0] ss:$16 sps:$4 sm:$0xff]   ;;  %v7481_v47 = vld [vmem:[%s9364_s8 + $0xe8] ss:$16 sps:$4 sm:$0xff]  }
 0x9c0   :  { %7272 = vpow2.f32 %v6108_v48  ;;  %s7813_s8 = smov 127  }
 0x9c1   :  { %7274 = vpow2.f32 %v6109_v52 }
 0x9c2   :  { %7276 = vtanh.f32 %v1567_v53 }
 0x9c9   :  { %v7271_v54 = vpop.eup %7270 }
 0x9ca   :  { %v7273_v55 = vpop.eup %7272  ;;  %v1572_v56 = vadd.f32 1.0, %v7271_v54 }
 0x9cb   :  { %v1578_v57 = vadd.f32 1.0, %v7273_v55  ;;  %v7275_v58 = vpop.eup %7274 }
 0x9cc   :  { %7278 = vrcp.f32 %v1572_v56  ;;  %v7277_v59 = vpop.eup %7276  ;;  %v1585_v25 = vadd.f32 1.0, %v7275_v58 }
 0x9cd   :  { %7280 = vrcp.f32 %v1578_v57 }
 0x9ce   :  { %7282 = vrcp.f32 %v1585_v25 }
 0x9d6   :  { %v7279_v60 = vpop.eup %7278 }
 0x9d7   :  { %v7281_v62 = vpop.eup %7280  ;;  %v1592_v21 = vmul.f32 %v7279_v60, %v7277_v59 }
 0x9d8   :  { %v1591_v26 = vmul.f32 %v7281_v62, %v1589_v61  ;;  %v7283_v12 = vpop.eup %7282 }
 0x9da   :  { %v8664_v63 = vadd.f32 %v1592_v21, %v1591_v26 }
 0x9dc   :  { %7284 = vtanh.f32 %v8664_v63 }
 0x9e6   :  { %v7285_v14 = vpop.eup %7284 }
 0x9e7   :  { %v8667_v27 = vmul.f32 %v7285_v14, %v7283_v12 }
 0x9e9   :  { %v1596_v15 = vpack.c.bf16 %v8667_v27, %v8667_v27 }
 0x9eb   :  { %v1598_v13 = vrot.slane %v1596_v15, 1 }
 0x9ed   :  { %1633 = vmatmul.mubr.bf16.vlgmr.msra.gmra.mrb[32].mxu1 %v1598_v13  ;;  %1674 = vmatmul.mubr.bf16.vlgmr.msra.gmra.mrb[32].mxu0 %v1598_v13 }
 0x9ee   :  { %1730 = vmatpush1.bf16.msra.mxu1 %v7452_v5  ;;  %1771 = vmatpush1.bf16.msra.mxu0 %v7453_v22 }
 0x9ef   :  { %1731 = vmatprep.subr.bf16.mxu1 %v7454_v28  ;;  %1772 = vmatprep.subr.bf16.mxu0 %v7455_v8 }
 0x9f0   :  { %1761 = vmatprep.mubr.bf16.mxu1 %v9406_v34  ;;  %1802 = vmatprep.mubr.bf16.mxu0 %v9406_v34 }
 0x9f2   :  { %1732 = vmatpush1.bf16.msra.mxu1 %v7456_v10  ;;  %1773 = vmatpush1.bf16.msra.mxu0 %v7457_v9  ;;  %v1718_v10 = vrot.slane %v8664_v63, 6 }
 0x9f3   :  { %1733 = vmatprep.subr.bf16.mxu1 %v7458_v2  ;;  %1774 = vmatprep.subr.bf16.mxu0 %v7459_v18 }
 0x9f6   :  { %1734 = vmatpush1.bf16.msra.mxu1 %v7460_v31  ;;  %1775 = vmatpush1.bf16.msra.mxu0 %v7461_v7 }
 0x9f7   :  { %1735 = vmatprep.subr.bf16.mxu1 %v7462_v29  ;;  %1776 = vmatprep.subr.bf16.mxu0 %v7463_v17 }
 0x9fa   :  { %1736 = vmatpush1.bf16.msra.mxu1 %v7464_v3  ;;  %1777 = vmatpush1.bf16.msra.mxu0 %v7465_v30  ;;  %v1858_v30 = vsel %vm209_vm1, %v8617_v11, %v8667_v27  ;;  %v6700_v11 = vld [vmem:[#allocation13 + $0x24] ss:$16 sps:$4 sm:$0xff]   ;;  %v6703_v27 = vld [vmem:[#allocation13 + $0x2c] ss:$16 sps:$4 sm:$0xff]  }
 0x9fb   :  { %1737 = vmatprep.subr.bf16.mxu1 %v7466_v6  ;;  %1778 = vmatprep.subr.bf16.mxu0 %v7467_v32 }
 0x9fe   :  { %1738 = vmatpush1.bf16.msra.mxu1 %v7468_v33  ;;  %1779 = vmatpush1.bf16.msra.mxu0 %v7469_v35  ;;  %v6694_v33 = vld [vmem:[#allocation13 + $0x4] ss:$16 sps:$4 sm:$0xff]   ;;  %v6697_v35 = vld [vmem:[#allocation13 + $0xc] ss:$16 sps:$4 sm:$0xff]  }
 0x9ff   :  { %1739 = vmatprep.subr.bf16.mxu1 %v7470_v36  ;;  %1780 = vmatprep.subr.bf16.mxu0 %v7471_v37  ;;  %v6692_v36 = vld [vmem:[#allocation13] ss:$16 sps:$4 sm:$0xff]   ;;  %v6695_v37 = vld [vmem:[#allocation13 + $0x8] ss:$16 sps:$4 sm:$0xff]  }
 0xa02   :  { %1740 = vmatpush1.bf16.msra.mxu1 %v7472_v38  ;;  %1781 = vmatpush1.bf16.msra.mxu0 %v7473_v39  ;;  %v6698_v38 = vld [vmem:[#allocation13 + $0x20] ss:$16 sps:$4 sm:$0xff]   ;;  %v6701_v39 = vld [vmem:[#allocation13 + $0x28] ss:$16 sps:$4 sm:$0xff]  }
 0xa03   :  { %1741 = vmatprep.subr.bf16.mxu1 %v7474_v40  ;;  %1782 = vmatprep.subr.bf16.mxu0 %v7475_v41  ;;  %v6706_v40 = vld [vmem:[#allocation13 + $0x44] ss:$16 sps:$4 sm:$0xff]   ;;  %v6709_v41 = vld [vmem:[#allocation13 + $0x4c] ss:$16 sps:$4 sm:$0xff]  }
 0xa06   :  { %1742 = vmatpush1.bf16.msra.mxu1 %v7476_v42  ;;  %1783 = vmatpush1.bf16.msra.mxu0 %v7477_v43  ;;  %v6704_v42 = vld [vmem:[#allocation13 + $0x40] ss:$16 sps:$4 sm:$0xff]   ;;  %v6707_v43 = vld [vmem:[#allocation13 + $0x48] ss:$16 sps:$4 sm:$0xff]  }
 0xa07   :  { %1743 = vmatprep.subr.bf16.mxu1 %v7478_v44  ;;  %1784 = vmatprep.subr.bf16.mxu0 %v7479_v45  ;;  %v6712_v44 = vld [vmem:[#allocation13 + $0x64] ss:$16 sps:$4 sm:$0xff]   ;;  %v6715_v45 = vld [vmem:[#allocation13 + $0x6c] ss:$16 sps:$4 sm:$0xff]  }
 0xa0a   :  { %1744 = vmatpush1.bf16.msra.mxu1 %v7480_v46  ;;  %1785 = vmatpush1.bf16.msra.mxu0 %v7481_v47  ;;  %v6710_v46 = vld [vmem:[#allocation13 + $0x60] ss:$16 sps:$4 sm:$0xff]   ;;  %v6713_v47 = vld [vmem:[#allocation13 + $0x68] ss:$16 sps:$4 sm:$0xff]  }
 0xa0b   :  { %2076 = vmatprep.subr.bf16.mxu1 %v6694_v33  ;;  %2119 = vmatprep.subr.bf16.mxu0 %v6697_v35 }
 0xac0   :  { %v1634_v48 = vpop.f32.mrb[32].mxu1  ;;  %v1675_v49 = vpop.f32.mrb[32].mxu0 }
 0xac1   :  { %v1686_v50 = vrot.slane %v1634_v48, 4  ;;  %v1636_v51 = vpop.f32.mrb[33].mxu1  ;;  %v1677_v52 = vpop.f32.mrb[33].mxu0  ;;  %v1688_v25 = vrot.slane %v1675_v49, 4  ;;  %v6718_v48 = vld [vmem:[#allocation13 + $0x84] ss:$16 sps:$4 sm:$0xff]  }
 0xac2   :  { %v1687_v53 = vrot.slane %v1636_v51, 4  ;;  %v1638_v54 = vpop.f32.mrb[34].mxu1  ;;  %v1679_v55 = vpop.f32.mrb[34].mxu0  ;;  %v1689_v62 = vrot.slane %v1677_v52, 4  ;;  %v6721_v49 = vld [vmem:[#allocation13 + $0x8c] ss:$16 sps:$4 sm:$0xff]  }
 0xac3   :  { %v1694_v56 = vadd.f32 %v1686_v50, %v8408_v19  ;;  %v1639_v57 = vpop.f32.mrb[35].mxu1  ;;  %v1680_v58 = vpop.f32.mrb[35].mxu0  ;;  %v1696_v12 = vadd.f32 %v1688_v25, %v8410_v20  ;;  %v6716_v50 = vld [vmem:[#allocation13 + $0x80] ss:$16 sps:$4 sm:$0xff]   ;;  %v6719_v51 = vld [vmem:[#allocation13 + $0x88] ss:$16 sps:$4 sm:$0xff]  }
 0xac4   :  { %v1695_v59 = vadd.f32 %v1687_v53, %v8412_v23  ;;  %v1697_v21 = vadd.f32 %v1689_v62, %v8414_v24  ;;  %v6724_v52 = vld [vmem:[#allocation13 + $0xa4] ss:$16 sps:$4 sm:$0xff]   ;;  %v6722_v53 = vld [vmem:[#allocation13 + $0xa0] ss:$16 sps:$4 sm:$0xff]   ;;  %v6725_v54 = vld [vmem:[#allocation13 + $0xa8] ss:$16 sps:$4 sm:$0xff]  }
 0xac5   :  { %v6110_v60 = vmul.f32 -1.442695, %v1694_v56  ;;  %v6727_v55 = vld [vmem:[#allocation13 + $0xac] ss:$16 sps:$4 sm:$0xff]   ;;  %v6730_v56 = vld [vmem:[#allocation13 + $0xc4] ss:$16 sps:$4 sm:$0xff]  }
 0xac6   :  { %v6111_v61 = vmul.f32 -1.442695, %v1695_v59  ;;  %v6112_v26 = vmul.f32 -1.442695, %v1697_v21  ;;  %v6733_v57 = vld [vmem:[#allocation13 + $0xcc] ss:$16 sps:$4 sm:$0xff]  }
 0xac7   :  { %7286 = vpow2.f32 %v6110_v60  ;;  %v6728_v58 = vld [vmem:[#allocation13 + $0xc0] ss:$16 sps:$4 sm:$0xff]   ;;  %v6731_v59 = vld [vmem:[#allocation13 + $0xc8] ss:$16 sps:$4 sm:$0xff]   ;;  %v6736_v60 = vld [vmem:[#allocation13 + $0xe4] ss:$16 sps:$4 sm:$0xff]  }
 0xac8   :  { %7288 = vpow2.f32 %v6111_v61  ;;  %v6739_v61 = vld [vmem:[#allocation13 + $0xec] ss:$16 sps:$4 sm:$0xff]   ;;  %v6734_v62 = vld [vmem:[#allocation13 + $0xe0] ss:$16 sps:$4 sm:$0xff]   ;;  %v6737_v21 = vld [vmem:[#allocation13 + $0xe8] ss:$16 sps:$4 sm:$0xff]  }
 0xac9   :  { %7290 = vpow2.f32 %v6112_v26  ;;  %v8779_v25 = vld [vmem:[#allocation14 + $0x4] ss:$16 sps:$4 sm:$0xff]   ;;  %v8781_v26 = vld [vmem:[#allocation14 + $0xc] ss:$16 sps:$4 sm:$0xff]  }
 0xaca   :  { %7292 = vtanh.f32 %v1696_v12 }
 0xad1   :  { %v7287_v14 = vpop.eup %7286 }
 0xad2   :  { %v7289_v15 = vpop.eup %7288  ;;  %v1701_v13 = vadd.f32 1.0, %v7287_v14 }
 0xad3   :  { %v1707_v5 = vadd.f32 1.0, %v7289_v15  ;;  %v7291_v22 = vpop.eup %7290 }
 0xad4   :  { %7294 = vrcp.f32 %v1701_v13  ;;  %v7293_v28 = vpop.eup %7292  ;;  %v1714_v18 = vadd.f32 1.0, %v7291_v22 }
 0xad5   :  { %7296 = vrcp.f32 %v1707_v5 }
 0xad6   :  { %7298 = vrcp.f32 %v1714_v18 }
 0xade   :  { %v7295_v8 = vpop.eup %7294 }
 0xadf   :  { %v7297_v9 = vpop.eup %7296  ;;  %v1721_v2 = vmul.f32 %v7295_v8, %v7293_v28 }
 0xae0   :  { %v1720_v31 = vmul.f32 %v7297_v9, %v1718_v10  ;;  %v7299_v29 = vpop.eup %7298 }
 0xae2   :  { %v8768_v7 = vadd.f32 %v1721_v2, %v1720_v31 }
 0xae4   :  { %7300 = vtanh.f32 %v8768_v7 }
 0xaee   :  { %v7301_v17 = vpop.eup %7300 }
 0xaef   :  { %v1724_v3 = vmul.f32 %v7301_v17, %v7299_v29 }
 0xaf1   :  { %v1725_v6 = vpack.c.bf16 %v1724_v3, %v1724_v3  ;;  %v8775_v32 = vsel %vm1855_vm9, %v1858_v30, %v1724_v3 }
 0xaf3   :  { %v1727_v63 = vrot.slane %v1725_v6, 2 }
 0xaf5   :  { %1762 = vmatmul.mubr.bf16.vlgmr.msra.gmra.mrb[36].mxu1 %v1727_v63  ;;  %1803 = vmatmul.mubr.bf16.vlgmr.msra.gmra.mrb[36].mxu0 %v1727_v63 }
 0xaf6   :  { %2108 = vmatprep.mubr.bf16.mxu1 %v9406_v34  ;;  %2151 = vmatprep.mubr.bf16.mxu0 %v9406_v34 }
 0xaf7   :  { %2077 = vmatpush1.bf16.msra.mxu1 %v6692_v36  ;;  %2120 = vmatpush1.bf16.msra.mxu0 %v6695_v37 }
 0xaf8   :  { %2078 = vmatprep.subr.bf16.mxu1 %v6700_v11  ;;  %2121 = vmatprep.subr.bf16.mxu0 %v6703_v27  ;;  %v1847_v27 = vrot.slane %v8768_v7, 6  ;;  %v8797_v7 = vld [vmem:[#allocation14 + $0x24] ss:$16 sps:$4 sm:$0xff]  }
 0xafb   :  { %2079 = vmatpush1.bf16.msra.mxu1 %v6698_v38  ;;  %2122 = vmatpush1.bf16.msra.mxu0 %v6701_v39 }
 0xafc   :  { %2080 = vmatprep.subr.bf16.mxu1 %v6706_v40  ;;  %2123 = vmatprep.subr.bf16.mxu0 %v6709_v41 }
 0xaff   :  { %2081 = vmatpush1.bf16.msra.mxu1 %v6704_v42  ;;  %2124 = vmatpush1.bf16.msra.mxu0 %v6707_v43 }
 0xb00   :  { %2082 = vmatprep.subr.bf16.mxu1 %v6712_v44  ;;  %2125 = vmatprep.subr.bf16.mxu0 %v6715_v45  ;;  %v8792_v45 = vld [vmem:[#allocation14] ss:$16 sps:$4 sm:$0xff]  }
 0xb03   :  { %2083 = vmatpush1.bf16.msra.mxu1 %v6710_v46  ;;  %2126 = vmatpush1.bf16.msra.mxu0 %v6713_v47  ;;  %v8794_v46 = vld [vmem:[#allocation14 + $0x8] ss:$16 sps:$4 sm:$0xff]  }
 0xb04   :  { %2084 = vmatprep.subr.bf16.mxu1 %v6718_v48  ;;  %2127 = vmatprep.subr.bf16.mxu0 %v6721_v49  ;;  %v8799_v48 = vld [vmem:[#allocation14 + $0x2c] ss:$16 sps:$4 sm:$0xff]   ;;  %v8803_v49 = vld [vmem:[#allocation14 + $0x20] ss:$16 sps:$4 sm:$0xff]  }
 0xb07   :  { %2085 = vmatpush1.bf16.msra.mxu1 %v6716_v50  ;;  %2128 = vmatpush1.bf16.msra.mxu0 %v6719_v51  ;;  %v8805_v50 = vld [vmem:[#allocation14 + $0x28] ss:$16 sps:$4 sm:$0xff]   ;;  %v8817_v51 = vld [vmem:[#allocation14 + $0x40] ss:$16 sps:$4 sm:$0xff]  }
 0xb08   :  { %2086 = vmatprep.subr.bf16.mxu1 %v6724_v52  ;;  %2129 = vmatprep.subr.bf16.mxu0 %v6727_v55  ;;  %v8819_v52 = vld [vmem:[#allocation14 + $0x48] ss:$16 sps:$4 sm:$0xff]   ;;  %v8829_v55 = vld [vmem:[#allocation14 + $0x60] ss:$16 sps:$4 sm:$0xff]  }
 0xb0b   :  { %2087 = vmatpush1.bf16.msra.mxu1 %v6722_v53  ;;  %2130 = vmatpush1.bf16.msra.mxu0 %v6725_v54  ;;  %v8823_v53 = vld [vmem:[#allocation14 + $0x64] ss:$16 sps:$4 sm:$0xff]   ;;  %v8825_v54 = vld [vmem:[#allocation14 + $0x6c] ss:$16 sps:$4 sm:$0xff]  }
 0xb0c   :  { %2088 = vmatprep.subr.bf16.mxu1 %v6730_v56  ;;  %2131 = vmatprep.subr.bf16.mxu0 %v6733_v57  ;;  %v8831_v56 = vld [vmem:[#allocation14 + $0x68] ss:$16 sps:$4 sm:$0xff]   ;;  %v8835_v57 = vld [vmem:[#allocation14 + $0x84] ss:$16 sps:$4 sm:$0xff]  }
 0xb0f   :  { %2089 = vmatpush1.bf16.msra.mxu1 %v6728_v58  ;;  %2132 = vmatpush1.bf16.msra.mxu0 %v6731_v59  ;;  %v8837_v58 = vld [vmem:[#allocation14 + $0x8c] ss:$16 sps:$4 sm:$0xff]   ;;  %v8841_v59 = vld [vmem:[#allocation14 + $0x80] ss:$16 sps:$4 sm:$0xff]  }
 0xb10   :  { %2090 = vmatprep.subr.bf16.mxu1 %v6736_v60  ;;  %2133 = vmatprep.subr.bf16.mxu0 %v6739_v61  ;;  %v8843_v60 = vld [vmem:[#allocation14 + $0x88] ss:$16 sps:$4 sm:$0xff]   ;;  %v8847_v61 = vld [vmem:[#allocation14 + $0xa4] ss:$16 sps:$4 sm:$0xff]  }
 0xb13   :  { %2091 = vmatpush1.bf16.msra.mxu1 %v6734_v62  ;;  %2134 = vmatpush1.bf16.msra.mxu0 %v6737_v21  ;;  %v8849_v62 = vld [vmem:[#allocation14 + $0xac] ss:$16 sps:$4 sm:$0xff]   ;;  %v8853_v21 = vld [vmem:[#allocation14 + $0xa0] ss:$16 sps:$4 sm:$0xff]  }
 0xb14   :  { %2354 = vmatprep.subr.bf16.mxu1 %v8779_v25  ;;  %2395 = vmatprep.subr.bf16.mxu0 %v8781_v26 }
 0xbc8   :  { %v1763_v12 = vpop.f32.mrb[36].mxu1  ;;  %v1804_v14 = vpop.f32.mrb[36].mxu0 }
 0xbc9   :  { %v1815_v15 = vrot.slane %v1763_v12, 2  ;;  %v1765_v13 = vpop.f32.mrb[37].mxu1  ;;  %v1806_v5 = vpop.f32.mrb[37].mxu0  ;;  %v1817_v30 = vrot.slane %v1804_v14, 2  ;;  %v8855_v12 = vld [vmem:[#allocation14 + $0xa8] ss:$16 sps:$4 sm:$0xff]  }
 0xbca   :  { %v1816_v22 = vrot.slane %v1765_v13, 2  ;;  %v1767_v28 = vpop.f32.mrb[38].mxu1  ;;  %v1808_v8 = vpop.f32.mrb[38].mxu0  ;;  %v1818_v17 = vrot.slane %v1806_v5, 2  ;;  %v8859_v14 = vld [vmem:[#allocation14 + $0xc4] ss:$16 sps:$4 sm:$0xff]  }
 0xbcb   :  { %v1823_v10 = vadd.f32 %v1815_v15, %v8408_v19  ;;  %v1768_v9 = vpop.f32.mrb[39].mxu1  ;;  %v1809_v2 = vpop.f32.mrb[39].mxu0  ;;  %v1825_v63 = vadd.f32 %v1817_v30, %v8410_v20  ;;  %v8861_v15 = vld [vmem:[#allocation14 + $0xcc] ss:$16 sps:$4 sm:$0xff]   ;;  %v8865_v13 = vld [vmem:[#allocation14 + $0xc0] ss:$16 sps:$4 sm:$0xff]  }
 0xbcc   :  { %v1824_v18 = vadd.f32 %v1816_v22, %v8412_v23  ;;  %v1826_v3 = vadd.f32 %v1818_v17, %v8414_v24  ;;  %v8867_v5 = vld [vmem:[#allocation14 + $0xc8] ss:$16 sps:$4 sm:$0xff]   ;;  %v8871_v22 = vld [vmem:[#allocation14 + $0xe4] ss:$16 sps:$4 sm:$0xff]   ;;  %v8873_v28 = vld [vmem:[#allocation14 + $0xec] ss:$16 sps:$4 sm:$0xff]  }
 0xbcd   :  { %v6113_v31 = vmul.f32 -1.442695, %v1823_v10  ;;  %v8877_v8 = vld [vmem:[#allocation14 + $0xe0] ss:$16 sps:$4 sm:$0xff]   ;;  %v8879_v10 = vld [vmem:[#allocation14 + $0xe8] ss:$16 sps:$4 sm:$0xff]  }
 0xbce   :  { %v6114_v29 = vmul.f32 -1.442695, %v1824_v18  ;;  %v6115_v6 = vmul.f32 -1.442695, %v1826_v3  ;;  %v1894_v9 = vld [vmem:[#allocation16] sm:$0xf] }
 0xbcf   :  { %7302 = vpow2.f32 %v6113_v31  ;;  %v1899_v31 = vrot.slane %v1894_v9, %v8395_v1 }
 0xbd0   :  { %7304 = vpow2.f32 %v6114_v29  ;;  %v9407_v29 = vsub.s32 2, %v8392_v0 }
 0xbd1   :  { %7306 = vpow2.f32 %v6115_v6  ;;  %v1903_v6 = vrot.slane %v1894_v9, %v8399_v4 }
 0xbd2   :  { %7308 = vtanh.f32 %v1825_v63  ;;  %v1907_v17 = vrot.slane %v1894_v9, %v9407_v29  ;;  %v9408_v63 = vsub.s32 3, %v8392_v0 }
 0xbd9   :  { %v7303_v33 = vpop.eup %7302 }
 0xbda   :  { %v7305_v35 = vpop.eup %7304  ;;  %v1830_v36 = vadd.f32 1.0, %v7303_v33  ;;  %v1911_v33 = vrot.slane %v1894_v9, %v9408_v63 }
 0xbdb   :  { %v1836_v19 = vadd.f32 1.0, %v7305_v35  ;;  %v7307_v23 = vpop.eup %7306 }
 0xbdc   :  { %7310 = vrcp.f32 %v1830_v36  ;;  %v7309_v37 = vpop.eup %7308  ;;  %v1843_v24 = vadd.f32 1.0, %v7307_v23 }
 0xbdd   :  { %7312 = vrcp.f32 %v1836_v19 }
 0xbde   :  { %7314 = vrcp.f32 %v1843_v24 }
 0xbe6   :  { %v7311_v11 = vpop.eup %7310 }
 0xbe7   :  { %v7313_v38 = vpop.eup %7312  ;;  %v1850_v39 = vmul.f32 %v7311_v11, %v7309_v37 }
 0xbe8   :  { %v1849_v40 = vmul.f32 %v7313_v38, %v1847_v27  ;;  %v7315_v20 = vpop.eup %7314 }
 0xbea   :  { %v1851_v41 = vadd.f32 %v1850_v39, %v1849_v40 }
 0xbec   :  { %7316 = vtanh.f32 %v1851_v41 }
 0xbf6   :  { %v7317_v42 = vpop.eup %7316 }
 0xbf7   :  { %v1853_v43 = vmul.f32 %v7317_v42, %v7315_v20 }
 0xbf9   :  { %v1860_v44 = vsel %vm216_vm2, %v8775_v32, %v1853_v43  ;;  %v8809_v32 = vld [vmem:[#allocation14 + $0x44] ss:$16 sps:$4 sm:$0xff]  }
 0xbfa   :  { %v1861_v47 = vpack.c.bf16 %v1860_v44, %v8573_v16  ;;  %v8811_v16 = vld [vmem:[#allocation14 + $0x4c] ss:$16 sps:$4 sm:$0xff]  }
 0xbfc   :  { %2109 = vmatmul.mubr.bf16.vlgmr.msra.gmra.mrb[40].mxu1 %v1861_v47  ;;  %2152 = vmatmul.mubr.bf16.vlgmr.msra.gmra.mrb[40].mxu0 %v1861_v47 }
 0xbfd   :  { %2355 = vmatpush1.bf16.msra.mxu1 %v8792_v45  ;;  %2396 = vmatpush1.bf16.msra.mxu0 %v8794_v46 }
 0xbfe   :  { %2356 = vmatprep.subr.bf16.mxu1 %v8797_v7  ;;  %2397 = vmatprep.subr.bf16.mxu0 %v8799_v48 }
 0xbff   :  { %2386 = vmatprep.mubr.bf16.mxu1 %v9406_v34  ;;  %2427 = vmatprep.mubr.bf16.mxu0 %v9406_v34 }
 0xc01   :  { %2357 = vmatpush1.bf16.msra.mxu1 %v8803_v49  ;;  %2398 = vmatpush1.bf16.msra.mxu0 %v8805_v50 }
 0xc02   :  { %2358 = vmatprep.subr.bf16.mxu1 %v8809_v32  ;;  %2399 = vmatprep.subr.bf16.mxu0 %v8811_v16 }
 0xc05   :  { %2359 = vmatpush1.bf16.msra.mxu1 %v8817_v51  ;;  %2400 = vmatpush1.bf16.msra.mxu0 %v8819_v52 }
 0xc06   :  { %2360 = vmatprep.subr.bf16.mxu1 %v8823_v53  ;;  %2401 = vmatprep.subr.bf16.mxu0 %v8825_v54 }
 0xc09   :  { %2361 = vmatpush1.bf16.msra.mxu1 %v8829_v55  ;;  %2402 = vmatpush1.bf16.msra.mxu0 %v8831_v56 }
 0xc0a   :  { %2362 = vmatprep.subr.bf16.mxu1 %v8835_v57  ;;  %2403 = vmatprep.subr.bf16.mxu0 %v8837_v58 }
 0xc0d   :  { %2363 = vmatpush1.bf16.msra.mxu1 %v8841_v59  ;;  %2404 = vmatpush1.bf16.msra.mxu0 %v8843_v60 }
 0xc0e   :  { %2364 = vmatprep.subr.bf16.mxu1 %v8847_v61  ;;  %2405 = vmatprep.subr.bf16.mxu0 %v8849_v62 }
 0xc11   :  { %2365 = vmatpush1.bf16.msra.mxu1 %v8853_v21  ;;  %2406 = vmatpush1.bf16.msra.mxu0 %v8855_v12 }
 0xc12   :  { %2366 = vmatprep.subr.bf16.mxu1 %v8859_v14  ;;  %2407 = vmatprep.subr.bf16.mxu0 %v8861_v15 }
 0xc15   :  { %2367 = vmatpush1.bf16.msra.mxu1 %v8865_v13  ;;  %2408 = vmatpush1.bf16.msra.mxu0 %v8867_v5 }
 0xc16   :  { %2368 = vmatprep.subr.bf16.mxu1 %v8871_v22  ;;  %2409 = vmatprep.subr.bf16.mxu0 %v8873_v28 }
 0xc19   :  { %2369 = vmatpush1.bf16.msra.mxu1 %v8877_v8  ;;  %2410 = vmatpush1.bf16.msra.mxu0 %v8879_v10 }
 0xc1a   :  { %2465 = vmatprep.subr.bf16.mxu1 %v8779_v25  ;;  %2506 = vmatprep.subr.bf16.mxu0 %v8781_v26 }
 0xc1c   :  { %2387 = vmatmul.mubr.bf16.vlgmr.msra.gmra.mrb[44].mxu1 %v9406_v34  ;;  %2428 = vmatmul.mubr.bf16.vlgmr.msra.gmra.mrb[44].mxu0 %v9406_v34 }
 0xc1d   :  { %2466 = vmatpush1.bf16.msra.mxu1 %v8792_v45  ;;  %2507 = vmatpush1.bf16.msra.mxu0 %v8794_v46 }
 0xc1e   :  { %2467 = vmatprep.subr.bf16.mxu1 %v8797_v7  ;;  %2508 = vmatprep.subr.bf16.mxu0 %v8799_v48 }
 0xc1f   :  { %2497 = vmatprep.mubr.bf16.mxu1 %v9406_v34  ;;  %2538 = vmatprep.mubr.bf16.mxu0 %v9406_v34 }
 0xc21   :  { %2468 = vmatpush1.bf16.msra.mxu1 %v8803_v49  ;;  %2509 = vmatpush1.bf16.msra.mxu0 %v8805_v50 }
 0xc22   :  { %2469 = vmatprep.subr.bf16.mxu1 %v8809_v32  ;;  %2510 = vmatprep.subr.bf16.mxu0 %v8811_v16 }
 0xc25   :  { %2470 = vmatpush1.bf16.msra.mxu1 %v8817_v51  ;;  %2511 = vmatpush1.bf16.msra.mxu0 %v8819_v52 }
 0xc26   :  { %2471 = vmatprep.subr.bf16.mxu1 %v8823_v53  ;;  %2512 = vmatprep.subr.bf16.mxu0 %v8825_v54 }
 0xc29   :  { %2472 = vmatpush1.bf16.msra.mxu1 %v8829_v55  ;;  %2513 = vmatpush1.bf16.msra.mxu0 %v8831_v56 }
 0xc2a   :  { %2473 = vmatprep.subr.bf16.mxu1 %v8835_v57  ;;  %2514 = vmatprep.subr.bf16.mxu0 %v8837_v58 }
 0xc2d   :  { %2474 = vmatpush1.bf16.msra.mxu1 %v8841_v59  ;;  %2515 = vmatpush1.bf16.msra.mxu0 %v8843_v60 }
 0xc2e   :  { %2475 = vmatprep.subr.bf16.mxu1 %v8847_v61  ;;  %2516 = vmatprep.subr.bf16.mxu0 %v8849_v62 }
 0xc31   :  { %2476 = vmatpush1.bf16.msra.mxu1 %v8853_v21  ;;  %2517 = vmatpush1.bf16.msra.mxu0 %v8855_v12 }
 0xc32   :  { %2477 = vmatprep.subr.bf16.mxu1 %v8859_v14  ;;  %2518 = vmatprep.subr.bf16.mxu0 %v8861_v15 }
 0xc35   :  { %2478 = vmatpush1.bf16.msra.mxu1 %v8865_v13  ;;  %2519 = vmatpush1.bf16.msra.mxu0 %v8867_v5 }
 0xc36   :  { %2479 = vmatprep.subr.bf16.mxu1 %v8871_v22  ;;  %2520 = vmatprep.subr.bf16.mxu0 %v8873_v28 }
 0xc39   :  { %2480 = vmatpush1.bf16.msra.mxu1 %v8877_v8  ;;  %2521 = vmatpush1.bf16.msra.mxu0 %v8879_v10 }
 0xc3a   :  { %2594 = vmatprep.subr.bf16.mxu1 %v8779_v25  ;;  %2635 = vmatprep.subr.bf16.mxu0 %v8781_v26 }
 0xccf   :  { %v2110_v2 = vpop.f32.mrb[40].mxu1  ;;  %v2153_v18 = vpop.f32.mrb[40].mxu0 }
 0xcd0   :  { %v2112_v3 = vpop.f32.mrb[41].mxu1  ;;  %v2155_v30 = vpop.f32.mrb[41].mxu0  ;;  %v8937_v39 = vadd.f32 %v2110_v2, %v1899_v31 }
 0xcd1   :  { %v2114_v35 = vpop.f32.mrb[42].mxu1  ;;  %v2157_v36 = vpop.f32.mrb[42].mxu0  ;;  %v8939_v24 = vadd.f32 %v2112_v3, %v1903_v6 }
 0xcd2   :  { %v8929_v19 = vadd.f32 %v2114_v35, %v1899_v31  ;;  %v8931_v23 = vadd.f32 %v2157_v36, %v1907_v17  ;;  %v2116_v37 = vpop.f32.mrb[43].mxu1  ;;  %v2159_v11 = vpop.f32.mrb[43].mxu0  ;;  %v8943_v36 = vadd.f32 %v2155_v30, %v1911_v33  ;;  %v8946_v31 = vadd.f32 %v2153_v18, %v1907_v17 }
 0xcd3   :  { %v8933_v27 = vadd.f32 %v2116_v37, %v1903_v6  ;;  %v8935_v38 = vadd.f32 %v2159_v11, %v1911_v33 }
 0xcef   :  { %v2388_v40 = vpop.f32.mrb[44].mxu1  ;;  %v2429_v41 = vpop.f32.mrb[44].mxu0 }
 0xcf0   :  { %v2436_v0 = vadd.f32 %v2388_v40, %v8937_v39  ;;  %v2390_v20 = vpop.f32.mrb[45].mxu1  ;;  %v2431_v42 = vpop.f32.mrb[45].mxu0  ;;  %v2438_v6 = vadd.f32 %v2429_v41, %v8946_v31 }
 0xcf1   :  { %v2437_v43 = vadd.f32 %v2390_v20, %v8939_v24  ;;  %v2392_v44 = vpop.f32.mrb[46].mxu1  ;;  %v2433_v47 = vpop.f32.mrb[46].mxu0  ;;  %v2439_v2 = vadd.f32 %v2431_v42, %v8943_v36 }
 0xcf2   :  { %v6180_v9 = vmul.f32 -1.442695, %v2436_v0  ;;  %v2393_v29 = vpop.f32.mrb[47].mxu1  ;;  %v2434_v63 = vpop.f32.mrb[47].mxu0 }
 0xcf3   :  { %v6181_v35 = vmul.f32 -1.442695, %v2437_v43  ;;  %v6182_v3 = vmul.f32 -1.442695, %v2439_v2 }
 0xcf4   :  { %7318 = vpow2.f32 %v6180_v9 }
 0xcf5   :  { %7320 = vpow2.f32 %v6181_v35 }
 0xcf6   :  { %7322 = vpow2.f32 %v6182_v3 }
 0xcf7   :  { %7324 = vtanh.f32 %v2438_v6 }
 0xcfe   :  { %v7319_v37 = vpop.eup %7318 }
 0xcff   :  { %v7321_v11 = vpop.eup %7320  ;;  %v2443_v40 = vadd.f32 1.0, %v7319_v37 }
 0xd00   :  { %v2449_v0 = vadd.f32 1.0, %v7321_v11  ;;  %v7323_v20 = vpop.eup %7322 }
 0xd01   :  { %7326 = vrcp.f32 %v2443_v40  ;;  %v7325_v43 = vpop.eup %7324  ;;  %v2456_v47 = vadd.f32 1.0, %v7323_v20 }
 0xd02   :  { %7328 = vrcp.f32 %v2449_v0 }
 0xd03   :  { %7330 = vrcp.f32 %v2456_v47 }
 0xd0b   :  { %v7327_v30 = vpop.eup %7326 }
 0xd0c   :  { %v7329_v33 = vpop.eup %7328  ;;  %v2460_v44 = vmul.f32 %v7327_v30, %v7325_v43 }
 0xd0d   :  { %v2459_v42 = vmul.f32 0.0, %v7329_v33  ;;  %v7331_v17 = vpop.eup %7330 }
 0xd0f   :  { %v8949_v18 = vadd.f32 %v2460_v44, %v2459_v42 }
 0xd11   :  { %7332 = vtanh.f32 %v8949_v18 }
 0xd1b   :  { %v7333_v41 = vpop.eup %7332 }
 0xd1c   :  { %v8952_v9 = vmul.f32 %v7333_v41, %v7331_v17 }
 0xd1e   :  { %v2464_v29 = vpack.c.bf16 %v8952_v9, %v8952_v9 }
 0xd20   :  { %2498 = vmatmul.mubr.bf16.vlgmr.msra.gmra.mrb[48].mxu1 %v2464_v29  ;;  %2539 = vmatmul.mubr.bf16.vlgmr.msra.gmra.mrb[48].mxu0 %v2464_v29 }
 0xd21   :  { %2595 = vmatpush1.bf16.msra.mxu1 %v8792_v45  ;;  %2636 = vmatpush1.bf16.msra.mxu0 %v8794_v46 }
 0xd22   :  { %2596 = vmatprep.subr.bf16.mxu1 %v8797_v7  ;;  %2637 = vmatprep.subr.bf16.mxu0 %v8799_v48 }
 0xd23   :  { %2626 = vmatprep.mubr.bf16.mxu1 %v9406_v34  ;;  %2667 = vmatprep.mubr.bf16.mxu0 %v9406_v34 }
 0xd25   :  { %2597 = vmatpush1.bf16.msra.mxu1 %v8803_v49  ;;  %2638 = vmatpush1.bf16.msra.mxu0 %v8805_v50 }
 0xd26   :  { %2598 = vmatprep.subr.bf16.mxu1 %v8809_v32  ;;  %2639 = vmatprep.subr.bf16.mxu0 %v8811_v16 }
 0xd29   :  { %2599 = vmatpush1.bf16.msra.mxu1 %v8817_v51  ;;  %2640 = vmatpush1.bf16.msra.mxu0 %v8819_v52 }
 0xd2a   :  { %2600 = vmatprep.subr.bf16.mxu1 %v8823_v53  ;;  %2641 = vmatprep.subr.bf16.mxu0 %v8825_v54 }
 0xd2d   :  { %2601 = vmatpush1.bf16.msra.mxu1 %v8829_v55  ;;  %2642 = vmatpush1.bf16.msra.mxu0 %v8831_v56 }
 0xd2e   :  { %2602 = vmatprep.subr.bf16.mxu1 %v8835_v57  ;;  %2643 = vmatprep.subr.bf16.mxu0 %v8837_v58 }
 0xd31   :  { %2603 = vmatpush1.bf16.msra.mxu1 %v8841_v59  ;;  %2644 = vmatpush1.bf16.msra.mxu0 %v8843_v60 }
 0xd32   :  { %2604 = vmatprep.subr.bf16.mxu1 %v8847_v61  ;;  %2645 = vmatprep.subr.bf16.mxu0 %v8849_v62 }
 0xd35   :  { %2605 = vmatpush1.bf16.msra.mxu1 %v8853_v21  ;;  %2646 = vmatpush1.bf16.msra.mxu0 %v8855_v12 }
 0xd36   :  { %2606 = vmatprep.subr.bf16.mxu1 %v8859_v14  ;;  %2647 = vmatprep.subr.bf16.mxu0 %v8861_v15 }
 0xd39   :  { %2607 = vmatpush1.bf16.msra.mxu1 %v8865_v13  ;;  %2648 = vmatpush1.bf16.msra.mxu0 %v8867_v5 }
 0xd3a   :  { %2608 = vmatprep.subr.bf16.mxu1 %v8871_v22  ;;  %2649 = vmatprep.subr.bf16.mxu0 %v8873_v28 }
 0xd3d   :  { %2609 = vmatpush1.bf16.msra.mxu1 %v8877_v8  ;;  %2650 = vmatpush1.bf16.msra.mxu0 %v8879_v10 }
 0xd3e   :  { %2723 = vmatprep.subr.bf16.mxu1 %v8779_v25  ;;  %2764 = vmatprep.subr.bf16.mxu0 %v8781_v26 }
 0xdf3   :  { %v2499_v63 = vpop.f32.mrb[48].mxu1  ;;  %v2540_v35 = vpop.f32.mrb[48].mxu0 }
 0xdf4   :  { %v2551_v2 = vrot.slane %v2499_v63, 6  ;;  %v2501_v3 = vpop.f32.mrb[49].mxu1  ;;  %v2542_v6 = vpop.f32.mrb[49].mxu0  ;;  %v2553_v17 = vrot.slane %v2540_v35, 6 }
 0xdf5   :  { %v2552_v37 = vrot.slane %v2501_v3, 6  ;;  %v2503_v11 = vpop.f32.mrb[50].mxu1  ;;  %v2544_v40 = vpop.f32.mrb[50].mxu0  ;;  %v2554_v47 = vrot.slane %v2542_v6, 6  ;;  %v2583_v6 = vrot.slane %v8949_v18, 6 }
 0xdf6   :  { %v2559_v0 = vadd.f32 %v2551_v2, %v8937_v39  ;;  %v2504_v20 = vpop.f32.mrb[51].mxu1  ;;  %v2545_v43 = vpop.f32.mrb[51].mxu0  ;;  %v2561_v29 = vadd.f32 %v2553_v17, %v8946_v31 }
 0xdf7   :  { %v2560_v30 = vadd.f32 %v2552_v37, %v8939_v24  ;;  %v2562_v42 = vadd.f32 %v2554_v47, %v8943_v36 }
 0xdf8   :  { %v6183_v33 = vmul.f32 -1.442695, %v2559_v0 }
 0xdf9   :  { %v6184_v44 = vmul.f32 -1.442695, %v2560_v30  ;;  %v6185_v41 = vmul.f32 -1.442695, %v2562_v42 }
 0xdfa   :  { %7334 = vpow2.f32 %v6183_v33 }
 0xdfb   :  { %7336 = vpow2.f32 %v6184_v44 }
 0xdfc   :  { %7338 = vpow2.f32 %v6185_v41 }
 0xdfd   :  { %7340 = vtanh.f32 %v2561_v29 }
 0xe04   :  { %v7335_v63 = vpop.eup %7334 }
 0xe05   :  { %v7337_v3 = vpop.eup %7336  ;;  %v2566_v11 = vadd.f32 1.0, %v7335_v63 }
 0xe06   :  { %v2572_v2 = vadd.f32 1.0, %v7337_v3  ;;  %v7339_v37 = vpop.eup %7338 }
 0xe07   :  { %7342 = vrcp.f32 %v2566_v11  ;;  %v7341_v40 = vpop.eup %7340  ;;  %v2579_v30 = vadd.f32 1.0, %v7339_v37 }
 0xe08   :  { %7344 = vrcp.f32 %v2572_v2 }
 0xe09   :  { %7346 = vrcp.f32 %v2579_v30 }
 0xe11   :  { %v7343_v0 = vpop.eup %7342 }
 0xe12   :  { %v7345_v20 = vpop.eup %7344  ;;  %v2586_v43 = vmul.f32 %v7343_v0, %v7341_v40 }
 0xe13   :  { %v2585_v35 = vmul.f32 %v7345_v20, %v2583_v6  ;;  %v7347_v44 = vpop.eup %7346 }
 0xe15   :  { %v8995_v33 = vadd.f32 %v2586_v43, %v2585_v35 }
 0xe17   :  { %7348 = vtanh.f32 %v8995_v33 }
 0xe21   :  { %v7349_v47 = vpop.eup %7348 }
 0xe22   :  { %v8998_v42 = vmul.f32 %v7349_v47, %v7347_v44 }
 0xe24   :  { %v2590_v17 = vpack.c.bf16 %v8998_v42, %v8998_v42 }
 0xe26   :  { %v2592_v41 = vrot.slane %v2590_v17, 1 }
 0xe28   :  { %2627 = vmatmul.mubr.bf16.vlgmr.msra.gmra.mrb[52].mxu1 %v2592_v41  ;;  %2668 = vmatmul.mubr.bf16.vlgmr.msra.gmra.mrb[52].mxu0 %v2592_v41 }
 0xe29   :  { %2724 = vmatpush1.bf16.msra.mxu1 %v8792_v45  ;;  %2765 = vmatpush1.bf16.msra.mxu0 %v8794_v46 }
 0xe2a   :  { %2725 = vmatprep.subr.bf16.mxu1 %v8797_v7  ;;  %2766 = vmatprep.subr.bf16.mxu0 %v8799_v48 }
 0xe2b   :  { %2755 = vmatprep.mubr.bf16.mxu1 %v9406_v34  ;;  %2796 = vmatprep.mubr.bf16.mxu0 %v9406_v34 }
 0xe2d   :  { %2726 = vmatpush1.bf16.msra.mxu1 %v8803_v49  ;;  %2767 = vmatpush1.bf16.msra.mxu0 %v8805_v50 }
 0xe2e   :  { %2727 = vmatprep.subr.bf16.mxu1 %v8809_v32  ;;  %2768 = vmatprep.subr.bf16.mxu0 %v8811_v16 }
 0xe31   :  { %2728 = vmatpush1.bf16.msra.mxu1 %v8817_v51  ;;  %2769 = vmatpush1.bf16.msra.mxu0 %v8819_v52 }
 0xe32   :  { %2729 = vmatprep.subr.bf16.mxu1 %v8823_v53  ;;  %2770 = vmatprep.subr.bf16.mxu0 %v8825_v54 }
 0xe35   :  { %2730 = vmatpush1.bf16.msra.mxu1 %v8829_v55  ;;  %2771 = vmatpush1.bf16.msra.mxu0 %v8831_v56 }
 0xe36   :  { %2731 = vmatprep.subr.bf16.mxu1 %v8835_v57  ;;  %2772 = vmatprep.subr.bf16.mxu0 %v8837_v58 }
 0xe39   :  { %2732 = vmatpush1.bf16.msra.mxu1 %v8841_v59  ;;  %2773 = vmatpush1.bf16.msra.mxu0 %v8843_v60 }
 0xe3a   :  { %2733 = vmatprep.subr.bf16.mxu1 %v8847_v61  ;;  %2774 = vmatprep.subr.bf16.mxu0 %v8849_v62 }
 0xe3d   :  { %2734 = vmatpush1.bf16.msra.mxu1 %v8853_v21  ;;  %2775 = vmatpush1.bf16.msra.mxu0 %v8855_v12 }
 0xe3e   :  { %2735 = vmatprep.subr.bf16.mxu1 %v8859_v14  ;;  %2776 = vmatprep.subr.bf16.mxu0 %v8861_v15 }
 0xe41   :  { %2736 = vmatpush1.bf16.msra.mxu1 %v8865_v13  ;;  %2777 = vmatpush1.bf16.msra.mxu0 %v8867_v5 }
 0xe42   :  { %2737 = vmatprep.subr.bf16.mxu1 %v8871_v22  ;;  %2778 = vmatprep.subr.bf16.mxu0 %v8873_v28 }
 0xe45   :  { %2738 = vmatpush1.bf16.msra.mxu1 %v8877_v8  ;;  %2779 = vmatpush1.bf16.msra.mxu0 %v8879_v10 }
 0xe46   :  { %2852 = vmatprep.subr.bf16.mxu1 %v8779_v25  ;;  %2893 = vmatprep.subr.bf16.mxu0 %v8781_v26 }
 0xefb   :  { %v2628_v18 = vpop.f32.mrb[52].mxu1  ;;  %v2669_v29 = vpop.f32.mrb[52].mxu0 }
 0xefc   :  { %v2680_v63 = vrot.slane %v2628_v18, 4  ;;  %v2630_v3 = vpop.f32.mrb[53].mxu1  ;;  %v2671_v11 = vpop.f32.mrb[53].mxu0  ;;  %v2682_v17 = vrot.slane %v2669_v29, 4 }
 0xefd   :  { %v2681_v2 = vrot.slane %v2630_v3, 4  ;;  %v2632_v37 = vpop.f32.mrb[54].mxu1  ;;  %v2673_v40 = vpop.f32.mrb[54].mxu0  ;;  %v2683_v44 = vrot.slane %v2671_v11, 4  ;;  %v2712_v11 = vrot.slane %v8995_v33, 6 }
 0xefe   :  { %v2688_v0 = vadd.f32 %v2680_v63, %v8937_v39  ;;  %v2633_v6 = vpop.f32.mrb[55].mxu1  ;;  %v2674_v20 = vpop.f32.mrb[55].mxu0  ;;  %v2690_v18 = vadd.f32 %v2682_v17, %v8946_v31 }
 0xeff   :  { %v2689_v43 = vadd.f32 %v2681_v2, %v8939_v24  ;;  %v2691_v47 = vadd.f32 %v2683_v44, %v8943_v36 }
 0xf00   :  { %v6186_v30 = vmul.f32 -1.442695, %v2688_v0 }
 0xf01   :  { %v6187_v35 = vmul.f32 -1.442695, %v2689_v43  ;;  %v6188_v41 = vmul.f32 -1.442695, %v2691_v47 }
 0xf02   :  { %7350 = vpow2.f32 %v6186_v30 }
 0xf03   :  { %7352 = vpow2.f32 %v6187_v35 }
 0xf04   :  { %7354 = vpow2.f32 %v6188_v41  ;;  %v3349_v41 = vsel %vm209_vm1, %v8952_v9, %v8998_v42 }
 0xf05   :  { %7356 = vtanh.f32 %v2690_v18 }
 0xf0c   :  { %v7351_v3 = vpop.eup %7350 }
 0xf0d   :  { %v7353_v37 = vpop.eup %7352  ;;  %v2695_v40 = vadd.f32 1.0, %v7351_v3 }
 0xf0e   :  { %v2701_v63 = vadd.f32 1.0, %v7353_v37  ;;  %v7355_v2 = vpop.eup %7354 }
 0xf0f   :  { %7358 = vrcp.f32 %v2695_v40  ;;  %v7357_v0 = vpop.eup %7356  ;;  %v2708_v30 = vadd.f32 1.0, %v7355_v2 }
 0xf10   :  { %7360 = vrcp.f32 %v2701_v63 }
 0xf11   :  { %7362 = vrcp.f32 %v2708_v30 }
 0xf19   :  { %v7359_v6 = vpop.eup %7358 }
 0xf1a   :  { %v7361_v20 = vpop.eup %7360  ;;  %v2715_v43 = vmul.f32 %v7359_v6, %v7357_v0 }
 0xf1b   :  { %v2714_v29 = vmul.f32 %v7361_v20, %v2712_v11  ;;  %v7363_v44 = vpop.eup %7362 }
 0xf1d   :  { %v9041_v35 = vadd.f32 %v2715_v43, %v2714_v29 }
 0xf1f   :  { %7364 = vtanh.f32 %v9041_v35 }
 0xf29   :  { %v7365_v47 = vpop.eup %7364 }
 0xf2a   :  { %v2718_v17 = vmul.f32 %v7365_v47, %v7363_v44 }
 0xf2c   :  { %v2719_v18 = vpack.c.bf16 %v2718_v17, %v2718_v17  ;;  %v9048_v3 = vsel %vm1855_vm9, %v3349_v41, %v2718_v17 }
 0xf2e   :  { %v2721_v33 = vrot.slane %v2719_v18, 2 }
 0xf30   :  { %2756 = vmatmul.mubr.bf16.vlgmr.msra.gmra.mrb[56].mxu1 %v2721_v33  ;;  %2797 = vmatmul.mubr.bf16.vlgmr.msra.gmra.mrb[56].mxu0 %v2721_v33 }
 0xf31   :  { %2853 = vmatpush1.bf16.msra.mxu1 %v8792_v45  ;;  %2894 = vmatpush1.bf16.msra.mxu0 %v8794_v46 }
 0xf32   :  { %2854 = vmatprep.subr.bf16.mxu1 %v8797_v7  ;;  %2895 = vmatprep.subr.bf16.mxu0 %v8799_v48 }
 0xf33   :  { %2884 = vmatprep.mubr.bf16.mxu1 %v9406_v34  ;;  %2925 = vmatprep.mubr.bf16.mxu0 %v9406_v34 }
 0xf35   :  { %2855 = vmatpush1.bf16.msra.mxu1 %v8803_v49  ;;  %2896 = vmatpush1.bf16.msra.mxu0 %v8805_v50 }
 0xf36   :  { %2856 = vmatprep.subr.bf16.mxu1 %v8809_v32  ;;  %2897 = vmatprep.subr.bf16.mxu0 %v8811_v16 }
 0xf39   :  { %2857 = vmatpush1.bf16.msra.mxu1 %v8817_v51  ;;  %2898 = vmatpush1.bf16.msra.mxu0 %v8819_v52 }
 0xf3a   :  { %2858 = vmatprep.subr.bf16.mxu1 %v8823_v53  ;;  %2899 = vmatprep.subr.bf16.mxu0 %v8825_v54 }
 0xf3d   :  { %2859 = vmatpush1.bf16.msra.mxu1 %v8829_v55  ;;  %2900 = vmatpush1.bf16.msra.mxu0 %v8831_v56 }
 0xf3e   :  { %2860 = vmatprep.subr.bf16.mxu1 %v8835_v57  ;;  %2901 = vmatprep.subr.bf16.mxu0 %v8837_v58 }
 0xf41   :  { %2861 = vmatpush1.bf16.msra.mxu1 %v8841_v59  ;;  %2902 = vmatpush1.bf16.msra.mxu0 %v8843_v60 }
 0xf42   :  { %2862 = vmatprep.subr.bf16.mxu1 %v8847_v61  ;;  %2903 = vmatprep.subr.bf16.mxu0 %v8849_v62 }
 0xf45   :  { %2863 = vmatpush1.bf16.msra.mxu1 %v8853_v21  ;;  %2904 = vmatpush1.bf16.msra.mxu0 %v8855_v12 }
 0xf46   :  { %2864 = vmatprep.subr.bf16.mxu1 %v8859_v14  ;;  %2905 = vmatprep.subr.bf16.mxu0 %v8861_v15 }
 0xf49   :  { %2865 = vmatpush1.bf16.msra.mxu1 %v8865_v13  ;;  %2906 = vmatpush1.bf16.msra.mxu0 %v8867_v5 }
 0xf4a   :  { %2866 = vmatprep.subr.bf16.mxu1 %v8871_v22  ;;  %2907 = vmatprep.subr.bf16.mxu0 %v8873_v28 }
 0xf4d   :  { %2867 = vmatpush1.bf16.msra.mxu1 %v8877_v8  ;;  %2908 = vmatpush1.bf16.msra.mxu0 %v8879_v10 }
 0xf4e   :  { %2966 = vmatprep.subr.bf16.mxu1 %v8779_v25  ;;  %3007 = vmatprep.subr.bf16.mxu0 %v8781_v26 }
0x1003   :  { %v2757_v9 = vpop.f32.mrb[56].mxu1  ;;  %v2798_v42 = vpop.f32.mrb[56].mxu0 }
0x1004   :  { %v2809_v37 = vrot.slane %v2757_v9, 2  ;;  %v2759_v40 = vpop.f32.mrb[57].mxu1  ;;  %v2800_v63 = vpop.f32.mrb[57].mxu0  ;;  %v2811_v41 = vrot.slane %v2798_v42, 2 }
0x1005   :  { %v2810_v2 = vrot.slane %v2759_v40, 2  ;;  %v2761_v0 = vpop.f32.mrb[58].mxu1  ;;  %v2802_v6 = vpop.f32.mrb[58].mxu0  ;;  %v2812_v47 = vrot.slane %v2800_v63, 2  ;;  %v2841_v63 = vrot.slane %v9041_v35, 6 }
0x1006   :  { %v2817_v11 = vadd.f32 %v2809_v37, %v8937_v39  ;;  %v2762_v20 = vpop.f32.mrb[59].mxu1  ;;  %v2803_v43 = vpop.f32.mrb[59].mxu0  ;;  %v2819_v33 = vadd.f32 %v2811_v41, %v8946_v31 }
0x1007   :  { %v2818_v30 = vadd.f32 %v2810_v2, %v8939_v24  ;;  %v2820_v17 = vadd.f32 %v2812_v47, %v8943_v36 }
0x1008   :  { %v6189_v29 = vmul.f32 -1.442695, %v2817_v11 }
0x1009   :  { %v6190_v44 = vmul.f32 -1.442695, %v2818_v30  ;;  %v6191_v18 = vmul.f32 -1.442695, %v2820_v17 }
0x100a   :  { %7366 = vpow2.f32 %v6189_v29 }
0x100b   :  { %7368 = vpow2.f32 %v6190_v44 }
0x100c   :  { %7370 = vpow2.f32 %v6191_v18 }
0x100d   :  { %7372 = vtanh.f32 %v2819_v33 }
0x1014   :  { %v7367_v9 = vpop.eup %7366 }
0x1015   :  { %v7369_v40 = vpop.eup %7368  ;;  %v2824_v0 = vadd.f32 1.0, %v7367_v9 }
0x1016   :  { %v2830_v39 = vadd.f32 1.0, %v7369_v40  ;;  %v7371_v24 = vpop.eup %7370 }
0x1017   :  { %7374 = vrcp.f32 %v2824_v0  ;;  %v7373_v37 = vpop.eup %7372  ;;  %v2837_v36 = vadd.f32 1.0, %v7371_v24 }
0x1018   :  { %7376 = vrcp.f32 %v2830_v39 }
0x1019   :  { %7378 = vrcp.f32 %v2837_v36 }
0x1021   :  { %v7375_v2 = vpop.eup %7374 }
0x1022   :  { %v7377_v6 = vpop.eup %7376  ;;  %v2844_v11 = vmul.f32 %v7375_v2, %v7373_v37 }
0x1023   :  { %v2843_v42 = vmul.f32 %v7377_v6, %v2841_v63  ;;  %v7379_v31 = vpop.eup %7378 }
0x1025   :  { %v9089_v20 = vadd.f32 %v2844_v11, %v2843_v42 }
0x1027   :  { %7380 = vtanh.f32 %v9089_v20 }
0x1031   :  { %v7381_v43 = vpop.eup %7380 }
0x1032   :  { %v2847_v30 = vmul.f32 %v7381_v43, %v7379_v31 }
0x1034   :  { %v2848_v29 = vpack.c.bf16 %v2847_v30, %v2847_v30  ;;  %v9094_v44 = vsel %vm216_vm2, %v9048_v3, %v2847_v30  ;;  %v2958_v30 = vrot.slane %v9089_v20, 6 }
0x1036   :  { %v2850_v47 = vrot.slane %v2848_v29, 3 }
0x1038   :  { %2885 = vmatmul.mubr.bf16.vlgmr.msra.gmra.mrb[60].mxu1 %v2850_v47  ;;  %2926 = vmatmul.mubr.bf16.vlgmr.msra.gmra.mrb[60].mxu0 %v2850_v47 }
0x1039   :  { %2967 = vmatpush1.bf16.msra.mxu1 %v8792_v45  ;;  %3008 = vmatpush1.bf16.msra.mxu0 %v8794_v46 }
0x103a   :  { %2968 = vmatprep.subr.bf16.mxu1 %v8797_v7  ;;  %3009 = vmatprep.subr.bf16.mxu0 %v8799_v48 }
0x103b   :  { %2998 = vmatprep.mubr.bf16.mxu1 %v9406_v34  ;;  %3039 = vmatprep.mubr.bf16.mxu0 %v9406_v34 }
0x103d   :  { %2969 = vmatpush1.bf16.msra.mxu1 %v8803_v49  ;;  %3010 = vmatpush1.bf16.msra.mxu0 %v8805_v50 }
0x103e   :  { %2970 = vmatprep.subr.bf16.mxu1 %v8809_v32  ;;  %3011 = vmatprep.subr.bf16.mxu0 %v8811_v16 }
0x1041   :  { %2971 = vmatpush1.bf16.msra.mxu1 %v8817_v51  ;;  %3012 = vmatpush1.bf16.msra.mxu0 %v8819_v52 }
0x1042   :  { %2972 = vmatprep.subr.bf16.mxu1 %v8823_v53  ;;  %3013 = vmatprep.subr.bf16.mxu0 %v8825_v54 }
0x1045   :  { %2973 = vmatpush1.bf16.msra.mxu1 %v8829_v55  ;;  %3014 = vmatpush1.bf16.msra.mxu0 %v8831_v56 }
0x1046   :  { %2974 = vmatprep.subr.bf16.mxu1 %v8835_v57  ;;  %3015 = vmatprep.subr.bf16.mxu0 %v8837_v58 }
0x1049   :  { %2975 = vmatpush1.bf16.msra.mxu1 %v8841_v59  ;;  %3016 = vmatpush1.bf16.msra.mxu0 %v8843_v60 }
0x104a   :  { %2976 = vmatprep.subr.bf16.mxu1 %v8847_v61  ;;  %3017 = vmatprep.subr.bf16.mxu0 %v8849_v62 }
0x104d   :  { %2977 = vmatpush1.bf16.msra.mxu1 %v8853_v21  ;;  %3018 = vmatpush1.bf16.msra.mxu0 %v8855_v12 }
0x104e   :  { %2978 = vmatprep.subr.bf16.mxu1 %v8859_v14  ;;  %3019 = vmatprep.subr.bf16.mxu0 %v8861_v15 }
0x1051   :  { %2979 = vmatpush1.bf16.msra.mxu1 %v8865_v13  ;;  %3020 = vmatpush1.bf16.msra.mxu0 %v8867_v5 }
0x1052   :  { %2980 = vmatprep.subr.bf16.mxu1 %v8871_v22  ;;  %3021 = vmatprep.subr.bf16.mxu0 %v8873_v28 }
0x1055   :  { %2981 = vmatpush1.bf16.msra.mxu1 %v8877_v8  ;;  %3022 = vmatpush1.bf16.msra.mxu0 %v8879_v10 }
0x1056   :  { %3095 = vmatprep.subr.bf16.mxu1 %v8779_v25  ;;  %3136 = vmatprep.subr.bf16.mxu0 %v8781_v26 }
0x110b   :  { %v2886_v35 = vpop.f32.mrb[60].mxu1  ;;  %v2927_v3 = vpop.f32.mrb[60].mxu0 }
0x110c   :  { %v2934_v17 = vadd.f32 %v2886_v35, %v8929_v19  ;;  %v2888_v41 = vpop.f32.mrb[61].mxu1  ;;  %v2929_v18 = vpop.f32.mrb[61].mxu0  ;;  %v2936_v26 = vadd.f32 %v2927_v3, %v8931_v23 }
0x110d   :  { %v2935_v33 = vadd.f32 %v2888_v41, %v8933_v27  ;;  %v2890_v9 = vpop.f32.mrb[62].mxu1  ;;  %v2931_v40 = vpop.f32.mrb[62].mxu0  ;;  %v2937_v25 = vadd.f32 %v2929_v18, %v8935_v38 }
0x110e   :  { %v6192_v0 = vmul.f32 -1.442695, %v2934_v17  ;;  %v2891_v39 = vpop.f32.mrb[63].mxu1  ;;  %v2932_v24 = vpop.f32.mrb[63].mxu0 }
0x110f   :  { %v6193_v37 = vmul.f32 -1.442695, %v2935_v33  ;;  %v6194_v2 = vmul.f32 -1.442695, %v2937_v25 }
0x1110   :  { %7382 = vpow2.f32 %v6192_v0 }
0x1111   :  { %7384 = vpow2.f32 %v6193_v37 }
0x1112   :  { %7386 = vpow2.f32 %v6194_v2 }
0x1113   :  { %7388 = vtanh.f32 %v2936_v26 }
0x111a   :  { %v7383_v63 = vpop.eup %7382 }
0x111b   :  { %v7385_v6 = vpop.eup %7384  ;;  %v2941_v11 = vadd.f32 1.0, %v7383_v63  ;;  %v7484_v63 = vld [vmem:[#allocation14] ss:$16 sps:$4 sm:$0xff]  }
0x111c   :  { %v2947_v36 = vadd.f32 1.0, %v7385_v6  ;;  %v7387_v42 = vpop.eup %7386  ;;  %v7485_v6 = vld [vmem:[#allocation14 + $0x8] ss:$16 sps:$4 sm:$0xff]  }
0x111d   :  { %7390 = vrcp.f32 %v2941_v11  ;;  %v7389_v31 = vpop.eup %7388  ;;  %v2954_v35 = vadd.f32 1.0, %v7387_v42  ;;  %v7486_v11 = vld [vmem:[#allocation14 + $0x24] ss:$16 sps:$4 sm:$0xff]   ;;  %v7488_v42 = vld [vmem:[#allocation14 + $0x20] ss:$16 sps:$4 sm:$0xff]  }
0x111e   :  { %7392 = vrcp.f32 %v2947_v36  ;;  %v7487_v36 = vld [vmem:[#allocation14 + $0x2c] ss:$16 sps:$4 sm:$0xff]  }
0x111f   :  { %7394 = vrcp.f32 %v2954_v35  ;;  %v7494_v35 = vld [vmem:[#allocation14 + $0x64] ss:$16 sps:$4 sm:$0xff]  }
0x1127   :  { %v7391_v43 = vpop.eup %7390 }
0x1128   :  { %v7393_v29 = vpop.eup %7392  ;;  %v2961_v47 = vmul.f32 %v7391_v43, %v7389_v31  ;;  %v7489_v31 = vld [vmem:[#allocation14 + $0x28] ss:$16 sps:$4 sm:$0xff]   ;;  %v7490_v43 = vld [vmem:[#allocation14 + $0x44] ss:$16 sps:$4 sm:$0xff]  }
0x1129   :  { %v2960_v17 = vmul.f32 %v7393_v29, %v2958_v30  ;;  %v7395_v3 = vpop.eup %7394  ;;  %v7491_v30 = vld [vmem:[#allocation14 + $0x4c] ss:$16 sps:$4 sm:$0xff]   ;;  %v7492_v29 = vld [vmem:[#allocation14 + $0x40] ss:$16 sps:$4 sm:$0xff]  }
0x112b   :  { %v9135_v41 = vadd.f32 %v2961_v47, %v2960_v17  ;;  %v7493_v47 = vld [vmem:[#allocation14 + $0x48] ss:$16 sps:$4 sm:$0xff]   ;;  %v7495_v17 = vld [vmem:[#allocation14 + $0x6c] ss:$16 sps:$4 sm:$0xff]  }
0x112d   :  { %7396 = vtanh.f32 %v9135_v41 }
0x1137   :  { %v7397_v18 = vpop.eup %7396 }
0x1138   :  { %v9138_v33 = vmul.f32 %v7397_v18, %v7395_v3  ;;  %v7497_v3 = vld [vmem:[#allocation14 + $0x68] ss:$16 sps:$4 sm:$0xff]   ;;  %v7498_v18 = vld [vmem:[#allocation14 + $0x84] ss:$16 sps:$4 sm:$0xff]  }
0x113a   :  { %v2965_v9 = vpack.c.bf16 %v9138_v33, %v9138_v33 }
0x113c   :  { %2999 = vmatmul.mubr.bf16.vlgmr.msra.gmra.mrb[64].mxu1 %v2965_v9  ;;  %3040 = vmatmul.mubr.bf16.vlgmr.msra.gmra.mrb[64].mxu0 %v2965_v9  ;;  %v7499_v9 = vld [vmem:[#allocation14 + $0x8c] ss:$16 sps:$4 sm:$0xff]  }
0x113d   :  { %3096 = vmatpush1.bf16.msra.mxu1 %v8792_v45  ;;  %3137 = vmatpush1.bf16.msra.mxu0 %v8794_v46  ;;  %v7482_v45 = vld [vmem:[#allocation14 + $0x4] ss:$16 sps:$4 sm:$0xff]   ;;  %v7483_v46 = vld [vmem:[#allocation14 + $0xc] ss:$16 sps:$4 sm:$0xff]  }
0x113e   :  { %3097 = vmatprep.subr.bf16.mxu1 %v8797_v7  ;;  %3138 = vmatprep.subr.bf16.mxu0 %v8799_v48 }
0x113f   :  { %3127 = vmatprep.mubr.bf16.mxu1 %v9406_v34  ;;  %3168 = vmatprep.mubr.bf16.mxu0 %v9406_v34 }
0x1141   :  { %3098 = vmatpush1.bf16.msra.mxu1 %v8803_v49  ;;  %3139 = vmatpush1.bf16.msra.mxu0 %v8805_v50 }
0x1142   :  { %3099 = vmatprep.subr.bf16.mxu1 %v8809_v32  ;;  %3140 = vmatprep.subr.bf16.mxu0 %v8811_v16 }
0x1145   :  { %3100 = vmatpush1.bf16.msra.mxu1 %v8817_v51  ;;  %3141 = vmatpush1.bf16.msra.mxu0 %v8819_v52 }
0x1146   :  { %3101 = vmatprep.subr.bf16.mxu1 %v8823_v53  ;;  %3142 = vmatprep.subr.bf16.mxu0 %v8825_v54 }
0x1149   :  { %3102 = vmatpush1.bf16.msra.mxu1 %v8829_v55  ;;  %3143 = vmatpush1.bf16.msra.mxu0 %v8831_v56 }
0x114a   :  { %3103 = vmatprep.subr.bf16.mxu1 %v8835_v57  ;;  %3144 = vmatprep.subr.bf16.mxu0 %v8837_v58 }
0x114d   :  { %3104 = vmatpush1.bf16.msra.mxu1 %v8841_v59  ;;  %3145 = vmatpush1.bf16.msra.mxu0 %v8843_v60 }
0x114e   :  { %3105 = vmatprep.subr.bf16.mxu1 %v8847_v61  ;;  %3146 = vmatprep.subr.bf16.mxu0 %v8849_v62 }
0x1151   :  { %3106 = vmatpush1.bf16.msra.mxu1 %v8853_v21  ;;  %3147 = vmatpush1.bf16.msra.mxu0 %v8855_v12 }
0x1152   :  { %3107 = vmatprep.subr.bf16.mxu1 %v8859_v14  ;;  %3148 = vmatprep.subr.bf16.mxu0 %v8861_v15 }
0x1155   :  { %3108 = vmatpush1.bf16.msra.mxu1 %v8865_v13  ;;  %3149 = vmatpush1.bf16.msra.mxu0 %v8867_v5 }
0x1156   :  { %3109 = vmatprep.subr.bf16.mxu1 %v8871_v22  ;;  %3150 = vmatprep.subr.bf16.mxu0 %v8873_v28 }
0x1159   :  { %3110 = vmatpush1.bf16.msra.mxu1 %v8877_v8  ;;  %3151 = vmatpush1.bf16.msra.mxu0 %v8879_v10  ;;  %v3084_v8 = vrot.slane %v9135_v41, 6  ;;  %v7496_v41 = vld [vmem:[#allocation14 + $0x60] ss:$16 sps:$4 sm:$0xff]  }
0x115a   :  { %3224 = vmatprep.subr.bf16.mxu1 %v7482_v45  ;;  %3265 = vmatprep.subr.bf16.mxu0 %v7483_v46  ;;  %v7500_v45 = vld [vmem:[#allocation14 + $0x80] ss:$16 sps:$4 sm:$0xff]   ;;  %v7501_v46 = vld [vmem:[#allocation14 + $0x88] ss:$16 sps:$4 sm:$0xff]  }
0x120f   :  { %v3000_v7 = vpop.f32.mrb[64].mxu1  ;;  %v3041_v48 = vpop.f32.mrb[64].mxu0 }
0x1210   :  { %v3052_v49 = vrot.slane %v3000_v7, 6  ;;  %v3002_v50 = vpop.f32.mrb[65].mxu1  ;;  %v3043_v32 = vpop.f32.mrb[65].mxu0  ;;  %v3054_v61 = vrot.slane %v3041_v48, 6  ;;  %v7502_v7 = vld [vmem:[#allocation14 + $0xa4] ss:$16 sps:$4 sm:$0xff]  }
0x1211   :  { %v3053_v16 = vrot.slane %v3002_v50, 6  ;;  %v3004_v51 = vpop.f32.mrb[66].mxu1  ;;  %v3045_v52 = vpop.f32.mrb[66].mxu0  ;;  %v3055_v59 = vrot.slane %v3043_v32, 6  ;;  %v7503_v48 = vld [vmem:[#allocation14 + $0xac] ss:$16 sps:$4 sm:$0xff]  }
0x1212   :  { %v3060_v53 = vadd.f32 %v3052_v49, %v8929_v19  ;;  %v3005_v54 = vpop.f32.mrb[67].mxu1  ;;  %v3046_v55 = vpop.f32.mrb[67].mxu0  ;;  %v3062_v21 = vadd.f32 %v3054_v61, %v8931_v23  ;;  %v7504_v49 = vld [vmem:[#allocation14 + $0xa0] ss:$16 sps:$4 sm:$0xff]   ;;  %v7505_v50 = vld [vmem:[#allocation14 + $0xa8] ss:$16 sps:$4 sm:$0xff]  }
0x1213   :  { %v3061_v56 = vadd.f32 %v3053_v16, %v8933_v27  ;;  %v3063_v60 = vadd.f32 %v3055_v59, %v8935_v38  ;;  %v7506_v32 = vld [vmem:[#allocation14 + $0xc4] ss:$16 sps:$4 sm:$0xff]   ;;  %v7507_v16 = vld [vmem:[#allocation14 + $0xcc] ss:$16 sps:$4 sm:$0xff]   ;;  %v7508_v51 = vld [vmem:[#allocation14 + $0xc0] ss:$16 sps:$4 sm:$0xff]  }
0x1214   :  { %v6195_v57 = vmul.f32 -1.442695, %v3060_v53  ;;  %v7509_v52 = vld [vmem:[#allocation14 + $0xc8] ss:$16 sps:$4 sm:$0xff]   ;;  %v7510_v53 = vld [vmem:[#allocation14 + $0xe4] ss:$16 sps:$4 sm:$0xff]  }
0x1215   :  { %v6196_v58 = vmul.f32 -1.442695, %v3061_v56  ;;  %v6197_v62 = vmul.f32 -1.442695, %v3063_v60  ;;  %v7511_v54 = vld [vmem:[#allocation14 + $0xec] ss:$16 sps:$4 sm:$0xff]  }
0x1216   :  { %7398 = vpow2.f32 %v6195_v57  ;;  %v7512_v55 = vld [vmem:[#allocation14 + $0xe0] ss:$16 sps:$4 sm:$0xff]   ;;  %v7513_v56 = vld [vmem:[#allocation14 + $0xe8] ss:$16 sps:$4 sm:$0xff]  }
0x1217   :  { %7400 = vpow2.f32 %v6196_v58 }
0x1218   :  { %7402 = vpow2.f32 %v6197_v62 }
0x1219   :  { %7404 = vtanh.f32 %v3062_v21 }
0x1220   :  { %v7399_v12 = vpop.eup %7398 }
0x1221   :  { %v7401_v14 = vpop.eup %7400  ;;  %v3067_v15 = vadd.f32 1.0, %v7399_v12 }
0x1222   :  { %v3073_v13 = vadd.f32 1.0, %v7401_v14  ;;  %v7403_v5 = vpop.eup %7402 }
0x1223   :  { %7406 = vrcp.f32 %v3067_v15  ;;  %v7405_v22 = vpop.eup %7404  ;;  %v3080_v40 = vadd.f32 1.0, %v7403_v5 }
0x1224   :  { %7408 = vrcp.f32 %v3073_v13 }
0x1225   :  { %7410 = vrcp.f32 %v3080_v40 }
0x122d   :  { %v7407_v28 = vpop.eup %7406 }
0x122e   :  { %v7409_v10 = vpop.eup %7408  ;;  %v3087_v20 = vmul.f32 %v7407_v28, %v7405_v22 }
0x122f   :  { %v3086_v0 = vmul.f32 %v7409_v10, %v3084_v8  ;;  %v7411_v24 = vpop.eup %7410 }
0x1231   :  { %v9179_v39 = vadd.f32 %v3087_v20, %v3086_v0 }
0x1233   :  { %7412 = vtanh.f32 %v9179_v39 }
0x123d   :  { %v7413_v37 = vpop.eup %7412 }
0x123e   :  { %v9182_v25 = vmul.f32 %v7413_v37, %v7411_v24 }
0x1240   :  { %v3091_v2 = vpack.c.bf16 %v9182_v25, %v9182_v25 }
0x1242   :  { %v3093_v26 = vrot.slane %v3091_v2, 1 }
0x1244   :  { %3128 = vmatmul.mubr.bf16.vlgmr.msra.gmra.mrb[68].mxu1 %v3093_v26  ;;  %3169 = vmatmul.mubr.bf16.vlgmr.msra.gmra.mrb[68].mxu0 %v3093_v26 }
0x1245   :  { %3225 = vmatpush1.bf16.msra.mxu1 %v7484_v63  ;;  %3266 = vmatpush1.bf16.msra.mxu0 %v7485_v6 }
0x1246   :  { %3226 = vmatprep.subr.bf16.mxu1 %v7486_v11  ;;  %3267 = vmatprep.subr.bf16.mxu0 %v7487_v36  ;;  %v3213_v36 = vrot.slane %v9179_v39, 6 }
0x1247   :  { %3256 = vmatprep.mubr.bf16.mxu1 %v9406_v34  ;;  %3297 = vmatprep.mubr.bf16.mxu0 %v9406_v34 }
0x1249   :  { %3227 = vmatpush1.bf16.msra.mxu1 %v7488_v42  ;;  %3268 = vmatpush1.bf16.msra.mxu0 %v7489_v31 }
0x124a   :  { %3228 = vmatprep.subr.bf16.mxu1 %v7490_v43  ;;  %3269 = vmatprep.subr.bf16.mxu0 %v7491_v30 }
0x124d   :  { %3229 = vmatpush1.bf16.msra.mxu1 %v7492_v29  ;;  %3270 = vmatpush1.bf16.msra.mxu0 %v7493_v47 }
0x124e   :  { %3230 = vmatprep.subr.bf16.mxu1 %v7494_v35  ;;  %3271 = vmatprep.subr.bf16.mxu0 %v7495_v17 }
0x1251   :  { %3231 = vmatpush1.bf16.msra.mxu1 %v7496_v41  ;;  %3272 = vmatpush1.bf16.msra.mxu0 %v7497_v3  ;;  %v3352_v41 = vsel %vm209_vm1, %v9138_v33, %v9182_v25 }
0x1252   :  { %3232 = vmatprep.subr.bf16.mxu1 %v7498_v18  ;;  %3273 = vmatprep.subr.bf16.mxu0 %v7499_v9 }
0x1255   :  { %3233 = vmatpush1.bf16.msra.mxu1 %v7500_v45  ;;  %3274 = vmatpush1.bf16.msra.mxu0 %v7501_v46 }
0x1256   :  { %3234 = vmatprep.subr.bf16.mxu1 %v7502_v7  ;;  %3275 = vmatprep.subr.bf16.mxu0 %v7503_v48 }
0x1259   :  { %3235 = vmatpush1.bf16.msra.mxu1 %v7504_v49  ;;  %3276 = vmatpush1.bf16.msra.mxu0 %v7505_v50 }
0x125a   :  { %3236 = vmatprep.subr.bf16.mxu1 %v7506_v32  ;;  %3277 = vmatprep.subr.bf16.mxu0 %v7507_v16 }
0x125d   :  { %3237 = vmatpush1.bf16.msra.mxu1 %v7508_v51  ;;  %3278 = vmatpush1.bf16.msra.mxu0 %v7509_v52 }
0x125e   :  { %3238 = vmatprep.subr.bf16.mxu1 %v7510_v53  ;;  %3279 = vmatprep.subr.bf16.mxu0 %v7511_v54 }
0x1261   :  { %3239 = vmatpush1.bf16.msra.mxu1 %v7512_v55  ;;  %3280 = vmatpush1.bf16.msra.mxu0 %v7513_v56 }
0x1317   :  { %v3129_v57 = vpop.f32.mrb[68].mxu1  ;;  %v3170_v58 = vpop.f32.mrb[68].mxu0 }
0x1318   :  { %v3181_v59 = vrot.slane %v3129_v57, 4  ;;  %v3131_v60 = vpop.f32.mrb[69].mxu1  ;;  %v3172_v61 = vpop.f32.mrb[69].mxu0  ;;  %v3183_v20 = vrot.slane %v3170_v58, 4 }
0x1319   :  { %v3182_v62 = vrot.slane %v3131_v60, 4  ;;  %v3133_v21 = vpop.f32.mrb[70].mxu1  ;;  %v3174_v12 = vpop.f32.mrb[70].mxu0  ;;  %v3184_v8 = vrot.slane %v3172_v61, 4 }
0x131a   :  { %v3189_v14 = vadd.f32 %v3181_v59, %v8929_v19  ;;  %v3134_v15 = vpop.f32.mrb[71].mxu1  ;;  %v3175_v13 = vpop.f32.mrb[71].mxu0  ;;  %v3191_v0 = vadd.f32 %v3183_v20, %v8931_v23 }
0x131b   :  { %v3190_v5 = vadd.f32 %v3182_v62, %v8933_v27  ;;  %v3192_v10 = vadd.f32 %v3184_v8, %v8935_v38 }
0x131c   :  { %v6198_v22 = vmul.f32 -1.442695, %v3189_v14 }
0x131d   :  { %v6199_v28 = vmul.f32 -1.442695, %v3190_v5  ;;  %v6200_v40 = vmul.f32 -1.442695, %v3192_v10 }
0x131e   :  { %7414 = vpow2.f32 %v6198_v22 }
0x131f   :  { %7416 = vpow2.f32 %v6199_v28 }
0x1320   :  { %7418 = vpow2.f32 %v6200_v40  ;;  %v6788_v40 = vld [vmem:[%s9369_s13] sm:$0xff]  }
0x1321   :  { %7420 = vtanh.f32 %v3191_v0  ;;  %v3383_v0 = vld [vmem:[%s9370_s14 + $0x8] sm:$0xff] }
0x1328   :  { %v7415_v24 = vpop.eup %7414 }
0x1329   :  { %v7417_v37 = vpop.eup %7416  ;;  %v3196_v2 = vadd.f32 1.0, %v7415_v24  ;;  %v3476_v24 = vld [vmem:[%s9371_s15] sm:$0xff] }
0x132a   :  { %v3202_v26 = vadd.f32 1.0, %v7417_v37  ;;  %v7419_v63 = vpop.eup %7418  ;;  %v3477_v37 = vld [vmem:[%s9371_s15 + $0x8] sm:$0xff] }
0x132b   :  { %7422 = vrcp.f32 %v3196_v2  ;;  %v7421_v6 = vpop.eup %7420  ;;  %v3209_v43 = vadd.f32 1.0, %v7419_v63  ;;  %v6793_v2 = vld [vmem:[#allocation17 + $0x80] ss:$8 sps:$4 sm:$0xff]  }
0x132c   :  { %7424 = vrcp.f32 %v3202_v26  ;;  %v6795_v26 = vld [vmem:[#allocation17 + $0x84] ss:$8 sps:$4 sm:$0xff]  }
0x132d   :  { %7426 = vrcp.f32 %v3209_v43  ;;  %v3504_v63 = vld [vmem:[%s9372_s16] sm:$0xff]  ;;  %3654 = vmatprep.subr.bf16.mxu0 %v6795_v26 }
0x132e   :  { %v6807_v43 = vld [vmem:[#allocation17 + $0xa4] ss:$8 sps:$4 sm:$0xff]  }
0x1335   :  { %v7423_v11 = vpop.eup %7422 }
0x1336   :  { %v7425_v42 = vpop.eup %7424  ;;  %v3216_v31 = vmul.f32 %v7423_v11, %v7421_v6  ;;  %v3505_v6 = vld [vmem:[%s9372_s16 + $0x8] sm:$0xff] }
0x1337   :  { %v3215_v30 = vmul.f32 %v7425_v42, %v3213_v36  ;;  %v7427_v47 = vpop.eup %7426  ;;  %v6801_v11 = vld [vmem:[#allocation17 + $0x94] ss:$8 sps:$4 sm:$0xff]   ;;  %v6799_v36 = vld [vmem:[#allocation17 + $0x90] ss:$8 sps:$4 sm:$0xff]  }
0x1338   :  { %v3384_v42 = vld [vmem:[%s9370_s14 + $0x10] sm:$0xff] }
0x1339   :  { %v3217_v29 = vadd.f32 %v3216_v31, %v3215_v30  ;;  %v3385_v31 = vld [vmem:[%s9370_s14 + $0x18] sm:$0xff] }
0x133a   :  { %v6805_v30 = vld [vmem:[#allocation17 + $0xa0] ss:$8 sps:$4 sm:$0xff]  }
0x133b   :  { %7428 = vtanh.f32 %v3217_v29  ;;  %v3342_v12 = vrot.slane %v3217_v29, 6  ;;  %v3478_v29 = vld [vmem:[%s9371_s15 + $0x10] sm:$0xff] }
0x1345   :  { %v7429_v35 = vpop.eup %7428 }
0x1346   :  { %v3219_v17 = vmul.f32 %v7429_v35, %v7427_v47  ;;  %v3479_v47 = vld [vmem:[%s9371_s15 + $0x18] sm:$0xff]  ;;  %v6813_v35 = vld [vmem:[#allocation17 + $0xb4] ss:$8 sps:$4 sm:$0xff]  }
0x1348   :  { %v3220_v3 = vpack.c.bf16 %v3219_v17, %v3219_v17  ;;  %v3353_v18 = vsel %vm1855_vm9, %v3352_v41, %v3219_v17  ;;  %v6811_v17 = vld [vmem:[#allocation17 + $0xb0] ss:$8 sps:$4 sm:$0xff]  }
0x1349   :  { %v3506_v41 = vld [vmem:[%s9372_s16 + $0x10] sm:$0xff] }
0x134a   :  { %v3222_v9 = vrot.slane %v3220_v3, 2  ;;  %v3507_v3 = vld [vmem:[%s9372_s16 + $0x18] sm:$0xff] }
0x134c   :  { %3257 = vmatmul.mubr.bf16.vlgmr.msra.gmra.mrb[72].mxu1 %v3222_v9  ;;  %3298 = vmatmul.mubr.bf16.vlgmr.msra.gmra.mrb[72].mxu0 %v3222_v9 }
0x134d   :  { %3686 = vmatprep.mubr.bf16.mxu0 %v9406_v34  ;;  %6553 = vmatprep.mubr.msk.bf16.mxu1 %vm3416_vm10, %v6788_v40 }
0x134e   :  { %3655 = vmatpush1.bf16.msra.mxu0 %v6793_v2 }
0x134f   :  { %3656 = vmatprep.subr.bf16.mxu0 %v6801_v11 }
0x1352   :  { %3657 = vmatpush1.bf16.msra.mxu0 %v6799_v36 }
0x1353   :  { %3658 = vmatprep.subr.bf16.mxu0 %v6807_v43 }
0x1356   :  { %3659 = vmatpush1.bf16.msra.mxu0 %v6805_v30 }
0x1357   :  { %3660 = vmatprep.subr.bf16.mxu0 %v6813_v35 }
0x135a   :  { %3661 = vmatpush1.bf16.msra.mxu0 %v6811_v17 }
0x141f   :  { %v3258_v39 = vpop.f32.mrb[72].mxu1  ;;  %v3299_v45 = vpop.f32.mrb[72].mxu0 }
0x1420   :  { %v3310_v46 = vrot.slane %v3258_v39, 2  ;;  %v3260_v7 = vpop.f32.mrb[73].mxu1  ;;  %v3301_v48 = vpop.f32.mrb[73].mxu0  ;;  %v3312_v56 = vrot.slane %v3299_v45, 2 }
0x1421   :  { %v3311_v49 = vrot.slane %v3260_v7, 2  ;;  %v3262_v50 = vpop.f32.mrb[74].mxu1  ;;  %v3303_v32 = vpop.f32.mrb[74].mxu0  ;;  %v3313_v54 = vrot.slane %v3301_v48, 2 }
0x1422   :  { %v3318_v16 = vadd.f32 %v3310_v46, %v8929_v19  ;;  %v3263_v51 = vpop.f32.mrb[75].mxu1  ;;  %v3304_v33 = vpop.f32.mrb[75].mxu0  ;;  %v3320_v58 = vadd.f32 %v3312_v56, %v8931_v23  ;;  %v6792_v50 = vld [vmem:[#allocation17 + $0x4] ss:$8 sps:$4 sm:$0xff]   ;;  %v6789_v32 = vld [vmem:[%s9369_s13 + $0x8] sm:$0xff]  }
0x1423   :  { %v3319_v25 = vadd.f32 %v3311_v49, %v8933_v27  ;;  %v3321_v55 = vadd.f32 %v3313_v54, %v8935_v38  ;;  %v6798_v51 = vld [vmem:[#allocation17 + $0x14] ss:$8 sps:$4 sm:$0xff]   ;;  %v6796_v33 = vld [vmem:[#allocation17 + $0x10] ss:$8 sps:$4 sm:$0xff]   ;;  %v6814_v56 = vld [vmem:[#allocation17 + $0x40] ss:$8 sps:$4 sm:$0xff]  }
0x1424   :  { %v6201_v52 = vmul.f32 -1.442695, %v3318_v16  ;;  %v6790_v16 = vld [vmem:[#allocation17] ss:$8 sps:$4 sm:$0xff]   ;;  %v6808_v54 = vld [vmem:[#allocation17 + $0x30] ss:$8 sps:$4 sm:$0xff]  }
0x1425   :  { %v6202_v53 = vmul.f32 -1.442695, %v3319_v25  ;;  %v6203_v57 = vmul.f32 -1.442695, %v3321_v55  ;;  %v6804_v25 = vld [vmem:[#allocation17 + $0x24] ss:$8 sps:$4 sm:$0xff]  }
0x1426   :  { %7430 = vpow2.f32 %v6201_v52  ;;  %v6802_v52 = vld [vmem:[#allocation17 + $0x20] ss:$8 sps:$4 sm:$0xff]   ;;  %v6816_v55 = vld [vmem:[#allocation17 + $0x44] ss:$8 sps:$4 sm:$0xff]  }
0x1427   :  { %7432 = vpow2.f32 %v6202_v53  ;;  %v6810_v53 = vld [vmem:[#allocation17 + $0x34] ss:$8 sps:$4 sm:$0xff]  }
0x1428   :  { %7434 = vpow2.f32 %v6203_v57  ;;  %v6819_v57 = vld [vmem:[#allocation17 + $0xc4] ss:$8 sps:$4 sm:$0xff]  }
0x1429   :  { %7436 = vtanh.f32 %v3320_v58  ;;  %v6817_v58 = vld [vmem:[#allocation17 + $0xc0] ss:$8 sps:$4 sm:$0xff]   ;;  %3662 = vmatprep.subr.bf16.mxu0 %v6819_v57  ;;  %v6847_v57 = vld [vmem:[#allocation17 + $0x110] ss:$8 sps:$4 sm:$0xff]  }
0x142a   :  { %3663 = vmatpush1.bf16.msra.mxu0 %v6817_v58  ;;  %v6855_v58 = vld [vmem:[#allocation17 + $0x124] ss:$8 sps:$4 sm:$0xff]  }
0x1430   :  { %v7431_v59 = vpop.eup %7430 }
0x1431   :  { %v7433_v60 = vpop.eup %7432  ;;  %v3325_v61 = vadd.f32 1.0, %v7431_v59  ;;  %v6822_v59 = vld [vmem:[#allocation17 + $0x54] ss:$8 sps:$4 sm:$0xff]  }
0x1432   :  { %v3331_v19 = vadd.f32 1.0, %v7433_v60  ;;  %v7435_v27 = vpop.eup %7434  ;;  %v6820_v60 = vld [vmem:[#allocation17 + $0x50] ss:$8 sps:$4 sm:$0xff]  }
0x1433   :  { %7438 = vrcp.f32 %v3325_v61  ;;  %v7437_v62 = vpop.eup %7436  ;;  %v3338_v13 = vadd.f32 1.0, %v7435_v27  ;;  %v6825_v61 = vld [vmem:[#allocation17 + $0xd4] ss:$8 sps:$4 sm:$0xff]   ;;  %v6828_v27 = vld [vmem:[#allocation17 + $0x64] ss:$8 sps:$4 sm:$0xff]  }
0x1434   :  { %7440 = vrcp.f32 %v3331_v19  ;;  %v6823_v19 = vld [vmem:[#allocation17 + $0xd0] ss:$8 sps:$4 sm:$0xff]   ;;  %3664 = vmatprep.subr.bf16.mxu0 %v6825_v61  ;;  %v6853_v61 = vld [vmem:[#allocation17 + $0x120] ss:$8 sps:$4 sm:$0xff]  }
0x1435   :  { %7442 = vrcp.f32 %v3338_v13  ;;  %3665 = vmatpush1.bf16.msra.mxu0 %v6823_v19  ;;  %v6837_v13 = vld [vmem:[#allocation17 + $0xf4] ss:$8 sps:$4 sm:$0xff]  }
0x1436   :  { %v6861_v19 = vld [vmem:[#allocation17 + $0x134] ss:$8 sps:$4 sm:$0xff]  }
0x143d   :  { %v7439_v21 = vpop.eup %7438 }
0x143e   :  { %v7441_v14 = vpop.eup %7440  ;;  %v3345_v15 = vmul.f32 %v7439_v21, %v7437_v62  ;;  %v6826_v62 = vld [vmem:[#allocation17 + $0x60] ss:$8 sps:$4 sm:$0xff]   ;;  %v6831_v21 = vld [vmem:[#allocation17 + $0xe4] ss:$8 sps:$4 sm:$0xff]  }
0x143f   :  { %v3344_v38 = vmul.f32 %v7441_v14, %v3342_v12  ;;  %v7443_v23 = vpop.eup %7442  ;;  %v6829_v12 = vld [vmem:[#allocation17 + $0xe0] ss:$8 sps:$4 sm:$0xff]   ;;  %3666 = vmatprep.subr.bf16.mxu0 %v6831_v21  ;;  %v6834_v14 = vld [vmem:[#allocation17 + $0x74] ss:$8 sps:$4 sm:$0xff]   ;;  %v6859_v21 = vld [vmem:[#allocation17 + $0x130] ss:$8 sps:$4 sm:$0xff]  }
0x1440   :  { %3667 = vmatpush1.bf16.msra.mxu0 %v6829_v12  ;;  %v6867_v12 = vld [vmem:[#allocation17 + $0x144] ss:$8 sps:$4 sm:$0xff]  }
0x1441   :  { %v3346_v5 = vadd.f32 %v3345_v15, %v3344_v38  ;;  %v6832_v15 = vld [vmem:[#allocation17 + $0x70] ss:$8 sps:$4 sm:$0xff]   ;;  %3668 = vmatprep.subr.bf16.mxu0 %v6837_v13  ;;  %v6865_v13 = vld [vmem:[#allocation17 + $0x140] ss:$8 sps:$4 sm:$0xff]  }
0x1442   :  { %v6835_v38 = vld [vmem:[#allocation17 + $0xf0] ss:$8 sps:$4 sm:$0xff]  }
0x1443   :  { %7444 = vtanh.f32 %v3346_v5  ;;  %v6840_v5 = vld [vmem:[#allocation17 + $0x184] ss:$8 sps:$4 sm:$0xff]  }
0x1444   :  { %3669 = vmatpush1.bf16.msra.mxu0 %v6835_v38  ;;  %v6873_v38 = vld [vmem:[#allocation17 + $0x154] ss:$8 sps:$4 sm:$0xff]  }
0x144d   :  { %v7445_v22 = vpop.eup %7444 }
0x144e   :  { %v3348_v28 = vmul.f32 %v7445_v22, %v7443_v23  ;;  %v6843_v23 = vld [vmem:[#allocation17 + $0x104] ss:$8 sps:$4 sm:$0xff]  }
0x144f   :  { %3915 = vmatprep.subr.bf16.mxu0 %v6843_v23  ;;  %v6876_v23 = vld [vmem:[#allocation17 + $0x1e4] ss:$8 sps:$4 sm:$0xff]  }
0x1450   :  { %v3354_v8 = vsel %vm216_vm2, %v3353_v18, %v3348_v28 }
0x1451   :  { %v6606_v10 = vpack.i.bf16 %v3354_v8, %v9094_v44  ;;  %v9205_v20 = vpack.c.bf16 %v3354_v8, %v9094_v44  ;;  %v3382_v44 = vld [vmem:[%s9370_s14] sm:$0xff] }
0x1453   :  { %6607 = vrot.lane.b32.xlu1 %v6606_v10, %s7813_s8  ;;  %6602 = vrot.lane.b32.xlu0 %v6606_v10, %s7814_s9 }
0x1457   :  { %3393 = vperm.xlu1 %6612, %v3383_v0   ;;  %3388 = vperm.xlu0 %6611, %v3382_v44  }
0x145b   :  { %3482 = vperm.xlu1 %6612, %v3476_v24   ;;  %3487 = vperm.xlu0 %6611, %v3477_v37  }
0x145f   :  { %3510 = vperm.xlu1 %6612, %v3504_v63   ;;  %3515 = vperm.xlu0 %6611, %v3505_v6  }
0x1463   :  { %3398 = vperm.xlu1 %6612, %v3384_v42   ;;  %3403 = vperm.xlu0 %6611, %v3385_v31  }
0x1467   :  { %3492 = vperm.xlu1 %6612, %v3478_v29   ;;  %3497 = vperm.xlu0 %6611, %v3479_v47  }
0x146b   :  { %3520 = vperm.xlu1 %6612, %v3506_v41   ;;  %3525 = vperm.xlu0 %6611, %v3507_v3  }
0x14c5   :  { %v6603_v18 = vpop.permute.xlu0 %6602  ;;  %v6608_v45 = vpop.permute.xlu1 %6607 }
0x14c6   :  { %v6605_v9 = vunpack.i.h.bf16 %v6603_v18  ;;  %v6604_v39 = vunpack.i.l.bf16 %v6603_v18  ;;  %v6610_v7 = vunpack.i.h.bf16 %v6608_v45  ;;  %v6609_v48 = vunpack.i.l.bf16 %v6608_v45 }
0x14c8   :  { %v6209_v46 = vpack.c.bf16 %v6605_v9, %v6604_v39  ;;  %v6212_v49 = vpack.c.bf16 %v6610_v7, %v6609_v48 }
0x14ca   :  { %6547 = vmatprep.subr.msk.bf16.mxu1 %vm6208_vm13, %v6209_v46 }
0x14cb   :  { %6548 = vmatpush3.bf16.msk.msra.mxu1 %vm6208_vm13, %v6209_v46 }
0x14cc   :  { %6549 = vmatprep.subr.bf16.mxu1 %v9205_v20 }
0x14cf   :  { %6550 = vmatpush3.bf16.msra.mxu1 %v9205_v20 }
0x14d0   :  { %6551 = vmatprep.subr.msk.bf16.mxu1 %vm6211_vm15, %v6212_v49 }
0x14d3   :  { %6552 = vmatpush3.bf16.msk.msra.mxu1 %vm6211_vm15, %v6212_v49 }
0x14d4   :  { %3775 = vmatprep.subr.bf16.mxu1 %v6792_v50 }
0x14d6   :  { %6554 = vmatmul.mubr.msk.bf16.vlgmr.msra.gmra.mrb[76].mxu1 %vm3416_vm10, %v6789_v32  ;;  %v3394_v22 = vpop.permute.xlu1 %3393  ;;  %v3389_v28 = vpop.permute.xlu0 %3388 }
0x14d7   :  { %3776 = vmatpush1.bf16.msra.mxu1 %v6790_v16  ;;  %3807 = vmatprep.mubr.bf16.mxu1 %v9406_v34 }
0x14d8   :  { %3777 = vmatprep.subr.bf16.mxu1 %v6798_v51  ;;  %v6838_v51 = vld [vmem:[#allocation17 + $0x180] ss:$8 sps:$4 sm:$0xff]  }
0x14da   :  { %v3483_v8 = vpop.permute.xlu1 %3482  ;;  %v3488_v10 = vpop.permute.xlu0 %3487 }
0x14db   :  { %3778 = vmatpush1.bf16.msra.mxu1 %v6796_v33 }
0x14dc   :  { %3779 = vmatprep.subr.bf16.mxu1 %v6804_v25  ;;  %v6846_v25 = vld [vmem:[#allocation17 + $0x194] ss:$8 sps:$4 sm:$0xff]  }
0x14de   :  { %v3511_v20 = vpop.permute.xlu1 %3510  ;;  %v3516_v40 = vpop.permute.xlu0 %3515 }
0x14df   :  { %3780 = vmatpush1.bf16.msra.mxu1 %v6802_v52  ;;  %v6841_v52 = vld [vmem:[#allocation17 + $0x100] ss:$8 sps:$4 sm:$0xff]  }
0x14e0   :  { %3781 = vmatprep.subr.bf16.mxu1 %v6810_v53 }
0x14e2   :  { %v3399_v0 = vpop.permute.xlu1 %3398  ;;  %v3404_v44 = vpop.permute.xlu0 %3403 }
0x14e3   :  { %3782 = vmatpush1.bf16.msra.mxu1 %v6808_v54  ;;  %v6849_v54 = vld [vmem:[#allocation17 + $0x114] ss:$8 sps:$4 sm:$0xff]  }
0x14e4   :  { %3783 = vmatprep.subr.bf16.mxu1 %v6816_v55  ;;  %v6844_v55 = vld [vmem:[#allocation17 + $0x190] ss:$8 sps:$4 sm:$0xff]  }
0x14e6   :  { %v3493_v24 = vpop.permute.xlu1 %3492  ;;  %v3498_v63 = vpop.permute.xlu0 %3497 }
0x14e7   :  { %3784 = vmatpush1.bf16.msra.mxu1 %v6814_v56  ;;  %v6852_v56 = vld [vmem:[#allocation17 + $0x1a4] ss:$8 sps:$4 sm:$0xff]  }
0x14e8   :  { %3785 = vmatprep.subr.bf16.mxu1 %v6822_v59  ;;  %v6850_v59 = vld [vmem:[#allocation17 + $0x1a0] ss:$8 sps:$4 sm:$0xff]  }
0x14ea   :  { %v3521_v35 = vpop.permute.xlu1 %3520  ;;  %v3526_v9 = vpop.permute.xlu0 %3525 }
0x14eb   :  { %3786 = vmatpush1.bf16.msra.mxu1 %v6820_v60  ;;  %v6858_v60 = vld [vmem:[#allocation17 + $0x1b4] ss:$8 sps:$4 sm:$0xff]  }
0x14ec   :  { %3787 = vmatprep.subr.bf16.mxu1 %v6828_v27  ;;  %v6856_v27 = vld [vmem:[#allocation17 + $0x1b0] ss:$8 sps:$4 sm:$0xff]  }
0x14ef   :  { %3788 = vmatpush1.bf16.msra.mxu1 %v6826_v62  ;;  %v6864_v62 = vld [vmem:[#allocation17 + $0x1c4] ss:$8 sps:$4 sm:$0xff]  }
0x14f0   :  { %3789 = vmatprep.subr.bf16.mxu1 %v6834_v14  ;;  %v6862_v14 = vld [vmem:[#allocation17 + $0x1c0] ss:$8 sps:$4 sm:$0xff]  }
0x14f3   :  { %3790 = vmatpush1.bf16.msra.mxu1 %v6832_v15  ;;  %v6870_v15 = vld [vmem:[#allocation17 + $0x1d4] ss:$8 sps:$4 sm:$0xff]  }
0x14f4   :  { %4057 = vmatprep.subr.bf16.mxu1 %v6840_v5  ;;  %v6868_v5 = vld [vmem:[#allocation17 + $0x1d0] ss:$8 sps:$4 sm:$0xff]  }
0x15a9   :  { %v6555_v37 = vpop.f32.mrb[76].mxu1 }
0x15aa   :  { %v3466_v2 = vadd.f32 %v6555_v37, %v3399_v0  ;;  %v3457_v26 = vpop.f32.mrb[77].mxu1  ;;  %v6880_v0 = vld [vmem:[#allocation17 + $0x1f0] ss:$8 sps:$4 sm:$0xff]   ;;  %v6891_v37 = vld [vmem:[#allocation17 + $0x204] ss:$8 sps:$4 sm:$0xff]  }
0x15ab   :  { %v3458_v6 = vadd.f32 %v3457_v26, %v3389_v28  ;;  %v6556_v11 = vpop.f32.mrb[78].mxu1  ;;  %v6879_v28 = vld [vmem:[#allocation17 + $0x164] ss:$8 sps:$4 sm:$0xff]  }
0x15ac   :  { %v3474_v36 = vmax.f32 %v3466_v2, 0.0  ;;  %v3469_v42 = vadd.f32 %v6556_v11, %v3404_v44  ;;  %v3460_v31 = vpop.f32.mrb[79].mxu1  ;;  %v6888_v44 = vld [vmem:[#allocation17 + $0x284] ss:$8 sps:$4 sm:$0xff]   ;;  %v6886_v2 = vld [vmem:[#allocation17 + $0x280] ss:$8 sps:$4 sm:$0xff]  }
0x15ad   :  { %v3472_v43 = vmax.f32 %v3458_v6, 0.0  ;;  %v3461_v30 = vadd.f32 %v3460_v31, %v3394_v22  ;;  %v6871_v22 = vld [vmem:[#allocation17 + $0x150] ss:$8 sps:$4 sm:$0xff]   ;;  %v6889_v6 = vld [vmem:[#allocation17 + $0x200] ss:$8 sps:$4 sm:$0xff]  }
0x15ae   :  { %v3502_v29 = vmul.f32 %v3493_v24, %v3474_v36  ;;  %v3475_v47 = vmax.f32 %v3469_v42, 0.0  ;;  %v6883_v24 = vld [vmem:[#allocation17 + $0x170] ss:$8 sps:$4 sm:$0xff]   ;;  %v6897_v36 = vld [vmem:[#allocation17 + $0x214] ss:$8 sps:$4 sm:$0xff]  }
0x15af   :  { %v3500_v17 = vmul.f32 %v3483_v8, %v3472_v43  ;;  %v3473_v41 = vmax.f32 %v3461_v30, 0.0  ;;  %v6874_v8 = vld [vmem:[#allocation17 + $0x1e0] ss:$8 sps:$4 sm:$0xff]   ;;  %v6892_v42 = vld [vmem:[#allocation17 + $0x290] ss:$8 sps:$4 sm:$0xff]  }
0x15b0   :  { %v3530_v3 = vadd.f32 %v3521_v35, %v3502_v29  ;;  %v3503_v18 = vmul.f32 %v3498_v63, %v3475_v47  ;;  %v6894_v63 = vld [vmem:[#allocation17 + $0x294] ss:$8 sps:$4 sm:$0xff]   ;;  %v6900_v31 = vld [vmem:[#allocation17 + $0x2a4] ss:$8 sps:$4 sm:$0xff]   ;;  %v6895_v43 = vld [vmem:[#allocation17 + $0x210] ss:$8 sps:$4 sm:$0xff]  }
0x15b1   :  { %v3528_v39 = vadd.f32 %v3511_v20, %v3500_v17  ;;  %v3501_v45 = vmul.f32 %v3488_v10, %v3473_v41  ;;  %v6882_v10 = vld [vmem:[#allocation17 + $0x1f4] ss:$8 sps:$4 sm:$0xff]   ;;  %v6877_v20 = vld [vmem:[#allocation17 + $0x160] ss:$8 sps:$4 sm:$0xff]   ;;  %v6903_v30 = vld [vmem:[#allocation17 + $0x224] ss:$8 sps:$4 sm:$0xff]  }
0x15b2   :  { %v3531_v46 = vadd.f32 %v3526_v9, %v3503_v18  ;;  %v3534_v48 = vmax.f32 %v3530_v3, 0.0  ;;  %v6898_v29 = vld [vmem:[#allocation17 + $0x2a0] ss:$8 sps:$4 sm:$0xff]   ;;  %v6906_v47 = vld [vmem:[#allocation17 + $0x2b4] ss:$8 sps:$4 sm:$0xff]  }
0x15b3   :  { %v3529_v7 = vadd.f32 %v3516_v40, %v3501_v45  ;;  %v3532_v50 = vmax.f32 %v3528_v39, 0.0  ;;  %v6885_v40 = vld [vmem:[#allocation17 + $0x174] ss:$8 sps:$4 sm:$0xff]   ;;  %v6901_v35 = vld [vmem:[#allocation17 + $0x220] ss:$8 sps:$4 sm:$0xff]  }
0x15b4   :  { %v3535_v49 = vmax.f32 %v3531_v46, 0.0  ;;  %v6909_v17 = vld [vmem:[#allocation17 + $0x234] ss:$8 sps:$4 sm:$0xff]   ;;  %v6904_v41 = vld [vmem:[#allocation17 + $0x2b0] ss:$8 sps:$4 sm:$0xff]  }
0x15b5   :  { %v3533_v32 = vmax.f32 %v3529_v7, 0.0  ;;  %v6912_v3 = vld [vmem:[#allocation17 + $0x2c4] ss:$8 sps:$4 sm:$0xff]   ;;  %v6907_v18 = vld [vmem:[#allocation17 + $0x230] ss:$8 sps:$4 sm:$0xff]  }
0x15b6   :  { %v9254_v16 = vpack.c.bf16 %v3535_v49, %v3534_v48  ;;  %v6915_v9 = vld [vmem:[#allocation17 + $0x244] ss:$8 sps:$4 sm:$0xff]   ;;  %v6910_v39 = vld [vmem:[#allocation17 + $0x2c0] ss:$8 sps:$4 sm:$0xff]   ;;  %v6918_v45 = vld [vmem:[#allocation17 + $0x2d4] ss:$8 sps:$4 sm:$0xff]  }
0x15b7   :  { %v9256_v33 = vpack.c.bf16 %v3533_v32, %v3532_v50  ;;  %v6913_v46 = vld [vmem:[#allocation17 + $0x240] ss:$8 sps:$4 sm:$0xff]   ;;  %v6921_v7 = vld [vmem:[#allocation17 + $0x254] ss:$8 sps:$4 sm:$0xff]   ;;  %v6916_v48 = vld [vmem:[#allocation17 + $0x2d0] ss:$8 sps:$4 sm:$0xff]  }
0x15b8   :  { %v6924_v49 = vld [vmem:[#allocation17 + $0x2e4] ss:$8 sps:$4 sm:$0xff]   ;;  %v6919_v50 = vld [vmem:[#allocation17 + $0x250] ss:$8 sps:$4 sm:$0xff]  }
0x15b9   :  { %3808 = vmatmul.mubr.bf16.vlgmr.msra.gmra.mrb[80].mxu1 %v9256_v33  ;;  %v3572_v53 = vrot.slane %v9256_v33, 1  ;;  %v3975_v26 = vrot.slane %v9256_v33, 3  ;;  %v3833_v11 = vrot.slane %v9256_v33, 2  ;;  %v6927_v32 = vld [vmem:[#allocation17 + $0x264] ss:$8 sps:$4 sm:$0xff]  }
0x15ba   :  { %4058 = vmatpush1.bf16.msra.mxu1 %v6838_v51  ;;  %4089 = vmatprep.mubr.bf16.mxu1 %v9406_v34  ;;  %v6922_v51 = vld [vmem:[#allocation17 + $0x2e0] ss:$8 sps:$4 sm:$0xff]  }
0x15bb   :  { %3687 = vmatmul.mubr.bf16.vlgmr.msra.gmra.mrb[76].mxu0 %v3572_v53  ;;  %4059 = vmatprep.subr.bf16.mxu1 %v6846_v25  ;;  %v6930_v25 = vld [vmem:[#allocation17 + $0x2f4] ss:$8 sps:$4 sm:$0xff]  }
0x15bc   :  { %3916 = vmatpush1.bf16.msra.mxu0 %v6841_v52  ;;  %3947 = vmatprep.mubr.bf16.mxu0 %v9406_v34  ;;  %v6925_v52 = vld [vmem:[#allocation17 + $0x260] ss:$8 sps:$4 sm:$0xff]   ;;  %v6933_v53 = vld [vmem:[#allocation17 + $0x274] ss:$8 sps:$4 sm:$0xff]  }
0x15bd   :  { %3917 = vmatprep.subr.bf16.mxu0 %v6849_v54  ;;  %v6928_v54 = vld [vmem:[#allocation17 + $0x2f0] ss:$8 sps:$4 sm:$0xff]  }
0x15be   :  { %4060 = vmatpush1.bf16.msra.mxu1 %v6844_v55  ;;  %v6936_v55 = vld [vmem:[#allocation17 + $0x384] ss:$8 sps:$4 sm:$0xff]  }
0x15bf   :  { %4061 = vmatprep.subr.bf16.mxu1 %v6852_v56  ;;  %v6931_v56 = vld [vmem:[#allocation17 + $0x270] ss:$8 sps:$4 sm:$0xff]  }
0x15c0   :  { %3918 = vmatpush1.bf16.msra.mxu0 %v6847_v57  ;;  %v6939_v57 = vld [vmem:[#allocation17 + $0x304] ss:$8 sps:$4 sm:$0xff]  }
0x15c1   :  { %3919 = vmatprep.subr.bf16.mxu0 %v6855_v58  ;;  %v6934_v58 = vld [vmem:[#allocation17 + $0x380] ss:$8 sps:$4 sm:$0xff]  }
0x15c2   :  { %4062 = vmatpush1.bf16.msra.mxu1 %v6850_v59  ;;  %v4259_v59 = vrot.slane %v9256_v33, 5 }
0x15c3   :  { %4063 = vmatprep.subr.bf16.mxu1 %v6858_v60  ;;  %v6942_v60 = vld [vmem:[#allocation17 + $0x394] ss:$8 sps:$4 sm:$0xff]  }
0x15c4   :  { %3920 = vmatpush1.bf16.msra.mxu0 %v6853_v61  ;;  %v6937_v61 = vld [vmem:[#allocation17 + $0x300] ss:$8 sps:$4 sm:$0xff]  }
0x15c5   :  { %3921 = vmatprep.subr.bf16.mxu0 %v6861_v19  ;;  %v4117_v19 = vrot.slane %v9256_v33, 4 }
0x15c6   :  { %4064 = vmatpush1.bf16.msra.mxu1 %v6856_v27  ;;  %v6945_v27 = vld [vmem:[#allocation17 + $0x314] ss:$8 sps:$4 sm:$0xff]  }
0x15c7   :  { %4065 = vmatprep.subr.bf16.mxu1 %v6864_v62  ;;  %v6940_v62 = vld [vmem:[#allocation17 + $0x390] ss:$8 sps:$4 sm:$0xff]  }
0x15c8   :  { %3922 = vmatpush1.bf16.msra.mxu0 %v6859_v21  ;;  %v6948_v21 = vld [vmem:[#allocation17 + $0x3a4] ss:$8 sps:$4 sm:$0xff]  }
0x15c9   :  { %3923 = vmatprep.subr.bf16.mxu0 %v6867_v12  ;;  %v6943_v12 = vld [vmem:[#allocation17 + $0x310] ss:$8 sps:$4 sm:$0xff]  }
0x15ca   :  { %4066 = vmatpush1.bf16.msra.mxu1 %v6862_v14  ;;  %v6951_v14 = vld [vmem:[#allocation17 + $0x324] ss:$8 sps:$4 sm:$0xff]  }
0x15cb   :  { %4067 = vmatprep.subr.bf16.mxu1 %v6870_v15  ;;  %v6946_v15 = vld [vmem:[#allocation17 + $0x3a0] ss:$8 sps:$4 sm:$0xff]  }
0x15cc   :  { %3924 = vmatpush1.bf16.msra.mxu0 %v6865_v13  ;;  %v6954_v13 = vld [vmem:[#allocation17 + $0x3b4] ss:$8 sps:$4 sm:$0xff]  }
0x15cd   :  { %3925 = vmatprep.subr.bf16.mxu0 %v6873_v38  ;;  %v6949_v38 = vld [vmem:[#allocation17 + $0x320] ss:$8 sps:$4 sm:$0xff]  }
0x15ce   :  { %4068 = vmatpush1.bf16.msra.mxu1 %v6868_v5  ;;  %v6957_v5 = vld [vmem:[#allocation17 + $0x334] ss:$8 sps:$4 sm:$0xff]  }
0x15cf   :  { %4069 = vmatprep.subr.bf16.mxu1 %v6876_v23  ;;  %v6952_v23 = vld [vmem:[#allocation17 + $0x3b0] ss:$8 sps:$4 sm:$0xff]  }
0x15d0   :  { %3926 = vmatpush1.bf16.msra.mxu0 %v6871_v22  ;;  %v6960_v22 = vld [vmem:[#allocation17 + $0x3c4] ss:$8 sps:$4 sm:$0xff]  }
0x15d1   :  { %3927 = vmatprep.subr.bf16.mxu0 %v6879_v28  ;;  %v6955_v28 = vld [vmem:[#allocation17 + $0x330] ss:$8 sps:$4 sm:$0xff]  }
0x15d2   :  { %4070 = vmatpush1.bf16.msra.mxu1 %v6874_v8  ;;  %v6963_v8 = vld [vmem:[#allocation17 + $0x344] ss:$8 sps:$4 sm:$0xff]  }
0x15d3   :  { %4071 = vmatprep.subr.bf16.mxu1 %v6882_v10  ;;  %v6958_v10 = vld [vmem:[#allocation17 + $0x3c0] ss:$8 sps:$4 sm:$0xff]  }
0x15d4   :  { %3928 = vmatpush1.bf16.msra.mxu0 %v6877_v20  ;;  %v6966_v20 = vld [vmem:[#allocation17 + $0x3d4] ss:$8 sps:$4 sm:$0xff]  }
0x15d5   :  { %3929 = vmatprep.subr.bf16.mxu0 %v6885_v40  ;;  %v6961_v40 = vld [vmem:[#allocation17 + $0x340] ss:$8 sps:$4 sm:$0xff]  }
0x15d6   :  { %4072 = vmatpush1.bf16.msra.mxu1 %v6880_v0  ;;  %v6969_v0 = vld [vmem:[#allocation17 + $0x354] ss:$8 sps:$4 sm:$0xff]  }
0x15d7   :  { %4341 = vmatprep.subr.bf16.mxu1 %v6888_v44  ;;  %v6964_v44 = vld [vmem:[#allocation17 + $0x3d0] ss:$8 sps:$4 sm:$0xff]  }
0x15d8   :  { %3930 = vmatpush1.bf16.msra.mxu0 %v6883_v24  ;;  %v6972_v24 = vld [vmem:[#allocation17 + $0x3e4] ss:$8 sps:$4 sm:$0xff]  }
0x15d9   :  { %4090 = vmatmul.mubr.bf16.vlgmr.msra.gmra.mrb[84].mxu1 %v3975_v26  ;;  %4199 = vmatprep.subr.bf16.mxu0 %v6891_v37  ;;  %v6967_v37 = vld [vmem:[#allocation17 + $0x350] ss:$8 sps:$4 sm:$0xff]   ;;  %v6970_v26 = vld [vmem:[#allocation17 + $0x3e0] ss:$8 sps:$4 sm:$0xff]  }
0x15da   :  { %4342 = vmatpush1.bf16.msra.mxu1 %v6886_v2  ;;  %4373 = vmatprep.mubr.bf16.mxu1 %v9406_v34  ;;  %v6975_v2 = vld [vmem:[#allocation17 + $0x364] ss:$8 sps:$4 sm:$0xff]  }
0x15db   :  { %3948 = vmatmul.mubr.bf16.vlgmr.msra.gmra.mrb[80].mxu0 %v3833_v11  ;;  %4343 = vmatprep.subr.bf16.mxu1 %v6894_v63  ;;  %v6978_v63 = vld [vmem:[#allocation17 + $0x3f4] ss:$8 sps:$4 sm:$0xff]  }
0x15dc   :  { %4200 = vmatpush1.bf16.msra.mxu0 %v6889_v6  ;;  %4231 = vmatprep.mubr.bf16.mxu0 %v9406_v34  ;;  %v6973_v6 = vld [vmem:[#allocation17 + $0x360] ss:$8 sps:$4 sm:$0xff]   ;;  %v6981_v11 = vld [vmem:[#allocation17 + $0x374] ss:$8 sps:$4 sm:$0xff]  }
0x15dd   :  { %4201 = vmatprep.subr.bf16.mxu0 %v6897_v36  ;;  %v6976_v36 = vld [vmem:[#allocation17 + $0x3f0] ss:$8 sps:$4 sm:$0xff]  }
0x15de   :  { %4344 = vmatpush1.bf16.msra.mxu1 %v6892_v42  ;;  %v6984_v42 = vld [vmem:[#allocation17 + $0x484] ss:$8 sps:$4 sm:$0xff]  }
0x15df   :  { %4345 = vmatprep.subr.bf16.mxu1 %v6900_v31  ;;  %v6979_v31 = vld [vmem:[#allocation17 + $0x370] ss:$8 sps:$4 sm:$0xff]  }
0x15e0   :  { %4202 = vmatpush1.bf16.msra.mxu0 %v6895_v43  ;;  %v6987_v43 = vld [vmem:[#allocation17 + $0x404] ss:$8 sps:$4 sm:$0xff]  }
0x15e1   :  { %4203 = vmatprep.subr.bf16.mxu0 %v6903_v30  ;;  %v6982_v30 = vld [vmem:[#allocation17 + $0x480] ss:$8 sps:$4 sm:$0xff]  }
0x15e2   :  { %4346 = vmatpush1.bf16.msra.mxu1 %v6898_v29  ;;  %v4543_v29 = vrot.slane %v9256_v33, 7 }
0x15e3   :  { %4347 = vmatprep.subr.bf16.mxu1 %v6906_v47  ;;  %v6990_v47 = vld [vmem:[#allocation17 + $0x494] ss:$8 sps:$4 sm:$0xff]  }
0x15e4   :  { %4204 = vmatpush1.bf16.msra.mxu0 %v6901_v35  ;;  %v6985_v35 = vld [vmem:[#allocation17 + $0x400] ss:$8 sps:$4 sm:$0xff]  }
0x15e5   :  { %4205 = vmatprep.subr.bf16.mxu0 %v6909_v17  ;;  %v4401_v17 = vrot.slane %v9256_v33, 6  ;;  %v6997_v33 = vld [vmem:[#allocation17 + $0x420] ss:$8 sps:$4 sm:$0xff]  }
0x15e6   :  { %4348 = vmatpush1.bf16.msra.mxu1 %v6904_v41  ;;  %v6993_v41 = vld [vmem:[#allocation17 + $0x414] ss:$8 sps:$4 sm:$0xff]  }
0x15e7   :  { %4349 = vmatprep.subr.bf16.mxu1 %v6912_v3  ;;  %v6988_v3 = vld [vmem:[#allocation17 + $0x490] ss:$8 sps:$4 sm:$0xff]  }
0x15e8   :  { %4206 = vmatpush1.bf16.msra.mxu0 %v6907_v18  ;;  %v6996_v18 = vld [vmem:[#allocation17 + $0x4a4] ss:$8 sps:$4 sm:$0xff]  }
0x15e9   :  { %4207 = vmatprep.subr.bf16.mxu0 %v6915_v9  ;;  %v6991_v9 = vld [vmem:[#allocation17 + $0x410] ss:$8 sps:$4 sm:$0xff]  }
0x15ea   :  { %4350 = vmatpush1.bf16.msra.mxu1 %v6910_v39  ;;  %v6999_v39 = vld [vmem:[#allocation17 + $0x424] ss:$8 sps:$4 sm:$0xff]  }
0x15eb   :  { %4351 = vmatprep.subr.bf16.mxu1 %v6918_v45  ;;  %v6994_v45 = vld [vmem:[#allocation17 + $0x4a0] ss:$8 sps:$4 sm:$0xff]  }
0x15ec   :  { %4208 = vmatpush1.bf16.msra.mxu0 %v6913_v46  ;;  %v7002_v46 = vld [vmem:[#allocation17 + $0x4b4] ss:$8 sps:$4 sm:$0xff]  }
0x15ed   :  { %4209 = vmatprep.subr.bf16.mxu0 %v6921_v7  ;;  %v7005_v7 = vld [vmem:[#allocation17 + $0x434] ss:$8 sps:$4 sm:$0xff]  }
0x15ee   :  { %4352 = vmatpush1.bf16.msra.mxu1 %v6916_v48  ;;  %v7000_v48 = vld [vmem:[#allocation17 + $0x4b0] ss:$8 sps:$4 sm:$0xff]  }
0x15ef   :  { %4353 = vmatprep.subr.bf16.mxu1 %v6924_v49  ;;  %v7008_v49 = vld [vmem:[#allocation17 + $0x4c4] ss:$8 sps:$4 sm:$0xff]  }
0x15f0   :  { %4210 = vmatpush1.bf16.msra.mxu0 %v6919_v50  ;;  %v7003_v50 = vld [vmem:[#allocation17 + $0x430] ss:$8 sps:$4 sm:$0xff]  }
0x15f1   :  { %4211 = vmatprep.subr.bf16.mxu0 %v6927_v32  ;;  %v7011_v32 = vld [vmem:[#allocation17 + $0x444] ss:$8 sps:$4 sm:$0xff]  }
0x15f2   :  { %4354 = vmatpush1.bf16.msra.mxu1 %v6922_v51  ;;  %v7006_v51 = vld [vmem:[#allocation17 + $0x4c0] ss:$8 sps:$4 sm:$0xff]  }
0x15f3   :  { %4355 = vmatprep.subr.bf16.mxu1 %v6930_v25  ;;  %v7014_v25 = vld [vmem:[#allocation17 + $0x4d4] ss:$8 sps:$4 sm:$0xff]  }
0x15f4   :  { %4212 = vmatpush1.bf16.msra.mxu0 %v6925_v52  ;;  %v7009_v52 = vld [vmem:[#allocation17 + $0x440] ss:$8 sps:$4 sm:$0xff]  }
0x15f5   :  { %4213 = vmatprep.subr.bf16.mxu0 %v6933_v53  ;;  %v7017_v53 = vld [vmem:[#allocation17 + $0x454] ss:$8 sps:$4 sm:$0xff]  }
0x15f6   :  { %4356 = vmatpush1.bf16.msra.mxu1 %v6928_v54  ;;  %v7012_v54 = vld [vmem:[#allocation17 + $0x4d0] ss:$8 sps:$4 sm:$0xff]  }
0x15f7   :  { %4625 = vmatprep.subr.bf16.mxu1 %v6936_v55  ;;  %v7020_v55 = vld [vmem:[#allocation17 + $0x4e4] ss:$8 sps:$4 sm:$0xff]  }
0x15f8   :  { %4214 = vmatpush1.bf16.msra.mxu0 %v6931_v56  ;;  %v7015_v56 = vld [vmem:[#allocation17 + $0x450] ss:$8 sps:$4 sm:$0xff]  }
0x15f9   :  { %4374 = vmatmul.mubr.bf16.vlgmr.msra.gmra.mrb[88].mxu1 %v4259_v59  ;;  %4483 = vmatprep.subr.bf16.mxu0 %v6939_v57  ;;  %v7023_v57 = vld [vmem:[#allocation17 + $0x464] ss:$8 sps:$4 sm:$0xff]   ;;  %v7026_v59 = vld [vmem:[#allocation17 + $0x4f4] ss:$8 sps:$4 sm:$0xff]  }
0x15fa   :  { %4626 = vmatpush1.bf16.msra.mxu1 %v6934_v58  ;;  %4657 = vmatprep.mubr.bf16.mxu1 %v9406_v34  ;;  %v7018_v58 = vld [vmem:[#allocation17 + $0x4e0] ss:$8 sps:$4 sm:$0xff]  }
0x15fb   :  { %4232 = vmatmul.mubr.bf16.vlgmr.msra.gmra.mrb[84].mxu0 %v4117_v19  ;;  %4627 = vmatprep.subr.bf16.mxu1 %v6942_v60  ;;  %v7021_v60 = vld [vmem:[#allocation17 + $0x460] ss:$8 sps:$4 sm:$0xff]   ;;  %v7024_v19 = vld [vmem:[#allocation17 + $0x4f0] ss:$8 sps:$4 sm:$0xff]  }
0x15fc   :  { %4484 = vmatpush1.bf16.msra.mxu0 %v6937_v61  ;;  %4515 = vmatprep.mubr.bf16.mxu0 %v9406_v34  ;;  %v7029_v61 = vld [vmem:[#allocation17 + $0x474] ss:$8 sps:$4 sm:$0xff]  }
0x15fd   :  { %4485 = vmatprep.subr.bf16.mxu0 %v6945_v27  ;;  %v7032_v27 = vld [vmem:[#allocation17 + $0x584] ss:$8 sps:$4 sm:$0xff]  }
0x15fe   :  { %4628 = vmatpush1.bf16.msra.mxu1 %v6940_v62  ;;  %v7027_v62 = vld [vmem:[#allocation17 + $0x470] ss:$8 sps:$4 sm:$0xff]  }
0x15ff   :  { %4629 = vmatprep.subr.bf16.mxu1 %v6948_v21  ;;  %v7035_v21 = vld [vmem:[#allocation17 + $0x504] ss:$8 sps:$4 sm:$0xff]  }
0x1600   :  { %4486 = vmatpush1.bf16.msra.mxu0 %v6943_v12  ;;  %v7030_v12 = vld [vmem:[#allocation17 + $0x580] ss:$8 sps:$4 sm:$0xff]  }
0x1601   :  { %4487 = vmatprep.subr.bf16.mxu0 %v6951_v14  ;;  %v4826_v14 = vrot.slane %v9254_v16, 1 }
0x1602   :  { %4630 = vmatpush1.bf16.msra.mxu1 %v6946_v15  ;;  %v7038_v15 = vld [vmem:[#allocation17 + $0x594] ss:$8 sps:$4 sm:$0xff]  }
0x1603   :  { %4631 = vmatprep.subr.bf16.mxu1 %v6954_v13  ;;  %v7033_v13 = vld [vmem:[#allocation17 + $0x500] ss:$8 sps:$4 sm:$0xff]  }
0x1604   :  { %4488 = vmatpush1.bf16.msra.mxu0 %v6949_v38  ;;  %v7041_v38 = vld [vmem:[#allocation17 + $0x514] ss:$8 sps:$4 sm:$0xff]  }
0x1605   :  { %4489 = vmatprep.subr.bf16.mxu0 %v6957_v5  ;;  %v7036_v5 = vld [vmem:[#allocation17 + $0x590] ss:$8 sps:$4 sm:$0xff]  }
0x1606   :  { %4632 = vmatpush1.bf16.msra.mxu1 %v6952_v23  ;;  %v7044_v23 = vld [vmem:[#allocation17 + $0x5a4] ss:$8 sps:$4 sm:$0xff]  }
0x1607   :  { %4633 = vmatprep.subr.bf16.mxu1 %v6960_v22  ;;  %v7039_v22 = vld [vmem:[#allocation17 + $0x510] ss:$8 sps:$4 sm:$0xff]  }
0x1608   :  { %4490 = vmatpush1.bf16.msra.mxu0 %v6955_v28  ;;  %v7047_v28 = vld [vmem:[#allocation17 + $0x524] ss:$8 sps:$4 sm:$0xff]  }
0x1609   :  { %4491 = vmatprep.subr.bf16.mxu0 %v6963_v8  ;;  %v7042_v8 = vld [vmem:[#allocation17 + $0x5a0] ss:$8 sps:$4 sm:$0xff]  }
0x160a   :  { %4634 = vmatpush1.bf16.msra.mxu1 %v6958_v10  ;;  %v7050_v10 = vld [vmem:[#allocation17 + $0x5b4] ss:$8 sps:$4 sm:$0xff]  }
0x160b   :  { %4635 = vmatprep.subr.bf16.mxu1 %v6966_v20  ;;  %v7045_v20 = vld [vmem:[#allocation17 + $0x520] ss:$8 sps:$4 sm:$0xff]  }
0x160c   :  { %4492 = vmatpush1.bf16.msra.mxu0 %v6961_v40  ;;  %v7053_v40 = vld [vmem:[#allocation17 + $0x534] ss:$8 sps:$4 sm:$0xff]  }
0x160d   :  { %4493 = vmatprep.subr.bf16.mxu0 %v6969_v0  ;;  %v7048_v0 = vld [vmem:[#allocation17 + $0x5b0] ss:$8 sps:$4 sm:$0xff]  }
0x160e   :  { %4636 = vmatpush1.bf16.msra.mxu1 %v6964_v44  ;;  %v7056_v44 = vld [vmem:[#allocation17 + $0x5c4] ss:$8 sps:$4 sm:$0xff]  }
0x160f   :  { %4637 = vmatprep.subr.bf16.mxu1 %v6972_v24  ;;  %v7051_v24 = vld [vmem:[#allocation17 + $0x530] ss:$8 sps:$4 sm:$0xff]  }
0x1610   :  { %4494 = vmatpush1.bf16.msra.mxu0 %v6967_v37  ;;  %v7059_v37 = vld [vmem:[#allocation17 + $0x544] ss:$8 sps:$4 sm:$0xff]  }
0x1611   :  { %4495 = vmatprep.subr.bf16.mxu0 %v6975_v2  ;;  %v7054_v2 = vld [vmem:[#allocation17 + $0x5c0] ss:$8 sps:$4 sm:$0xff]  }
0x1612   :  { %4638 = vmatpush1.bf16.msra.mxu1 %v6970_v26  ;;  %v7062_v26 = vld [vmem:[#allocation17 + $0x5d4] ss:$8 sps:$4 sm:$0xff]  }
0x1613   :  { %4639 = vmatprep.subr.bf16.mxu1 %v6978_v63  ;;  %v7057_v63 = vld [vmem:[#allocation17 + $0x540] ss:$8 sps:$4 sm:$0xff]  }
0x1614   :  { %4496 = vmatpush1.bf16.msra.mxu0 %v6973_v6  ;;  %v7065_v6 = vld [vmem:[#allocation17 + $0x554] ss:$8 sps:$4 sm:$0xff]  }
0x1615   :  { %4497 = vmatprep.subr.bf16.mxu0 %v6981_v11  ;;  %v7060_v11 = vld [vmem:[#allocation17 + $0x5d0] ss:$8 sps:$4 sm:$0xff]  }
0x1616   :  { %4640 = vmatpush1.bf16.msra.mxu1 %v6976_v36  ;;  %v7068_v36 = vld [vmem:[#allocation17 + $0x5e4] ss:$8 sps:$4 sm:$0xff]  }
0x1617   :  { %4908 = vmatprep.subr.bf16.mxu1 %v6984_v42  ;;  %v7063_v42 = vld [vmem:[#allocation17 + $0x550] ss:$8 sps:$4 sm:$0xff]  }
0x1618   :  { %4498 = vmatpush1.bf16.msra.mxu0 %v6979_v31  ;;  %v7071_v31 = vld [vmem:[#allocation17 + $0x564] ss:$8 sps:$4 sm:$0xff]  }
0x1619   :  { %4658 = vmatmul.mubr.bf16.vlgmr.msra.gmra.mrb[92].mxu1 %v4543_v29  ;;  %4765 = vmatprep.subr.bf16.mxu0 %v6987_v43  ;;  %v7066_v43 = vld [vmem:[#allocation17 + $0x5e0] ss:$8 sps:$4 sm:$0xff]  }
0x161a   :  { %4909 = vmatpush1.bf16.msra.mxu1 %v6982_v30  ;;  %4940 = vmatprep.mubr.bf16.mxu1 %v9406_v34  ;;  %v7074_v30 = vld [vmem:[#allocation17 + $0x5f4] ss:$8 sps:$4 sm:$0xff]   ;;  %v7069_v29 = vld [vmem:[#allocation17 + $0x560] ss:$8 sps:$4 sm:$0xff]  }
0x161b   :  { %4516 = vmatmul.mubr.bf16.vlgmr.msra.gmra.mrb[88].mxu0 %v4401_v17  ;;  %4910 = vmatprep.subr.bf16.mxu1 %v6990_v47  ;;  %v7077_v47 = vld [vmem:[#allocation17 + $0x574] ss:$8 sps:$4 sm:$0xff]   ;;  %v7080_v17 = vld [vmem:[#allocation17 + $0x684] ss:$8 sps:$4 sm:$0xff]  }
0x161c   :  { %4766 = vmatpush1.bf16.msra.mxu0 %v6985_v35  ;;  %4797 = vmatprep.mubr.bf16.mxu0 %v9406_v34  ;;  %v7072_v35 = vld [vmem:[#allocation17 + $0x5f0] ss:$8 sps:$4 sm:$0xff]  }
0x161d   :  { %4767 = vmatprep.subr.bf16.mxu0 %v6993_v41  ;;  %v7075_v41 = vld [vmem:[#allocation17 + $0x570] ss:$8 sps:$4 sm:$0xff]  }
0x161e   :  { %4911 = vmatpush1.bf16.msra.mxu1 %v6988_v3  ;;  %v7083_v3 = vld [vmem:[#allocation17 + $0x604] ss:$8 sps:$4 sm:$0xff]  }
0x161f   :  { %4912 = vmatprep.subr.bf16.mxu1 %v6996_v18  ;;  %v7078_v18 = vld [vmem:[#allocation17 + $0x680] ss:$8 sps:$4 sm:$0xff]  }
0x1620   :  { %4768 = vmatpush1.bf16.msra.mxu0 %v6991_v9  ;;  %v5110_v9 = vrot.slane %v9254_v16, 3 }
0x1621   :  { %4769 = vmatprep.subr.bf16.mxu0 %v6999_v39  ;;  %v7086_v39 = vld [vmem:[#allocation17 + $0x694] ss:$8 sps:$4 sm:$0xff]  }
0x1622   :  { %4913 = vmatpush1.bf16.msra.mxu1 %v6994_v45  ;;  %v7081_v45 = vld [vmem:[#allocation17 + $0x600] ss:$8 sps:$4 sm:$0xff]  }
0x1623   :  { %4914 = vmatprep.subr.bf16.mxu1 %v7002_v46  ;;  %v4968_v46 = vrot.slane %v9254_v16, 2 }
0x1624   :  { %4770 = vmatpush1.bf16.msra.mxu0 %v6997_v33  ;;  %v7089_v33 = vld [vmem:[#allocation17 + $0x614] ss:$8 sps:$4 sm:$0xff]  }
0x1625   :  { %4771 = vmatprep.subr.bf16.mxu0 %v7005_v7  ;;  %v7084_v7 = vld [vmem:[#allocation17 + $0x690] ss:$8 sps:$4 sm:$0xff]  }
0x1626   :  { %4915 = vmatpush1.bf16.msra.mxu1 %v7000_v48  ;;  %v7092_v48 = vld [vmem:[#allocation17 + $0x6a4] ss:$8 sps:$4 sm:$0xff]  }
0x1627   :  { %4916 = vmatprep.subr.bf16.mxu1 %v7008_v49  ;;  %v7087_v49 = vld [vmem:[#allocation17 + $0x610] ss:$8 sps:$4 sm:$0xff]  }
0x1628   :  { %4772 = vmatpush1.bf16.msra.mxu0 %v7003_v50  ;;  %v7095_v50 = vld [vmem:[#allocation17 + $0x624] ss:$8 sps:$4 sm:$0xff]  }
0x1629   :  { %4773 = vmatprep.subr.bf16.mxu0 %v7011_v32  ;;  %v7090_v32 = vld [vmem:[#allocation17 + $0x6a0] ss:$8 sps:$4 sm:$0xff]  }
0x162a   :  { %4917 = vmatpush1.bf16.msra.mxu1 %v7006_v51  ;;  %v7098_v51 = vld [vmem:[#allocation17 + $0x6b4] ss:$8 sps:$4 sm:$0xff]  }
0x162b   :  { %4918 = vmatprep.subr.bf16.mxu1 %v7014_v25  ;;  %v7093_v25 = vld [vmem:[#allocation17 + $0x620] ss:$8 sps:$4 sm:$0xff]  }
0x162c   :  { %4774 = vmatpush1.bf16.msra.mxu0 %v7009_v52  ;;  %v7101_v52 = vld [vmem:[#allocation17 + $0x634] ss:$8 sps:$4 sm:$0xff]  }
0x162d   :  { %4775 = vmatprep.subr.bf16.mxu0 %v7017_v53  ;;  %v7096_v53 = vld [vmem:[#allocation17 + $0x6b0] ss:$8 sps:$4 sm:$0xff]  }
0x162e   :  { %4919 = vmatpush1.bf16.msra.mxu1 %v7012_v54  ;;  %v7104_v54 = vld [vmem:[#allocation17 + $0x6c4] ss:$8 sps:$4 sm:$0xff]  }
0x162f   :  { %4920 = vmatprep.subr.bf16.mxu1 %v7020_v55  ;;  %v7099_v55 = vld [vmem:[#allocation17 + $0x630] ss:$8 sps:$4 sm:$0xff]  }
0x1630   :  { %4776 = vmatpush1.bf16.msra.mxu0 %v7015_v56  ;;  %v7107_v56 = vld [vmem:[#allocation17 + $0x644] ss:$8 sps:$4 sm:$0xff]  }
0x1631   :  { %4777 = vmatprep.subr.bf16.mxu0 %v7023_v57  ;;  %v7102_v57 = vld [vmem:[#allocation17 + $0x6c0] ss:$8 sps:$4 sm:$0xff]  }
0x1632   :  { %4921 = vmatpush1.bf16.msra.mxu1 %v7018_v58  ;;  %v7110_v58 = vld [vmem:[#allocation17 + $0x6d4] ss:$8 sps:$4 sm:$0xff]  }
0x1633   :  { %4922 = vmatprep.subr.bf16.mxu1 %v7026_v59  ;;  %v7105_v59 = vld [vmem:[#allocation17 + $0x640] ss:$8 sps:$4 sm:$0xff]  }
0x1634   :  { %4778 = vmatpush1.bf16.msra.mxu0 %v7021_v60  ;;  %v7113_v60 = vld [vmem:[#allocation17 + $0x654] ss:$8 sps:$4 sm:$0xff]  }
0x1635   :  { %4779 = vmatprep.subr.bf16.mxu0 %v7029_v61  ;;  %v7108_v61 = vld [vmem:[#allocation17 + $0x6d0] ss:$8 sps:$4 sm:$0xff]  }
0x1636   :  { %4923 = vmatpush1.bf16.msra.mxu1 %v7024_v19  ;;  %v7116_v19 = vld [vmem:[#allocation17 + $0x6e4] ss:$8 sps:$4 sm:$0xff]  }
0x1637   :  { %5192 = vmatprep.subr.bf16.mxu1 %v7032_v27  ;;  %v7111_v27 = vld [vmem:[#allocation17 + $0x650] ss:$8 sps:$4 sm:$0xff]  }
0x1638   :  { %4780 = vmatpush1.bf16.msra.mxu0 %v7027_v62  ;;  %v7119_v62 = vld [vmem:[#allocation17 + $0x664] ss:$8 sps:$4 sm:$0xff]  }
0x1639   :  { %4941 = vmatmul.mubr.bf16.vlgmr.msra.gmra.mrb[96].mxu1 %v4826_v14  ;;  %5050 = vmatprep.subr.bf16.mxu0 %v7035_v21  ;;  %v7114_v21 = vld [vmem:[#allocation17 + $0x6e0] ss:$8 sps:$4 sm:$0xff]  }
0x163a   :  { %5193 = vmatpush1.bf16.msra.mxu1 %v7030_v12  ;;  %5224 = vmatprep.mubr.bf16.mxu1 %v9406_v34  ;;  %v7122_v12 = vld [vmem:[#allocation17 + $0x6f4] ss:$8 sps:$4 sm:$0xff]   ;;  %v7117_v14 = vld [vmem:[#allocation17 + $0x660] ss:$8 sps:$4 sm:$0xff]  }
0x163b   :  { %4798 = vmatmul.mubr.bf16.vlgmr.msra.gmra.mrb[92].mxu0 %v9254_v16  ;;  %5194 = vmatprep.subr.bf16.mxu1 %v7038_v15  ;;  %v7125_v15 = vld [vmem:[#allocation17 + $0x674] ss:$8 sps:$4 sm:$0xff]  }
0x163c   :  { %5051 = vmatpush1.bf16.msra.mxu0 %v7033_v13  ;;  %5082 = vmatprep.mubr.bf16.mxu0 %v9406_v34  ;;  %v7120_v13 = vld [vmem:[#allocation17 + $0x6f0] ss:$8 sps:$4 sm:$0xff]  }
0x163d   :  { %5052 = vmatprep.subr.bf16.mxu0 %v7041_v38  ;;  %v7128_v38 = vld [vmem:[#allocation17 + $0x784] ss:$8 sps:$4 sm:$0xff]  }
0x163e   :  { %5195 = vmatpush1.bf16.msra.mxu1 %v7036_v5  ;;  %v7123_v5 = vld [vmem:[#allocation17 + $0x670] ss:$8 sps:$4 sm:$0xff]  }
0x163f   :  { %5196 = vmatprep.subr.bf16.mxu1 %v7044_v23  ;;  %v7131_v23 = vld [vmem:[#allocation17 + $0x704] ss:$8 sps:$4 sm:$0xff]  }
0x1640   :  { %5053 = vmatpush1.bf16.msra.mxu0 %v7039_v22  ;;  %v7126_v22 = vld [vmem:[#allocation17 + $0x780] ss:$8 sps:$4 sm:$0xff]  }
0x1641   :  { %5054 = vmatprep.subr.bf16.mxu0 %v7047_v28  ;;  %v5394_v28 = vrot.slane %v9254_v16, 5 }
0x1642   :  { %5197 = vmatpush1.bf16.msra.mxu1 %v7042_v8  ;;  %v7134_v8 = vld [vmem:[#allocation17 + $0x794] ss:$8 sps:$4 sm:$0xff]  }
0x1643   :  { %5198 = vmatprep.subr.bf16.mxu1 %v7050_v10  ;;  %v7129_v10 = vld [vmem:[#allocation17 + $0x700] ss:$8 sps:$4 sm:$0xff]  }
0x1644   :  { %5055 = vmatpush1.bf16.msra.mxu0 %v7045_v20  ;;  %v5252_v20 = vrot.slane %v9254_v16, 4 }
0x1645   :  { %5056 = vmatprep.subr.bf16.mxu0 %v7053_v40  ;;  %v7137_v40 = vld [vmem:[#allocation17 + $0x714] ss:$8 sps:$4 sm:$0xff]  }
0x1646   :  { %5199 = vmatpush1.bf16.msra.mxu1 %v7048_v0  ;;  %v7132_v0 = vld [vmem:[#allocation17 + $0x790] ss:$8 sps:$4 sm:$0xff]  }
0x1647   :  { %5200 = vmatprep.subr.bf16.mxu1 %v7056_v44  ;;  %v7140_v44 = vld [vmem:[#allocation17 + $0x7a4] ss:$8 sps:$4 sm:$0xff]  }
0x1648   :  { %5057 = vmatpush1.bf16.msra.mxu0 %v7051_v24  ;;  %v7135_v24 = vld [vmem:[#allocation17 + $0x710] ss:$8 sps:$4 sm:$0xff]  }
0x1649   :  { %5058 = vmatprep.subr.bf16.mxu0 %v7059_v37  ;;  %v7143_v37 = vld [vmem:[#allocation17 + $0x724] ss:$8 sps:$4 sm:$0xff]  }
0x164a   :  { %5201 = vmatpush1.bf16.msra.mxu1 %v7054_v2  ;;  %v7138_v2 = vld [vmem:[#allocation17 + $0x7a0] ss:$8 sps:$4 sm:$0xff]  }
0x164b   :  { %5202 = vmatprep.subr.bf16.mxu1 %v7062_v26  ;;  %v7146_v26 = vld [vmem:[#allocation17 + $0x7b4] ss:$8 sps:$4 sm:$0xff]  }
0x164c   :  { %5059 = vmatpush1.bf16.msra.mxu0 %v7057_v63  ;;  %v7141_v63 = vld [vmem:[#allocation17 + $0x720] ss:$8 sps:$4 sm:$0xff]  }
0x164d   :  { %5060 = vmatprep.subr.bf16.mxu0 %v7065_v6  ;;  %v7149_v6 = vld [vmem:[#allocation17 + $0x734] ss:$8 sps:$4 sm:$0xff]  }
0x164e   :  { %5203 = vmatpush1.bf16.msra.mxu1 %v7060_v11  ;;  %v7144_v11 = vld [vmem:[#allocation17 + $0x7b0] ss:$8 sps:$4 sm:$0xff]  }
0x164f   :  { %5204 = vmatprep.subr.bf16.mxu1 %v7068_v36  ;;  %v7152_v36 = vld [vmem:[#allocation17 + $0x7c4] ss:$8 sps:$4 sm:$0xff]  }
0x1650   :  { %5061 = vmatpush1.bf16.msra.mxu0 %v7063_v42  ;;  %v7147_v42 = vld [vmem:[#allocation17 + $0x730] ss:$8 sps:$4 sm:$0xff]  }
0x1651   :  { %5062 = vmatprep.subr.bf16.mxu0 %v7071_v31  ;;  %v7155_v31 = vld [vmem:[#allocation17 + $0x744] ss:$8 sps:$4 sm:$0xff]  }
0x1652   :  { %5205 = vmatpush1.bf16.msra.mxu1 %v7066_v43  ;;  %v7158_v43 = vld [vmem:[#allocation17 + $0x7d4] ss:$8 sps:$4 sm:$0xff]  }
0x1653   :  { %5206 = vmatprep.subr.bf16.mxu1 %v7074_v30  ;;  %v7153_v30 = vld [vmem:[#allocation17 + $0x740] ss:$8 sps:$4 sm:$0xff]  }
0x1654   :  { %5063 = vmatpush1.bf16.msra.mxu0 %v7069_v29  ;;  %v7161_v29 = vld [vmem:[#allocation17 + $0x754] ss:$8 sps:$4 sm:$0xff]  }
0x1655   :  { %5064 = vmatprep.subr.bf16.mxu0 %v7077_v47  ;;  %v7156_v47 = vld [vmem:[#allocation17 + $0x7d0] ss:$8 sps:$4 sm:$0xff]  }
0x1656   :  { %5207 = vmatpush1.bf16.msra.mxu1 %v7072_v35  ;;  %v7164_v35 = vld [vmem:[#allocation17 + $0x7e4] ss:$8 sps:$4 sm:$0xff]  }
0x1657   :  { %5476 = vmatprep.subr.bf16.mxu1 %v7080_v17 }
0x1658   :  { %5065 = vmatpush1.bf16.msra.mxu0 %v7075_v41  ;;  %v7159_v41 = vld [vmem:[#allocation17 + $0x750] ss:$8 sps:$4 sm:$0xff]  }
0x1659   :  { %5225 = vmatmul.mubr.bf16.vlgmr.msra.gmra.mrb[100].mxu1 %v5110_v9  ;;  %5334 = vmatprep.subr.bf16.mxu0 %v7083_v3 }
0x165a   :  { %5477 = vmatpush1.bf16.msra.mxu1 %v7078_v18  ;;  %5508 = vmatprep.mubr.bf16.mxu1 %v9406_v34  ;;  %v7167_v18 = vld [vmem:[#allocation17 + $0x764] ss:$8 sps:$4 sm:$0xff]  }
0x165b   :  { %5083 = vmatmul.mubr.bf16.vlgmr.msra.gmra.mrb[96].mxu0 %v4968_v46  ;;  %5478 = vmatprep.subr.bf16.mxu1 %v7086_v39 }
0x165c   :  { %5335 = vmatpush1.bf16.msra.mxu0 %v7081_v45  ;;  %5366 = vmatprep.mubr.bf16.mxu0 %v9406_v34  ;;  %v7162_v45 = vld [vmem:[#allocation17 + $0x7e0] ss:$8 sps:$4 sm:$0xff]  }
0x165d   :  { %5336 = vmatprep.subr.bf16.mxu0 %v7089_v33 }
0x165e   :  { %5479 = vmatpush1.bf16.msra.mxu1 %v7084_v7 }
0x165f   :  { %5480 = vmatprep.subr.bf16.mxu1 %v7092_v48  ;;  %v7170_v48 = vld [vmem:[#allocation17 + $0x7f4] ss:$8 sps:$4 sm:$0xff]  }
0x1660   :  { %5337 = vmatpush1.bf16.msra.mxu0 %v7087_v49 }
0x1661   :  { %5338 = vmatprep.subr.bf16.mxu0 %v7095_v50 }
0x1662   :  { %5481 = vmatpush1.bf16.msra.mxu1 %v7090_v32  ;;  %v7165_v32 = vld [vmem:[#allocation17 + $0x760] ss:$8 sps:$4 sm:$0xff]  }
0x1663   :  { %5482 = vmatprep.subr.bf16.mxu1 %v7098_v51 }
0x1664   :  { %5339 = vmatpush1.bf16.msra.mxu0 %v7093_v25  ;;  %v7173_v25 = vld [vmem:[#allocation17 + $0x774] ss:$8 sps:$4 sm:$0xff]  }
0x1665   :  { %5340 = vmatprep.subr.bf16.mxu0 %v7101_v52  ;;  %v7168_v52 = vld [vmem:[#allocation17 + $0x7f0] ss:$8 sps:$4 sm:$0xff]  }
0x1666   :  { %5483 = vmatpush1.bf16.msra.mxu1 %v7096_v53  ;;  %v7171_v53 = vld [vmem:[#allocation17 + $0x770] ss:$8 sps:$4 sm:$0xff]  }
0x1667   :  { %5484 = vmatprep.subr.bf16.mxu1 %v7104_v54  ;;  %v5678_v54 = vrot.slane %v9254_v16, 7 }
0x1668   :  { %5341 = vmatpush1.bf16.msra.mxu0 %v7099_v55  ;;  %v5536_v55 = vrot.slane %v9254_v16, 6 }
0x1669   :  { %5342 = vmatprep.subr.bf16.mxu0 %v7107_v56 }
0x166a   :  { %5485 = vmatpush1.bf16.msra.mxu1 %v7102_v57 }
0x166b   :  { %5486 = vmatprep.subr.bf16.mxu1 %v7110_v58 }
0x166c   :  { %5343 = vmatpush1.bf16.msra.mxu0 %v7105_v59 }
0x166d   :  { %5344 = vmatprep.subr.bf16.mxu0 %v7113_v60 }
0x166e   :  { %5487 = vmatpush1.bf16.msra.mxu1 %v7108_v61 }
0x166f   :  { %5488 = vmatprep.subr.bf16.mxu1 %v7116_v19 }
0x1670   :  { %5345 = vmatpush1.bf16.msra.mxu0 %v7111_v27 }
0x1671   :  { %5346 = vmatprep.subr.bf16.mxu0 %v7119_v62 }
0x1672   :  { %5489 = vmatpush1.bf16.msra.mxu1 %v7114_v21 }
0x1673   :  { %5490 = vmatprep.subr.bf16.mxu1 %v7122_v12 }
0x1674   :  { %5347 = vmatpush1.bf16.msra.mxu0 %v7117_v14 }
0x1675   :  { %5348 = vmatprep.subr.bf16.mxu0 %v7125_v15 }
0x1676   :  { %5491 = vmatpush1.bf16.msra.mxu1 %v7120_v13 }
0x1677   :  { %5760 = vmatprep.subr.bf16.mxu1 %v7128_v38 }
0x1678   :  { %5349 = vmatpush1.bf16.msra.mxu0 %v7123_v5 }
0x1679   :  { %5509 = vmatmul.mubr.bf16.vlgmr.msra.gmra.mrb[104].mxu1 %v5394_v28  ;;  %5618 = vmatprep.subr.bf16.mxu0 %v7131_v23 }
0x167a   :  { %5761 = vmatpush1.bf16.msra.mxu1 %v7126_v22  ;;  %5792 = vmatprep.mubr.bf16.mxu1 %v9406_v34 }
0x167b   :  { %5367 = vmatmul.mubr.bf16.vlgmr.msra.gmra.mrb[100].mxu0 %v5252_v20  ;;  %5762 = vmatprep.subr.bf16.mxu1 %v7134_v8 }
0x167c   :  { %5619 = vmatpush1.bf16.msra.mxu0 %v7129_v10  ;;  %5650 = vmatprep.mubr.bf16.mxu0 %v9406_v34  ;;  %v7150_v34 = vld [vmem:[#allocation17 + $0x7c0] ss:$8 sps:$4 sm:$0xff]  }
0x167d   :  { %5620 = vmatprep.subr.bf16.mxu0 %v7137_v40  ;;  %v7174_v40 = vld [vmem:[%s9375_s19 + $0x40] sm:$0xff]  }
0x167e   :  { %5763 = vmatpush1.bf16.msra.mxu1 %v7132_v0  ;;  %v7175_v0 = vld [vmem:[%s9375_s19] sm:$0xff]  }
0x167f   :  { %5764 = vmatprep.subr.bf16.mxu1 %v7140_v44  ;;  %v7176_v44 = vld [vmem:[%s9375_s19 + $0x48] sm:$0xff]  }
0x1680   :  { %5621 = vmatpush1.bf16.msra.mxu0 %v7135_v24 }
0x1681   :  { %5622 = vmatprep.subr.bf16.mxu0 %v7143_v37  ;;  %v7177_v37 = vld [vmem:[%s9375_s19 + $0x8] sm:$0xff]  }
0x1682   :  { %5765 = vmatpush1.bf16.msra.mxu1 %v7138_v2  ;;  %v7178_v2 = vld [vmem:[%s9375_s19 + $0x50] sm:$0xff]  }
0x1683   :  { %5766 = vmatprep.subr.bf16.mxu1 %v7146_v26  ;;  %v7179_v26 = vld [vmem:[%s9375_s19 + $0x10] sm:$0xff]  }
0x1684   :  { %5623 = vmatpush1.bf16.msra.mxu0 %v7141_v63  ;;  %v7180_v63 = vld [vmem:[%s9375_s19 + $0x58] sm:$0xff]  }
0x1685   :  { %5624 = vmatprep.subr.bf16.mxu0 %v7149_v6  ;;  %v7181_v6 = vld [vmem:[%s9375_s19 + $0x18] sm:$0xff]  }
0x1686   :  { %5767 = vmatpush1.bf16.msra.mxu1 %v7144_v11  ;;  %v7182_v11 = vld [vmem:[%s9375_s19 + $0x60] sm:$0xff]  }
0x1687   :  { %5768 = vmatprep.subr.bf16.mxu1 %v7152_v36 }
0x1688   :  { %5625 = vmatpush1.bf16.msra.mxu0 %v7147_v42  ;;  %v7183_v42 = vld [vmem:[%s9375_s19 + $0x20] sm:$0xff]  }
0x1689   :  { %5626 = vmatprep.subr.bf16.mxu0 %v7155_v31 }
0x168a   :  { %5769 = vmatpush1.bf16.msra.mxu1 %v7150_v34 }
0x168b   :  { %5770 = vmatprep.subr.bf16.mxu1 %v7158_v43 }
0x168c   :  { %5627 = vmatpush1.bf16.msra.mxu0 %v7153_v30  ;;  %v3809_v17 = vpop.f32.mrb[80].mxu1 }
0x168d   :  { %v3811_v3 = vpop.f32.mrb[81].mxu1  ;;  %5628 = vmatprep.subr.bf16.mxu0 %v7161_v29 }
0x168e   :  { %5771 = vmatpush1.bf16.msra.mxu1 %v7156_v47  ;;  %v3688_v9 = vpop.f32.mrb[76].mxu0  ;;  %v3813_v39 = vpop.f32.mrb[82].mxu1 }
0x168f   :  { %v3810_v46 = vadd.f32 %v3809_v17, %v3688_v9  ;;  %v3690_v33 = vpop.f32.mrb[77].mxu0  ;;  %v3814_v7 = vpop.f32.mrb[83].mxu1  ;;  %5772 = vmatprep.subr.bf16.mxu1 %v7164_v35  ;;  %v7184_v35 = vld [vmem:[%s9375_s19 + $0x68] sm:$0xff]  }
0x1690   :  { %v3812_v49 = vadd.f32 %v3811_v3, %v3690_v33  ;;  %5629 = vmatpush1.bf16.msra.mxu0 %v7159_v41  ;;  %v3692_v50 = vpop.f32.mrb[78].mxu0  ;;  %v7185_v3 = vld [vmem:[%s9375_s19 + $0x28] sm:$0xff]   ;;  %v7188_v33 = vld [vmem:[%s9375_s19 + $0x78] sm:$0xff]  }
0x1691   :  { %v3693_v51 = vpop.f32.mrb[79].mxu0  ;;  %5630 = vmatprep.subr.bf16.mxu0 %v7167_v18  ;;  %v7189_v7 = vld [vmem:[%s9375_s19 + $0x38] sm:$0xff]  }
0x1692   :  { %5773 = vmatpush1.bf16.msra.mxu1 %v7162_v45  ;;  %v7186_v45 = vld [vmem:[%s9375_s19 + $0x70] sm:$0xff]  }
0x1693   :  { %5774 = vmatprep.subr.bf16.mxu1 %v7170_v48 }
0x1694   :  { %5631 = vmatpush1.bf16.msra.mxu0 %v7165_v32 }
0x1695   :  { %5632 = vmatprep.subr.bf16.mxu0 %v7173_v25 }
0x1696   :  { %5775 = vmatpush1.bf16.msra.mxu1 %v7168_v52 }
0x1698   :  { %5633 = vmatpush1.bf16.msra.mxu0 %v7171_v53 }
0x1699   :  { %5793 = vmatmul.mubr.bf16.vlgmr.msra.gmra.mrb[108].mxu1 %v5678_v54  ;;  %6503 = vmatprep.subr.bf16.mxu0 %v7174_v40 }
0x169b   :  { %5651 = vmatmul.mubr.bf16.vlgmr.msra.gmra.mrb[104].mxu0 %v5536_v55 }
0x169c   :  { %6504 = vmatpush3.bf16.msra.mxu0 %v7175_v0 }
0x169d   :  { %6505 = vmatprep.subr.bf16.mxu0 %v7176_v44 }
0x16a0   :  { %6506 = vmatpush3.bf16.msra.mxu0 %v7177_v37  ;;  %v5803_v37 = vld [vmem:[%s9374_s18] sm:$0x3]  ;;  %s7815_s18 = smov [#allocation20]  }
0x16a1   :  { %6507 = vmatprep.subr.bf16.mxu0 %v7178_v2  ;;  %s6015_s10 = sshll.u32 %s7815_s18, 4  ;;  %s6016_s10 = int_to_ptr.vmem [resolvable:$true] %s6015_s10 }
0x16a2   :  { %s7756_s24 = scalar_lea.vmem %s6016_s10, 32  ;;  %p7761_p5 = scmp.lt.s32.totalorder %s6016_s10, %s6016_s10 }
0x16a3   :  { %p7757_p4 = scmp.ne.s32.totalorder %s6016_s10, %s7756_s24  ;;  %p7762_p6 = scmp.lt.s32.totalorder %s7756_s24, %s7756_s24 }
0x16a4   :  { %6508 = vmatpush3.bf16.msra.mxu0 %v7179_v26 }
0x16a5   :  { %6509 = vmatprep.subr.bf16.mxu0 %v7180_v63  ;;  %p7763_p7 = por %p7762_p6, %p7761_p5 }
0x16a7   :  { %p7764_p8 = pnand %p7763_p7, %p7757_p4 }
0x16a8   :  { %6510 = vmatpush3.bf16.msra.mxu0 %v7181_v6 }
0x16a9   :  { %6511 = vmatprep.subr.bf16.mxu0 %v7182_v11  ;;  %v5808_v11 = vrot.slane %v5803_v37, %v8395_v1  ;;  %v6472_v1 = vld [vmem:[#allocation19] ss:$0 sm:$0xff] }
0x16ac   :  { %v4091_v56 = vpop.f32.mrb[84].mxu1  ;;  %6512 = vmatpush3.bf16.msra.mxu0 %v7183_v42 }
0x16ad   :  { %v4093_v57 = vpop.f32.mrb[85].mxu1  ;;  %6513 = vmatprep.subr.bf16.mxu0 %v7184_v35 }
0x16ae   :  { %v3949_v58 = vpop.f32.mrb[80].mxu0  ;;  %v4095_v59 = vpop.f32.mrb[86].mxu1 }
0x16af   :  { %v3956_v60 = vadd.f32 %v3949_v58, %v3810_v46  ;;  %v3951_v61 = vpop.f32.mrb[81].mxu0  ;;  %v4096_v19 = vpop.f32.mrb[87].mxu1  ;;  %v7187_v46 = vld [vmem:[%s9375_s19 + $0x30] sm:$0xff]  }
0x16b0   :  { %v3957_v27 = vadd.f32 %v3951_v61, %v3812_v49  ;;  %v3953_v62 = vpop.f32.mrb[82].mxu0  ;;  %6514 = vmatpush3.bf16.msra.mxu0 %v7185_v3 }
0x16b1   :  { %v3954_v21 = vpop.f32.mrb[83].mxu0  ;;  %v4098_v12 = vadd.f32 %v4091_v56, %v3956_v60  ;;  %6515 = vmatprep.subr.bf16.mxu0 %v7186_v45 }
0x16b2   :  { %v4099_v14 = vadd.f32 %v4093_v57, %v3957_v27 }
0x16b4   :  { %6516 = vmatpush3.bf16.msra.mxu0 %v7187_v46 }
0x16b5   :  { %6517 = vmatprep.subr.bf16.mxu0 %v7188_v33 }
0x16b8   :  { %6518 = vmatpush3.bf16.msra.mxu0 %v7189_v7 }
0x16cc   :  { %v4375_v15 = vpop.f32.mrb[88].mxu1 }
0x16cd   :  { %v4377_v13 = vpop.f32.mrb[89].mxu1 }
0x16ce   :  { %v4233_v38 = vpop.f32.mrb[84].mxu0  ;;  %v4379_v5 = vpop.f32.mrb[90].mxu1 }
0x16cf   :  { %v4240_v23 = vadd.f32 %v4233_v38, %v4098_v12  ;;  %v4235_v22 = vpop.f32.mrb[85].mxu0  ;;  %v4380_v16 = vpop.f32.mrb[91].mxu1 }
0x16d0   :  { %v4241_v28 = vadd.f32 %v4235_v22, %v4099_v14  ;;  %v4237_v8 = vpop.f32.mrb[86].mxu0 }
0x16d1   :  { %v4238_v10 = vpop.f32.mrb[87].mxu0  ;;  %v4382_v20 = vadd.f32 %v4375_v15, %v4240_v23 }
0x16d2   :  { %v4383_v24 = vadd.f32 %v4377_v13, %v4241_v28 }
0x16ec   :  { %v4659_v36 = vpop.f32.mrb[92].mxu1 }
0x16ed   :  { %v4661_v31 = vpop.f32.mrb[93].mxu1 }
0x16ee   :  { %v4517_v34 = vpop.f32.mrb[88].mxu0  ;;  %v4663_v43 = vpop.f32.mrb[94].mxu1 }
0x16ef   :  { %v4524_v30 = vadd.f32 %v4517_v34, %v4382_v20  ;;  %v4519_v29 = vpop.f32.mrb[89].mxu0  ;;  %v4664_v47 = vpop.f32.mrb[95].mxu1  ;;  %v5812_v34 = vrot.slane %v5803_v37, %v8399_v4 }
0x16f0   :  { %v4525_v17 = vadd.f32 %v4519_v29, %v4383_v24  ;;  %v4521_v41 = vpop.f32.mrb[90].mxu0 }
0x16f1   :  { %v4522_v18 = vpop.f32.mrb[91].mxu0  ;;  %v4666_v9 = vadd.f32 %v4659_v36, %v4524_v30 }
0x16f2   :  { %v4667_v39 = vadd.f32 %v4661_v31, %v4525_v17 }
0x170c   :  { %v4942_v48 = vpop.f32.mrb[96].mxu1 }
0x170d   :  { %v4944_v49 = vpop.f32.mrb[97].mxu1 }
0x170e   :  { %v4799_v50 = vpop.f32.mrb[92].mxu0  ;;  %v4946_v32 = vpop.f32.mrb[98].mxu1 }
0x170f   :  { %v4806_v51 = vadd.f32 %v4799_v50, %v4666_v9  ;;  %v4801_v25 = vpop.f32.mrb[93].mxu0  ;;  %v4947_v52 = vpop.f32.mrb[99].mxu1 }
0x1710   :  { %v4807_v53 = vadd.f32 %v4801_v25, %v4667_v39  ;;  %v4803_v54 = vpop.f32.mrb[94].mxu0 }
0x1711   :  { %v4804_v55 = vpop.f32.mrb[95].mxu0  ;;  %v4949_v56 = vadd.f32 %v4942_v48, %v4806_v51 }
0x1712   :  { %v4950_v57 = vadd.f32 %v4944_v49, %v4807_v53 }
0x172c   :  { %v5226_v58 = vpop.f32.mrb[100].mxu1 }
0x172d   :  { %v5228_v59 = vpop.f32.mrb[101].mxu1 }
0x172e   :  { %v5084_v60 = vpop.f32.mrb[96].mxu0  ;;  %v5230_v61 = vpop.f32.mrb[102].mxu1 }
0x172f   :  { %v5091_v19 = vadd.f32 %v5084_v60, %v4949_v56  ;;  %v5086_v27 = vpop.f32.mrb[97].mxu0  ;;  %v5231_v62 = vpop.f32.mrb[103].mxu1 }
0x1730   :  { %v5092_v21 = vadd.f32 %v5086_v27, %v4950_v57  ;;  %v5088_v12 = vpop.f32.mrb[98].mxu0 }
0x1731   :  { %v5089_v14 = vpop.f32.mrb[99].mxu0  ;;  %v5233_v15 = vadd.f32 %v5226_v58, %v5091_v19 }
0x1732   :  { %v5234_v13 = vadd.f32 %v5228_v59, %v5092_v21 }
0x174c   :  { %v5510_v38 = vpop.f32.mrb[104].mxu1 }
0x174d   :  { %v5512_v5 = vpop.f32.mrb[105].mxu1 }
0x174e   :  { %v5368_v23 = vpop.f32.mrb[100].mxu0  ;;  %v5514_v22 = vpop.f32.mrb[106].mxu1 }
0x174f   :  { %v5375_v16 = vadd.f32 %v5368_v23, %v5233_v15  ;;  %v5370_v28 = vpop.f32.mrb[101].mxu0  ;;  %v5515_v8 = vpop.f32.mrb[107].mxu1 }
0x1750   :  { %v5376_v10 = vadd.f32 %v5370_v28, %v5234_v13  ;;  %v5372_v20 = vpop.f32.mrb[102].mxu0 }
0x1751   :  { %v5373_v40 = vpop.f32.mrb[103].mxu0  ;;  %v5517_v0 = vadd.f32 %v5510_v38, %v5375_v16 }
0x1752   :  { %v5518_v44 = vadd.f32 %v5512_v5, %v5376_v10 }
0x176c   :  { %v5794_v24 = vpop.f32.mrb[108].mxu1 }
0x176d   :  { %v5796_v2 = vpop.f32.mrb[109].mxu1 }
0x176e   :  { %v5652_v26 = vpop.f32.mrb[104].mxu0  ;;  %v5798_v63 = vpop.f32.mrb[110].mxu1 }
0x176f   :  { %v5659_v6 = vadd.f32 %v5652_v26, %v5517_v0  ;;  %v5654_v36 = vpop.f32.mrb[105].mxu0  ;;  %v5799_v42 = vpop.f32.mrb[111].mxu1 }
0x1770   :  { %v5660_v31 = vadd.f32 %v5654_v36, %v5518_v44  ;;  %v5656_v43 = vpop.f32.mrb[106].mxu0 }
0x1771   :  { %v5801_v30 = vadd.f32 %v5794_v24, %v5659_v6  ;;  %v5657_v29 = vpop.f32.mrb[107].mxu0 }
0x1772   :  { %v5802_v47 = vadd.f32 %v5796_v2, %v5660_v31 }
0x1773   :  { %v5815_v35 = vadd.f32 %v5808_v11, %v5801_v30 }
0x1774   :  { %v5816_v17 = vadd.f32 %v5812_v34, %v5802_v47 }
0x1775   :  { %v5817_v41 = vmax.f32 %v5815_v35, 0.0 }
0x1776   :  { %v5818_v3 = vmax.f32 %v5816_v17, 0.0 }
0x1777   :  { %v5819_v9 = vpack.c.bf16 %v5817_v41, %v5817_v41 }
0x1778   :  { %v5820_v18 = vpack.c.bf16 %v5818_v3, %v5818_v3 }
0x177a   :  { %5988 = vmatprep.mubr.bf16.mxu0 %v5820_v18 }
0x177b   :  { %5989 = vmatmul.mubr.bf16.vlgmr.msra.gmra.mrb[108].mxu0 %v5819_v9 }
0x184e   :  { %v6519_v39 = vpop.f32.mrb[108].mxu0 }
0x184f   :  { %v6520_v45 = vpop.f32.mrb[109].mxu0 }
0x1850   :  { %v6521_v46 = vadd.f32 %v6520_v45, %v6519_v39  ;;  %v6522_v33 = vpop.f32.mrb[110].mxu0 }
0x1851   :  { %v6523_v7 = vpop.f32.mrb[111].mxu0 }
0x1852   :  { %v5991_v4 = vadd.f32 %v6521_v46, %v6472_v1 }
0x1854   :  { %v5997_v48 = vsel %vm5996_vm0, %v5991_v4, -inf }
0x1855   :  { %5998 = vmax.xlane.f32.xlu1 %v5997_v48 }
0x18e2   :  { %v5999_v49 = vpop.xlane.xlu1 %5998 }
0x18e3   :  { %v6000_v50 = vsub.f32 %v5991_v4, %v5999_v49 }
0x18e5   :  { %v6001_v32 = vmul.f32 1.442695, %v6000_v50 }
0x18e7   :  { %7446 = vpow2.f32 %v6001_v32 }
0x18f1   :  { %v7447_v51 = vpop.eup %7446 }
0x18f2   :  { %v6003_v25 = vsel %vm5996_vm0, %v7447_v51, 0.0 }
0x18f3   :  { %6004 = vadd.xlane.f32.xlu0 %v6003_v25 }
0x1980   :  { %v6005_v52 = vpop.xlane.xlu0 %6004 }
0x1981   :  { %7448 = vrcp.f32 %v6005_v52 }
0x198b   :  { %v7449_v53 = vpop.eup %7448 }
0x198c   :  { %v6007_v54 = vmul.f32 %v7449_v53, %v7447_v51 }
0x198e   :  { %6008 = vst.msk [vmem:[#allocation20] sm:$0x3] %vm5996_vm0, %v6007_v54 }
0x198f   :  { %7767 = shalt.err (!%p7764_p8)
}
0x1990   :  { %s7768_s2 = scalar_lea.hbm %s9377_s21, 32 }
0x1991   :  { %p7769_p9 = scmp.ne.s32.totalorder %s9377_s21, %s7768_s2  ;;  %p7772_p10 = scmp.lt.u32.totalorder %s7768_s2, %s9377_s21 }
0x1993   :  { %p7774_p11 = pnand %p7772_p10, %p7769_p9 }
0x1995   :  { %7777 = shalt.err (!%p7774_p11)
}
0x1996   :  { %6018 = dma.vmem_to_hbm [thread:$0]  %s6016_s10, 32, %s9377_s21, [#allocation4]  }
0x1997   :  { %7790 = dma.done.wait [#allocation4], 32  }
0x1998   :  { %7791 = vsyncadd [#allocation4], 4294967264 }
0x1999   :  { %6022 = vsyncpa [#allocation3], 1 }
0x199a   :  { %6023 = vsyncpa [#allocation6], 1 }
0x199b   :  { %6024 = vsyncpa [#allocation9], 1 }
0x199c   :  { %6025 = vsyncpa [#allocation12], 1 }
0x199d   :  { %6026 = vsyncpa [#allocation15], 1 }
0x199e   :  { %6027 = vsyncpa [#allocation18], 1 }
0x199f   :  { %6028 = vsyncpa [#allocation4], 1 }

</bundles_post_ra>
